<compile_context>
chip_gen: v7x
topology: tpu7x:2x2x1
jax: 0.10.0
libtpu: 0.0.40
codegen_flags: <defaults>
</compile_context>

<pallas_src>
import jax
import jax.numpy as jnp
from jax import lax
from jax.experimental import pallas as pl
from jax.experimental.pallas import tpu as pltpu

_LANES = 128
_SUBLANES = 8
_MAX_TILE_ROWS = 4096                 # (4096,128) f32 block = 2 MiB per input
_MIN_KERNEL_ELEMS = 512 * _LANES      # below this, plain jnp wins
_EPS = 1e-8


def _num_tensorcores() -> int:
    """2 TensorCores per chip only on v7x among {v5e, v6e, v7x}."""
    try:
        kind = jax.devices()[0].device_kind.lower()
    except Exception:
        return 1
    return 2 if ("v7" in kind or "7x" in kind) else 1


def _make_mape_kernel(rows_total, tile_rows, num_i, num_full_blocks, need_mask):
    """Per-block partial-sum kernel (all shape parameters are static)."""
    n_chunks = tile_rows // _SUBLANES

    def _block_sum(x):
        # (tile_rows, 128) -> (n_chunks, 8, 128) is a layout-preserving split
        # of the sublane-major dim; sum(axis=0) is pure vreg adds (no XLU).
        return x.reshape(n_chunks, _SUBLANES, _LANES).sum(axis=0).reshape(
            1, _SUBLANES, _LANES)

    def kernel(pred_ref, true_ref, out_ref):
        c = pl.program_id(0)          # core axis (size 1 on v5e/v6e)
        i = pl.program_id(1)          # reduction axis (blocks per core)

        # Zero this core's resident (1, 8, 128) accumulator block once.
        @pl.when(i == 0)
        def _():
            out_ref[...] = jnp.zeros_like(out_ref)

        # Upcast in-kernel (free on the VPU; halves HBM traffic for bf16).
        y_pred = pred_ref[...].astype(jnp.float32)
        y_true = true_ref[...].astype(jnp.float32)
        term = jnp.abs((y_true - y_pred) / (y_true + jnp.float32(_EPS)))

        if not need_mask:
            # Common case: every block is fully valid -> no iota/cmp/select.
            out_ref[...] += _block_sum(term)
        else:
            g = c * num_i + i          # global (unclamped) block id

            @pl.when(g < num_full_blocks)
            def _():                   # fully-valid block: plain accumulate
                out_ref[...] += _block_sum(term)

            @pl.when(g >= num_full_blocks)
            def _():                   # partial / padded block: masked
                row_ids = g * tile_rows + lax.broadcasted_iota(
                    jnp.int32, (tile_rows, _LANES), 0)
                # select (NOT multiply): padded garbage may be NaN/Inf.
                masked = jnp.where(row_ids < rows_total, term,
                                   jnp.float32(0.0))
                out_ref[...] += _block_sum(masked)

    return kernel


def mape_loss(y_pred: jax.Array, y_true: jax.Array) -> jax.Array:
    """MAPE loss (scalar), semantics identical to the PyTorch module."""
    assert y_pred.shape == y_true.shape
    n_elems = y_pred.size

    pred_flat = y_pred.reshape(-1)
    true_flat = y_true.reshape(-1)

    def _jnp_sum(p, t):
        p = p.astype(jnp.float32)
        t = t.astype(jnp.float32)
        return jnp.sum(jnp.abs((t - p) / (t + jnp.float32(_EPS))))

    # Small-input bailout: XLA's fused elementwise+reduce beats kernel launch.
    if n_elems < _MIN_KERNEL_ELEMS:
        return (_jnp_sum(pred_flat, true_flat) / jnp.float32(n_elems)) * 100.0

    prefix = (n_elems // _LANES) * _LANES   # part handled by the kernel
    tail = n_elems - prefix                 # < 128 leftover elements
    rows = prefix // _LANES

    # TODO(synk): for ragged sizes (tail != 0) the [:prefix] slice makes XLA
    # materialize a copy of both inputs before the custom call; a 1-D
    # BlockSpec + in-kernel reshape would avoid it but is riskier to lower.
    if tail == 0:
        pred2d = pred_flat.reshape(rows, _LANES)
        true2d = true_flat.reshape(rows, _LANES)
    else:
        pred2d = pred_flat[:prefix].reshape(rows, _LANES)
        true2d = true_flat[:prefix].reshape(rows, _LANES)

    # Tile rows: always a multiple of 8 (single-vreg accumulator reshape) and
    # never larger than the slab.  rows >= 512 is guaranteed by the bailout.
    if rows >= _MAX_TILE_ROWS:
        tile_rows = _MAX_TILE_ROWS
    elif rows % _SUBLANES == 0:
        tile_rows = rows
    else:
        tile_rows = (rows // _SUBLANES) * _SUBLANES

    num_blocks = pl.cdiv(rows, tile_rows)
    num_full_blocks = rows // tile_rows

    # Generation-aware core split (2 only on v7x, and only when it does not
    # force redundant clamped-block DMA on tiny grids).
    tc = _num_tensorcores()
    if tc > 1 and (num_blocks % tc == 0 or num_blocks >= 4 * tc):
        num_cores = tc
    else:
        num_cores = 1
    num_i = pl.cdiv(num_blocks, num_cores)

    need_mask = (rows % tile_rows != 0) or (num_cores * num_i != num_blocks)

    def in_index_map(c, i):
        g = c * num_i + i
        # Clamp so padded grid steps never DMA out of range; the in-kernel
        # mask (using the unclamped id) zeroes their contribution.
        return (jnp.minimum(g, num_blocks - 1), 0)

    if num_cores == 2 and hasattr(pltpu, "CORE_PARALLEL") and hasattr(pltpu, "ARBITRARY"):
        dim_sems = (pltpu.CORE_PARALLEL, pltpu.ARBITRARY)
    elif num_cores == 2:
        dim_sems = ("parallel", "arbitrary")
    else:
        dim_sems = ("arbitrary", "arbitrary")

    bytes_accessed = (pred2d.size * pred2d.dtype.itemsize
                      + true2d.size * true2d.dtype.itemsize
                      + num_cores * _SUBLANES * _LANES * 4)

    partials = pl.pallas_call(
        _make_mape_kernel(rows, tile_rows, num_i, num_full_blocks, need_mask),
        out_shape=jax.ShapeDtypeStruct((num_cores, _SUBLANES, _LANES),
                                       jnp.float32),
        grid_spec=pltpu.PrefetchScalarGridSpec(
            num_scalar_prefetch=0,
            grid=(num_cores, num_i),
            in_specs=[
                pl.BlockSpec((tile_rows, _LANES), in_index_map),
                pl.BlockSpec((tile_rows, _LANES), in_index_map),
            ],
            out_specs=pl.BlockSpec((1, _SUBLANES, _LANES),
                                   lambda c, i: (c, 0, 0)),
        ),
        compiler_params=pltpu.CompilerParams(
            dimension_semantics=dim_sems,
            vmem_limit_bytes=48 * 1024 * 1024,
        ),
        cost_estimate=pl.CostEstimate(
            flops=5 * prefix,
            transcendentals=0,
            bytes_accessed=bytes_accessed,
        ),
    )(pred2d, true2d)

    total = jnp.sum(partials)           # num_cores * 1024 partial sums

    if tail:
        # Tiny (<128 elem) tail handled in plain JAX to avoid padding copies.
        total = total + _jnp_sum(pred_flat[prefix:], true_flat[prefix:])

    # Glue: mean over the ORIGINAL element count, then * 100.
    return (total / jnp.float32(n_elems)) * jnp.float32(100.0)


if __name__ == "__main__":
    key = jax.random.PRNGKey(0)
    keys = jax.random.split(key, 6)

    # 1) Small shape -> small-input bailout path (plain jnp).
    # 2) (4,256,256) -> Pallas kernel, single full block, unmasked fast path.
    # 3) (5,103,129) -> Pallas kernel, multi-block with partial last block
    #    (masked path) plus a <128-element JAX tail.
    test_shapes = [(2, 4, 16, 16), (4, 256, 256), (5, 103, 129)]

    for idx, shape in enumerate(test_shapes):
        k_pred, k_true = keys[2 * idx], keys[2 * idx + 1]
        y_pred = jax.random.normal(k_pred, shape, dtype=jnp.float32)
        # Keep y_true bounded away from 0 so the check is well-conditioned.
        y_true = jax.random.uniform(k_true, shape, dtype=jnp.float32,
                                    minval=1.0, maxval=3.0)

        loss = jax.block_until_ready(mape_loss(y_pred, y_true))

        ref = jnp.mean(jnp.abs((y_true - y_pred) / (y_true + 1e-8))) * 100.0
        assert jnp.allclose(loss, ref, rtol=1e-4, atol=1e-3), (shape, loss, ref)

    print("KERNEL_OK")
</pallas_src>

<mosaic_0001>
module attributes {stable_mosaic.version = 11 : i64} {
  func.func @kernel(%arg0: i32, %arg1: i32, %arg2: memref<2048x128xf32, #tpu.memory_space<vmem>>, %arg3: memref<2048x128xf32, #tpu.memory_space<vmem>>, %arg4: memref<1x8x128xf32, #tpu.memory_space<vmem>>) attributes {dimension_semantics = [#tpu.dimension_semantics<arbitrary>, #tpu.dimension_semantics<arbitrary>], iteration_bounds = array<i64: 1, 1>, scalar_prefetch = 0 : i64, scratch_operands = 0 : i64, tpu.core_type = #tpu.core_type<tc>, window_params = [{transform_indices = @transform_0, window_bounds = array<i64: 2048, 128>}, {transform_indices = @transform_1, window_bounds = array<i64: 2048, 128>}, {transform_indices = @transform_2, window_bounds = array<i64: 1, 8, 128>}]} {
    %c0_i32 = arith.constant 0 : i32
    %0 = arith.cmpi eq, %arg1, %c0_i32 : i32
    %1 = arith.extui %0 : i1 to i32
    %c0_i32_0 = arith.constant 0 : i32
    %2 = arith.cmpi ne, %1, %c0_i32_0 : i32
    scf.if %2 {
      %cst_11 = arith.constant 0.000000e+00 : f32
      %16 = vector.broadcast %cst_11 : f32 to vector<1x8x128xf32>
      %c0_12 = arith.constant 0 : index
      %c0_13 = arith.constant 0 : index
      %c0_14 = arith.constant 0 : index
      %17 = vector.load %arg4[%c0_12, %c0_13, %c0_14] : memref<1x8x128xf32, #tpu.memory_space<vmem>>, vector<1x8x128xf32>
      tpu.vector_store %arg4[%c0_12, %c0_13, %c0_14], %16 {strides = array<i32>} : memref<1x8x128xf32, #tpu.memory_space<vmem>>, vector<1x8x128xf32>,
    } else {
    }
    %c0 = arith.constant 0 : index
    %c0_1 = arith.constant 0 : index
    %3 = vector.load %arg2[%c0, %c0_1] : memref<2048x128xf32, #tpu.memory_space<vmem>>, vector<2048x128xf32>
    %c0_2 = arith.constant 0 : index
    %c0_3 = arith.constant 0 : index
    %4 = vector.load %arg3[%c0_2, %c0_3] : memref<2048x128xf32, #tpu.memory_space<vmem>>, vector<2048x128xf32>
    %5 = arith.subf %4, %3 : vector<2048x128xf32>
    %cst = arith.constant 9.99999993E-9 : f32
    %6 = vector.broadcast %cst : f32 to vector<2048x128xf32>
    %7 = arith.addf %4, %6 : vector<2048x128xf32>
    %8 = arith.divf %5, %7 : vector<2048x128xf32>
    %9 = math.absf %8 : vector<2048x128xf32>
    %c0_4 = arith.constant 0 : index
    %c0_5 = arith.constant 0 : index
    %c0_6 = arith.constant 0 : index
    %10 = vector.load %arg4[%c0_4, %c0_5, %c0_6] : memref<1x8x128xf32, #tpu.memory_space<vmem>>, vector<1x8x128xf32>
    %11 = vector.shape_cast %9 : vector<2048x128xf32> to vector<256x8x128xf32>
    %cst_7 = arith.constant dense<0.000000e+00> : vector<8x128xf32>
    %12 = vector.multi_reduction <add>, %11, %cst_7 [0] : vector<256x8x128xf32> to vector<8x128xf32>
    %13 = vector.shape_cast %12 : vector<8x128xf32> to vector<1x8x128xf32>
    %14 = arith.addf %10, %13 : vector<1x8x128xf32>
    %c0_8 = arith.constant 0 : index
    %c0_9 = arith.constant 0 : index
    %c0_10 = arith.constant 0 : index
    %15 = vector.load %arg4[%c0_8, %c0_9, %c0_10] : memref<1x8x128xf32, #tpu.memory_space<vmem>>, vector<1x8x128xf32>
    tpu.vector_store %arg4[%c0_8, %c0_9, %c0_10], %14 {strides = array<i32>} : memref<1x8x128xf32, #tpu.memory_space<vmem>>, vector<1x8x128xf32>,
    return
  }
  func.func @transform_0(%arg0: i32, %arg1: i32) -> (i32, i32) {
    %c1_i32 = arith.constant 1 : i32
    %0 = arith.muli %arg0, %c1_i32 : i32
    %1 = arith.addi %0, %arg1 : i32
    %c0_i32 = arith.constant 0 : i32
    %2 = arith.minsi %1, %c0_i32 : i32
    %c0_i32_0 = arith.constant 0 : i32
    %c0_i32_1 = arith.constant 0 : i32
    return %2, %c0_i32_0 : i32, i32
  }
  func.func @transform_1(%arg0: i32, %arg1: i32) -> (i32, i32) {
    %c1_i32 = arith.constant 1 : i32
    %0 = arith.muli %arg0, %c1_i32 : i32
    %1 = arith.addi %0, %arg1 : i32
    %c0_i32 = arith.constant 0 : i32
    %2 = arith.minsi %1, %c0_i32 : i32
    %c0_i32_0 = arith.constant 0 : i32
    %c0_i32_1 = arith.constant 0 : i32
    return %2, %c0_i32_0 : i32, i32
  }
  func.func @transform_2(%arg0: i32, %arg1: i32) -> (i32, i32, i32) {
    %c0_i32 = arith.constant 0 : i32
    %c0_i32_0 = arith.constant 0 : i32
    %c0_i32_1 = arith.constant 0 : i32
    return %arg0, %c0_i32, %c0_i32_0 : i32, i32, i32
  }
}

</mosaic_0001>

<bundles_post_ra>
// kernel: tpu_custom_call.1
= control target key start
LH: loop header
LB: loop body
LE: loop exit
PB: predicated region body
PF: predicated region fallthrough
CT: control target
= control target key end

     0   :  { %7 = vsyncpa [#allocation3], 0  ;;  %s3785_s0 = inlined_call_operand.hbm [shape: f32[2048,128], index: 0, kind: input, shape index: {}]   ;;  %s3786_s1 = inlined_call_operand.hbm [shape: f32[2048,128], index: 1, kind: input, shape index: {}]   ;;  %s3787_s2 = inlined_call_operand.hbm [shape: f32[1,8,128], index: 2, kind: output, shape index: {}]  }
   0x1   :  { %8 = vsyncpa [#allocation6], 0 }
   0x2   :  { %9 = vsyncpa [#allocation4], 0  ;;  %s2725_s9 = smov [#allocation2]   ;;  %s2653_s13 = scalar_lea.hbm %s3785_s0, 32768 }
   0x3   :  { %s21_s10 = sshll.u32 %s2725_s9, 4  ;;  %p2654_p0 = scmp.ne.s32.totalorder %s3785_s0, %s2653_s13  ;;  %s22_s10 = int_to_ptr.vmem [resolvable:$true] %s21_s10 }
   0x4   :  { %p2657_p1 = scmp.lt.u32.totalorder %s2653_s13, %s3785_s0 }
   0x6   :  { %p2659_p2 = pnand %p2657_p1, %p2654_p0 }
   0x8   :  { %2662 = shalt.err (!%p2659_p2)
}
   0x9   :  { %s2663_s18 = scalar_lea.vmem %s22_s10, 32768  ;;  %p2668_p4 = scmp.lt.s32.totalorder %s22_s10, %s22_s10 }
   0xa   :  { %p2664_p3 = scmp.ne.s32.totalorder %s22_s10, %s2663_s18  ;;  %p2669_p5 = scmp.lt.s32.totalorder %s2663_s18, %s2663_s18 }
   0xc   :  { %p2670_p6 = por %p2669_p5, %p2668_p4 }
   0xe   :  { %p2671_p7 = pnand %p2670_p6, %p2664_p3 }
  0x10   :  { %2674 = shalt.err (!%p2671_p7)
}
  0x11   :  { %s2726_s19 = smov 128   ;;  %s2727_s20 = smov 8  }
  0x12   :  { %27 = dma.hbm_to_vmem [thread:$0]  %s3785_s0, 32768, %s22_s10, [#allocation3], %s2726_s19, %s2726_s19, %s2727_s20  }
  0x13   :  { %s2728_s23 = smov [#allocation5]   ;;  %s2675_s27 = scalar_lea.hbm %s3786_s1, 32768 }
  0x14   :  { %s39_s24 = sshll.u32 %s2728_s23, 4  ;;  %p2676_p8 = scmp.ne.s32.totalorder %s3786_s1, %s2675_s27  ;;  %s40_s24 = int_to_ptr.vmem [resolvable:$true] %s39_s24 }
  0x15   :  { %p2679_p9 = scmp.lt.u32.totalorder %s2675_s27, %s3786_s1 }
  0x17   :  { %p2681_p10 = pnand %p2679_p9, %p2676_p8 }
  0x19   :  { %2684 = shalt.err (!%p2681_p10)
}
  0x1a   :  { %s2685_s4 = scalar_lea.vmem %s40_s24, 32768  ;;  %p2690_p12 = scmp.lt.s32.totalorder %s40_s24, %s40_s24 }
  0x1b   :  { %p2686_p11 = scmp.ne.s32.totalorder %s40_s24, %s2685_s4  ;;  %p2691_p13 = scmp.lt.s32.totalorder %s2685_s4, %s2685_s4 }
  0x1d   :  { %p2692_p0 = por %p2691_p13, %p2690_p12 }
  0x1f   :  { %p2693_p1 = pnand %p2692_p0, %p2686_p11 }
  0x21   :  { %2696 = shalt.err (!%p2693_p1)
}
  0x22   :  { %45 = dma.hbm_to_vmem [thread:$0]  %s3786_s1, 32768, %s40_s24, [#allocation6], %s2726_s19, %s2726_s19, %s2727_s20  }
  0x23   :  { %2719 = dma.done.wait [#allocation3], 32768  }
  0x24   :  { %2720 = vsyncadd [#allocation3], 4294934528 }
  0x25   :  { %2721 = dma.done.wait [#allocation6], 32768  }
  0x26   :  { %2722 = vsyncadd [#allocation6], 4294934528  ;;  %v321_v0 = vld [vmem:[#allocation5] sm:$0xff]  ;;  %v322_v1 = vld [vmem:[#allocation5 + $0x8] sm:$0xff]  ;;  %s2729_s1 = smov [#allocation7]  }
  0x27   :  { %v323_v2 = vld [vmem:[#allocation5 + $0x10] sm:$0xff]  ;;  %v833_v3 = vadd.f32 1e-08, %v321_v0  ;;  %v834_v4 = vadd.f32 1e-08, %v322_v1  ;;  %v324_v5 = vld [vmem:[#allocation5 + $0x18] sm:$0xff] }
  0x28   :  { %v835_v6 = vadd.f32 1e-08, %v323_v2  ;;  %v325_v7 = vld [vmem:[#allocation5 + $0x20] sm:$0xff]  ;;  %v836_v8 = vadd.f32 1e-08, %v324_v5  ;;  %v2769_v9 = vld [vmem:[#allocation5 + $0x28] sm:$0xff] }
  0x29   :  { %2141 = vrcp.f32 %v833_v3  ;;  %v837_v10 = vadd.f32 1e-08, %v325_v7  ;;  %v2771_v11 = vld [vmem:[#allocation5 + $0x30] sm:$0xff]  ;;  %v838_v12 = vadd.f32 1e-08, %v2769_v9  ;;  %v2774_v13 = vld [vmem:[#allocation5 + $0x38] sm:$0xff] }
  0x2a   :  { %2143 = vrcp.f32 %v834_v4  ;;  %v65_v14 = vld [vmem:[#allocation2] sm:$0xff]  ;;  %v66_v15 = vld [vmem:[#allocation2 + $0x8] sm:$0xff]  ;;  %v839_v16 = vadd.f32 1e-08, %v2771_v11  ;;  %v67_v18 = vld [vmem:[#allocation2 + $0x10] sm:$0xff]  ;;  %s2121_s6 = sshll.u32 %s2729_s1, 4  ;;  %s2122_s6 = int_to_ptr.vmem [resolvable:$true] %s2121_s6 }
  0x2b   :  { %2145 = vrcp.f32 %v835_v6  ;;  %v2777_v17 = vld [vmem:[#allocation5 + $0x40] sm:$0xff]  ;;  %v840_v19 = vadd.f32 1e-08, %v2774_v13  ;;  %v2780_v21 = vld [vmem:[#allocation5 + $0x48] sm:$0xff]  ;;  %v577_v22 = vsub.f32 %v321_v0, %v65_v14  ;;  %v578_v23 = vsub.f32 %v322_v1, %v66_v15  ;;  %v68_v25 = vld [vmem:[#allocation2 + $0x18] sm:$0xff]  ;;  %s2697_s7 = scalar_lea.vmem %s2122_s6, 128  ;;  %p2702_p3 = scmp.lt.s32.totalorder %s2122_s6, %s2122_s6 }
  0x2c   :  { %2147 = vrcp.f32 %v836_v8  ;;  %v841_v26 = vadd.f32 1e-08, %v2777_v17  ;;  %v2783_v27 = vld [vmem:[#allocation5 + $0x50] sm:$0xff]  ;;  %v579_v28 = vsub.f32 %v323_v2, %v67_v18  ;;  %v69_v30 = vld [vmem:[#allocation2 + $0x20] sm:$0xff]  ;;  %v842_v31 = vadd.f32 1e-08, %v2780_v21  ;;  %p2698_p2 = scmp.ne.s32.totalorder %s2122_s6, %s2697_s7  ;;  %p2703_p4 = scmp.lt.s32.totalorder %s2697_s7, %s2697_s7 }
  0x2d   :  { %2149 = vrcp.f32 %v837_v10  ;;  %v2786_v32 = vld [vmem:[#allocation5 + $0x58] sm:$0xff]  ;;  %v580_v33 = vsub.f32 %v324_v5, %v68_v25  ;;  %v70_v37 = vld [vmem:[#allocation2 + $0x28] sm:$0xff]  ;;  %v843_v38 = vadd.f32 1e-08, %v2783_v27  ;;  %v2789_v39 = vld [vmem:[#allocation5 + $0x60] sm:$0xff]  ;;  %v581_v40 = vsub.f32 %v325_v7, %v69_v30 }
  0x2e   :  { %2151 = vrcp.f32 %v838_v12  ;;  %v71_v43 = vld [vmem:[#allocation2 + $0x30] sm:$0xff]  ;;  %v844_v44 = vadd.f32 1e-08, %v2786_v32  ;;  %v2792_v45 = vld [vmem:[#allocation5 + $0x68] sm:$0xff]  ;;  %v582_v46 = vsub.f32 %v2769_v9, %v70_v37  ;;  %v72_v51 = vld [vmem:[#allocation2 + $0x38] sm:$0xff]  ;;  %p2704_p5 = por %p2703_p4, %p2702_p3 }
  0x2f   :  { %2153 = vrcp.f32 %v839_v16  ;;  %v845_v52 = vadd.f32 1e-08, %v2789_v39  ;;  %v2796_v53 = vld [vmem:[#allocation5 + $0x70] sm:$0xff]  ;;  %v583_v54 = vsub.f32 %v2771_v11, %v71_v43  ;;  %v73_v58 = vld [vmem:[#allocation2 + $0x40] sm:$0xff]  ;;  %v846_v59 = vadd.f32 1e-08, %v2792_v45 }
  0x30   :  { %2155 = vrcp.f32 %v840_v19  ;;  %v2800_v60 = vld [vmem:[#allocation5 + $0x78] sm:$0xff]  ;;  %v584_v61 = vsub.f32 %v2774_v13, %v72_v51  ;;  %v74_v2 = vld [vmem:[#allocation2 + $0x48] sm:$0xff]  ;;  %v847_v3 = vadd.f32 1e-08, %v2796_v53  ;;  %v2804_v4 = vld [vmem:[#allocation5 + $0x80] sm:$0xff]  ;;  %v585_v5 = vsub.f32 %v2777_v17, %v73_v58  ;;  %p2705_p6 = pnand %p2704_p5, %p2698_p2 }
  0x31   :  { %2157 = vrcp.f32 %v841_v26  ;;  %v75_v10 = vld [vmem:[#allocation2 + $0x50] sm:$0xff]  ;;  %v848_v11 = vadd.f32 1e-08, %v2800_v60  ;;  %v2808_v12 = vld [vmem:[#allocation5 + $0x88] sm:$0xff]  ;;  %v586_v13 = vsub.f32 %v2780_v21, %v74_v2  ;;  %v76_v19 = vld [vmem:[#allocation2 + $0x58] sm:$0xff] }
  0x32   :  { %2159 = vrcp.f32 %v842_v31  ;;  %v2812_v17 = vld [vmem:[#allocation5 + $0x90] sm:$0xff]  ;;  %v2816_v21 = vld [vmem:[#allocation5 + $0x98] sm:$0xff]  ;;  %v588_v30 = vsub.f32 %v2786_v32, %v76_v19  ;;  %v2824_v32 = vld [vmem:[#allocation5 + $0xa8] sm:$0xff] }
  0x33   :  { %v2142_v20 = vpop.eup %2141  ;;  %2161 = vrcp.f32 %v843_v38  ;;  %v851_v37 = vadd.f32 1e-08, %v2812_v17 }
  0x34   :  { %v2144_v24 = vpop.eup %2143  ;;  %v1090_v34 = vmul.f32 %v2142_v20, %v577_v22  ;;  %2163 = vrcp.f32 %v844_v44  ;;  %v849_v20 = vadd.f32 1e-08, %v2804_v4  ;;  %v587_v22 = vsub.f32 %v2783_v27, %v75_v10  ;;  %v2820_v27 = vld [vmem:[#allocation5 + $0xa0] sm:$0xff]  ;;  %v79_v44 = vld [vmem:[#allocation2 + $0x70] sm:$0xff] }
  0x35   :  { %v2146_v29 = vpop.eup %2145  ;;  %v1092_v35 = vmul.f32 %v2144_v24, %v578_v23  ;;  %2165 = vrcp.f32 %v845_v52  ;;  %v80_v52 = vld [vmem:[#allocation2 + $0x78] sm:$0xff] }
  0x36   :  { %v2148_v36 = vpop.eup %2147  ;;  %v1094_v41 = vmul.f32 %v2146_v29, %v579_v28  ;;  %v1601_v48 = vand.u32 2147483647, %v1090_v34  ;;  %2167 = vrcp.f32 %v846_v59  ;;  %v77_v28 = vld [vmem:[#allocation2 + $0x60] sm:$0xff]  ;;  %v850_v29 = vadd.f32 1e-08, %v2808_v12 }
  0x37   :  { %v2150_v42 = vpop.eup %2149  ;;  %v1096_v47 = vmul.f32 %v2148_v36, %v580_v33  ;;  %v1602_v49 = vand.u32 2147483647, %v1092_v35  ;;  %2169 = vrcp.f32 %v847_v3  ;;  %v78_v36 = vld [vmem:[#allocation2 + $0x68] sm:$0xff]  ;;  %v589_v38 = vsub.f32 %v2789_v39, %v77_v28  ;;  %v2828_v39 = vld [vmem:[#allocation5 + $0xb0] sm:$0xff] }
  0x38   :  { %v2152_v50 = vpop.eup %2151  ;;  %v1098_v55 = vmul.f32 %v2150_v42, %v581_v40  ;;  %v1603_v56 = vand.u32 2147483647, %v1094_v41  ;;  %2171 = vrcp.f32 %v848_v11 }
  0x39   :  { %v2154_v57 = vpop.eup %2153  ;;  %v1100_v62 = vmul.f32 %v2152_v50, %v582_v46  ;;  %v1604_v63 = vand.u32 2147483647, %v1096_v47  ;;  %v1858_v0 = vadd.f32 %v1602_v49, %v1601_v48  ;;  %2173 = vrcp.f32 %v849_v20 }
  0x3a   :  { %v2156_v1 = vpop.eup %2155  ;;  %v1102_v6 = vmul.f32 %v2154_v57, %v583_v54  ;;  %v1605_v7 = vand.u32 2147483647, %v1098_v55  ;;  %v852_v46 = vadd.f32 1e-08, %v2816_v21  ;;  %2175 = vrcp.f32 %v850_v29 }
  0x3b   :  { %v1859_v8 = vadd.f32 %v1858_v0, %v1603_v56  ;;  %v2158_v9 = vpop.eup %2157  ;;  %v1104_v14 = vmul.f32 %v2156_v1, %v584_v61  ;;  %v1606_v15 = vand.u32 2147483647, %v1100_v62  ;;  %v590_v47 = vsub.f32 %v2792_v45, %v78_v36  ;;  %v81_v61 = vld [vmem:[#allocation2 + $0x80] sm:$0xff]  ;;  %v2832_v45 = vld [vmem:[#allocation5 + $0xb8] sm:$0xff] }
  0x3c   :  { %v2160_v18 = vpop.eup %2159  ;;  %v1106_v23 = vmul.f32 %v2158_v9, %v585_v5  ;;  %v1607_v24 = vand.u32 2147483647, %v1102_v6  ;;  %v853_v54 = vadd.f32 1e-08, %v2820_v27  ;;  %2177 = vrcp.f32 %v851_v37  ;;  %v82_v5 = vld [vmem:[#allocation2 + $0x88] sm:$0xff] }
  0x3d   :  { %v1860_v16 = vadd.f32 %v1859_v8, %v1604_v63  ;;  %v2162_v26 = vpop.eup %2161  ;;  %v1108_v31 = vmul.f32 %v2160_v18, %v586_v13  ;;  %v1608_v33 = vand.u32 2147483647, %v1104_v14  ;;  %v591_v55 = vsub.f32 %v2796_v53, %v79_v44  ;;  %v2836_v53 = vld [vmem:[#allocation5 + $0xc0] sm:$0xff]  ;;  %v83_v13 = vld [vmem:[#allocation2 + $0x90] sm:$0xff] }
  0x3e   :  { %v2164_v35 = vpop.eup %2163  ;;  %v1110_v40 = vmul.f32 %v2162_v26, %v587_v22  ;;  %v1609_v41 = vand.u32 2147483647, %v1106_v23  ;;  %v854_v62 = vadd.f32 1e-08, %v2824_v32  ;;  %2179 = vrcp.f32 %v852_v46  ;;  %v84_v22 = vld [vmem:[#allocation2 + $0x98] sm:$0xff] }
  0x3f   :  { %v1861_v25 = vadd.f32 %v1860_v16, %v1605_v7  ;;  %v2166_v43 = vpop.eup %2165  ;;  %v1112_v48 = vmul.f32 %v2164_v35, %v588_v30  ;;  %v1610_v49 = vand.u32 2147483647, %v1108_v31  ;;  %v592_v63 = vsub.f32 %v2800_v60, %v80_v52  ;;  %v2840_v60 = vld [vmem:[#allocation5 + $0xc8] sm:$0xff]  ;;  %v85_v30 = vld [vmem:[#allocation2 + $0xa0] sm:$0xff] }
  0x40   :  { %v2168_v51 = vpop.eup %2167  ;;  %v1114_v56 = vmul.f32 %v2166_v43, %v589_v38  ;;  %v1611_v57 = vand.u32 2147483647, %v1110_v40  ;;  %v855_v6 = vadd.f32 1e-08, %v2828_v39  ;;  %2181 = vrcp.f32 %v853_v54  ;;  %v86_v38 = vld [vmem:[#allocation2 + $0xa8] sm:$0xff] }
  0x41   :  { %v1862_v34 = vadd.f32 %v1861_v25, %v1606_v15  ;;  %v2170_v59 = vpop.eup %2169  ;;  %v1116_v0 = vmul.f32 %v2168_v51, %v590_v47  ;;  %v1612_v1 = vand.u32 2147483647, %v1112_v48  ;;  %v593_v7 = vsub.f32 %v2804_v4, %v81_v61  ;;  %v2844_v4 = vld [vmem:[#allocation5 + $0xd0] sm:$0xff] }
  0x42   :  { %v2172_v3 = vpop.eup %2171  ;;  %v1118_v8 = vmul.f32 %v2170_v59, %v591_v55  ;;  %v1613_v9 = vand.u32 2147483647, %v1114_v56  ;;  %v856_v14 = vadd.f32 1e-08, %v2832_v45  ;;  %2183 = vrcp.f32 %v854_v62  ;;  %v87_v47 = vld [vmem:[#allocation2 + $0xb0] sm:$0xff]  ;;  %v88_v55 = vld [vmem:[#allocation2 + $0xb8] sm:$0xff] }
  0x43   :  { %v1863_v42 = vadd.f32 %v1862_v34, %v1607_v24  ;;  %v2174_v11 = vpop.eup %2173  ;;  %v594_v15 = vsub.f32 %v2808_v12, %v82_v5  ;;  %v1120_v16 = vmul.f32 %v2172_v3, %v592_v63  ;;  %v1614_v18 = vand.u32 2147483647, %v1116_v0  ;;  %v2848_v12 = vld [vmem:[#allocation5 + $0xd8] sm:$0xff]  ;;  %v89_v63 = vld [vmem:[#allocation2 + $0xc0] sm:$0xff] }
  0x44   :  { %v2176_v20 = vpop.eup %2175  ;;  %v857_v23 = vadd.f32 1e-08, %v2836_v53  ;;  %2185 = vrcp.f32 %v855_v6  ;;  %v595_v24 = vsub.f32 %v2812_v17, %v83_v13  ;;  %v1122_v25 = vmul.f32 %v2174_v11, %v593_v7  ;;  %v2852_v17 = vld [vmem:[#allocation5 + $0xe0] sm:$0xff]  ;;  %v90_v7 = vld [vmem:[#allocation2 + $0xc8] sm:$0xff] }
  0x45   :  { %v1864_v50 = vadd.f32 %v1863_v42, %v1608_v33  ;;  %v1615_v26 = vand.u32 2147483647, %v1118_v8  ;;  %v858_v31 = vadd.f32 1e-08, %v2840_v60  ;;  %2187 = vrcp.f32 %v856_v14 }
  0x46   :  { %v2178_v29 = vpop.eup %2177  ;;  %v596_v33 = vsub.f32 %v2816_v21, %v84_v22  ;;  %v1124_v34 = vmul.f32 %v2176_v20, %v594_v15  ;;  %v1616_v35 = vand.u32 2147483647, %v1120_v16  ;;  %v859_v40 = vadd.f32 1e-08, %v2844_v4  ;;  %v2856_v21 = vld [vmem:[#allocation5 + $0xe8] sm:$0xff]  ;;  %v91_v15 = vld [vmem:[#allocation2 + $0xd0] sm:$0xff] }
  0x47   :  { %v1865_v58 = vadd.f32 %v1864_v50, %v1609_v41  ;;  %2189 = vrcp.f32 %v857_v23  ;;  %v597_v41 = vsub.f32 %v2820_v27, %v85_v30  ;;  %v1126_v42 = vmul.f32 %v2178_v29, %v595_v24  ;;  %v2860_v27 = vld [vmem:[#allocation5 + $0xf0] sm:$0xff]  ;;  %v92_v24 = vld [vmem:[#allocation2 + $0xd8] sm:$0xff] }
  0x48   :  { %v2180_v37 = vpop.eup %2179  ;;  %v1617_v43 = vand.u32 2147483647, %v1122_v25  ;;  %v860_v48 = vadd.f32 1e-08, %v2848_v12  ;;  %2191 = vrcp.f32 %v858_v31  ;;  %v1618_v51 = vand.u32 2147483647, %v1124_v34 }
  0x49   :  { %v1866_v2 = vadd.f32 %v1865_v58, %v1610_v49  ;;  %v598_v49 = vsub.f32 %v2824_v32, %v86_v38  ;;  %v1128_v50 = vmul.f32 %v2180_v37, %v596_v33  ;;  %v861_v56 = vadd.f32 1e-08, %v2852_v17  ;;  %v2864_v32 = vld [vmem:[#allocation5 + $0xf8] sm:$0xff]  ;;  %v93_v33 = vld [vmem:[#allocation2 + $0xe0] sm:$0xff] }
  0x4a   :  { %v2182_v46 = vpop.eup %2181  ;;  %2193 = vrcp.f32 %v859_v40  ;;  %v1619_v59 = vand.u32 2147483647, %v1126_v42  ;;  %v862_v0 = vadd.f32 1e-08, %v2856_v21  ;;  %v863_v8 = vadd.f32 1e-08, %v2860_v27 }
  0x4b   :  { %v1867_v10 = vadd.f32 %v1866_v2, %v1611_v57  ;;  %v599_v57 = vsub.f32 %v2828_v39, %v87_v47  ;;  %v1130_v58 = vmul.f32 %v2182_v46, %v597_v41  ;;  %2195 = vrcp.f32 %v860_v48  ;;  %v2868_v39 = vld [vmem:[#allocation5 + $0x100] sm:$0xff]  ;;  %v94_v41 = vld [vmem:[#allocation2 + $0xe8] sm:$0xff] }
  0x4c   :  { %v2184_v54 = vpop.eup %2183  ;;  %v1620_v3 = vand.u32 2147483647, %v1128_v50  ;;  %2197 = vrcp.f32 %v861_v56  ;;  %v864_v16 = vadd.f32 1e-08, %v2864_v32  ;;  %v865_v25 = vadd.f32 1e-08, %v2868_v39 }
  0x4d   :  { %v1868_v19 = vadd.f32 %v1867_v10, %v1612_v1  ;;  %v600_v1 = vsub.f32 %v2832_v45, %v88_v55  ;;  %v1132_v2 = vmul.f32 %v2184_v54, %v598_v49  ;;  %v1621_v11 = vand.u32 2147483647, %v1130_v58  ;;  %v2872_v45 = vld [vmem:[#allocation5 + $0x108] sm:$0xff]  ;;  %v95_v49 = vld [vmem:[#allocation2 + $0xf0] sm:$0xff] }
  0x4e   :  { %v2186_v62 = vpop.eup %2185  ;;  %2199 = vrcp.f32 %v862_v0  ;;  %v866_v34 = vadd.f32 1e-08, %v2872_v45 }
  0x4f   :  { %v1869_v28 = vadd.f32 %v1868_v19, %v1613_v9  ;;  %v2188_v6 = vpop.eup %2187  ;;  %v601_v9 = vsub.f32 %v2836_v53, %v89_v63  ;;  %v1134_v10 = vmul.f32 %v2186_v62, %v599_v57  ;;  %v1622_v20 = vand.u32 2147483647, %v1132_v2  ;;  %v2876_v53 = vld [vmem:[#allocation5 + $0x110] sm:$0xff]  ;;  %v96_v57 = vld [vmem:[#allocation2 + $0xf8] sm:$0xff] }
  0x50   :  { %v1136_v19 = vmul.f32 %v2188_v6, %v600_v1  ;;  %2201 = vrcp.f32 %v863_v8  ;;  %v867_v42 = vadd.f32 1e-08, %v2876_v53  ;;  %v97_v1 = vld [vmem:[#allocation2 + $0x100] sm:$0xff] }
  0x51   :  { %v1870_v36 = vadd.f32 %v1869_v28, %v1614_v18  ;;  %v2190_v14 = vpop.eup %2189  ;;  %v602_v18 = vsub.f32 %v2840_v60, %v90_v7  ;;  %v1623_v29 = vand.u32 2147483647, %v1134_v10  ;;  %2203 = vrcp.f32 %v864_v16  ;;  %v2880_v60 = vld [vmem:[#allocation5 + $0x118] sm:$0xff] }
  0x52   :  { %v2192_v23 = vpop.eup %2191  ;;  %v1138_v28 = vmul.f32 %v2190_v14, %v601_v9  ;;  %v1624_v37 = vand.u32 2147483647, %v1136_v19  ;;  %2205 = vrcp.f32 %v865_v25  ;;  %v868_v50 = vadd.f32 1e-08, %v2880_v60  ;;  %v98_v9 = vld [vmem:[#allocation2 + $0x108] sm:$0xff] }
  0x53   :  { %v1871_v44 = vadd.f32 %v1870_v36, %v1615_v26  ;;  %v603_v26 = vsub.f32 %v2844_v4, %v91_v15  ;;  %v1140_v36 = vmul.f32 %v2192_v23, %v602_v18  ;;  %v2884_v4 = vld [vmem:[#allocation5 + $0x120] sm:$0xff]  ;;  %2207 = vrcp.f32 %v866_v34  ;;  %v99_v18 = vld [vmem:[#allocation2 + $0x110] sm:$0xff] }
  0x54   :  { %v2194_v31 = vpop.eup %2193  ;;  %v1625_v46 = vand.u32 2147483647, %v1138_v28  ;;  %v869_v58 = vadd.f32 1e-08, %v2884_v4  ;;  %2209 = vrcp.f32 %v867_v42  ;;  %v101_v34 = vld [vmem:[#allocation2 + $0x120] sm:$0xff] }
  0x55   :  { %v1872_v52 = vadd.f32 %v1871_v44, %v1616_v35  ;;  %v604_v35 = vsub.f32 %v2848_v12, %v92_v24  ;;  %v2196_v40 = vpop.eup %2195  ;;  %v1142_v44 = vmul.f32 %v2194_v31, %v603_v26  ;;  %v2888_v12 = vld [vmem:[#allocation5 + $0x128] sm:$0xff]  ;;  %v1626_v54 = vand.u32 2147483647, %v1140_v36  ;;  %v2910_v36 = vld [vmem:[#allocation5 + $0x150] sm:$0xff] }
  0x56   :  { %v2198_v48 = vpop.eup %2197  ;;  %v870_v2 = vadd.f32 1e-08, %v2888_v12  ;;  %2211 = vrcp.f32 %v868_v50  ;;  %v2905_v26 = vld [vmem:[#allocation5 + $0x148] sm:$0xff]  ;;  %v104_v50 = vld [vmem:[#allocation2 + $0x138] sm:$0xff] }
  0x57   :  { %v1873_v61 = vadd.f32 %v1872_v52, %v1617_v43  ;;  %v605_v43 = vsub.f32 %v2852_v17, %v93_v33  ;;  %v1144_v52 = vmul.f32 %v2196_v40, %v604_v35  ;;  %v2892_v17 = vld [vmem:[#allocation5 + $0x130] sm:$0xff]  ;;  %v1627_v62 = vand.u32 2147483647, %v1142_v44 }
  0x58   :  { %v2200_v56 = vpop.eup %2199  ;;  %v871_v10 = vadd.f32 1e-08, %v2892_v17  ;;  %2213 = vrcp.f32 %v869_v58 }
  0x59   :  { %v1874_v5 = vadd.f32 %v1873_v61, %v1618_v51  ;;  %v606_v51 = vsub.f32 %v2856_v21, %v94_v41  ;;  %v1146_v61 = vmul.f32 %v2198_v48, %v605_v43  ;;  %v2896_v21 = vld [vmem:[#allocation5 + $0x138] sm:$0xff]  ;;  %v1628_v6 = vand.u32 2147483647, %v1144_v52  ;;  %v103_v48 = vld [vmem:[#allocation2 + $0x130] sm:$0xff] }
  0x5a   :  { %v2202_v0 = vpop.eup %2201  ;;  %v872_v19 = vadd.f32 1e-08, %v2896_v21  ;;  %2215 = vrcp.f32 %v870_v2 }
  0x5b   :  { %v1875_v13 = vadd.f32 %v1874_v5, %v1619_v59  ;;  %v607_v59 = vsub.f32 %v2860_v27, %v95_v49  ;;  %v1148_v5 = vmul.f32 %v2200_v56, %v606_v51  ;;  %v2204_v8 = vpop.eup %2203  ;;  %v2900_v27 = vld [vmem:[#allocation5 + $0x140] sm:$0xff]  ;;  %v1629_v14 = vand.u32 2147483647, %v1146_v61  ;;  %v2916_v51 = vld [vmem:[#allocation5 + $0x158] sm:$0xff] }
  0x5c   :  { %v2206_v16 = vpop.eup %2205  ;;  %v873_v28 = vadd.f32 1e-08, %v2900_v27  ;;  %2217 = vrcp.f32 %v871_v10  ;;  %v875_v49 = vadd.f32 1e-08, %v2910_v36 }
  0x5d   :  { %v1876_v22 = vadd.f32 %v1875_v13, %v1620_v3  ;;  %v608_v3 = vsub.f32 %v2864_v32, %v96_v57  ;;  %v1150_v13 = vmul.f32 %v2202_v0, %v607_v59  ;;  %v100_v32 = vld [vmem:[#allocation2 + $0x118] sm:$0xff]  ;;  %v1630_v23 = vand.u32 2147483647, %v1148_v5  ;;  %v2208_v25 = vpop.eup %2207  ;;  %v2921_v0 = vld [vmem:[#allocation5 + $0x160] sm:$0xff] }
  0x5e   :  { %v2210_v33 = vpop.eup %2209  ;;  %v612_v35 = vsub.f32 %v2880_v60, %v100_v32  ;;  %2219 = vrcp.f32 %v872_v19  ;;  %v615_v57 = vsub.f32 %v2892_v17, %v103_v48  ;;  %v107_v32 = vld [vmem:[#allocation2 + $0x150] sm:$0xff]  ;;  %v2945_v48 = vld [vmem:[#allocation5 + $0x198] sm:$0xff] }
  0x5f   :  { %v1877_v30 = vadd.f32 %v1876_v22, %v1621_v11  ;;  %v609_v11 = vsub.f32 %v2868_v39, %v97_v1  ;;  %v1152_v22 = vmul.f32 %v2204_v8, %v608_v3  ;;  %v611_v39 = vsub.f32 %v2876_v53, %v99_v18 }
  0x60   :  { %v2212_v42 = vpop.eup %2211  ;;  %2221 = vrcp.f32 %v873_v28  ;;  %v613_v53 = vsub.f32 %v2884_v4, %v101_v34 }
  0x61   :  { %v1878_v38 = vadd.f32 %v1877_v30, %v1622_v20  ;;  %v610_v20 = vsub.f32 %v2872_v45, %v98_v9  ;;  %v1631_v30 = vand.u32 2147483647, %v1150_v13  ;;  %v102_v45 = vld [vmem:[#allocation2 + $0x128] sm:$0xff]  ;;  %v1632_v40 = vand.u32 2147483647, %v1152_v22 }
  0x62   :  { %v1158_v43 = vmul.f32 %v2210_v33, %v611_v39  ;;  %v614_v60 = vsub.f32 %v2888_v12, %v102_v45  ;;  %v1160_v52 = vmul.f32 %v2212_v42, %v612_v35  ;;  %v876_v12 = vadd.f32 1e-08, %v2916_v51  ;;  %v108_v33 = vld [vmem:[#allocation2 + $0x158] sm:$0xff] }
  0x63   :  { %v1879_v47 = vadd.f32 %v1878_v38, %v1623_v29  ;;  %v1154_v29 = vmul.f32 %v2206_v16, %v609_v11  ;;  %v1156_v38 = vmul.f32 %v2208_v25, %v610_v20  ;;  %v2924_v11 = vld [vmem:[#allocation5 + $0x168] sm:$0xff]  ;;  %v2927_v16 = vld [vmem:[#allocation5 + $0x170] sm:$0xff]  ;;  %v620_v42 = vsub.f32 %v2916_v51, %v108_v33 }
  0x64   :  { %v1635_v58 = vand.u32 2147483647, %v1158_v43  ;;  %v1636_v2 = vand.u32 2147483647, %v1160_v52  ;;  %v879_v25 = vadd.f32 1e-08, %v2927_v16 }
  0x65   :  { %v1880_v55 = vadd.f32 %v1879_v47, %v1624_v37  ;;  %v874_v37 = vadd.f32 1e-08, %v2905_v26  ;;  %v1633_v44 = vand.u32 2147483647, %v1154_v29  ;;  %v2214_v47 = vpop.eup %2213  ;;  %v2934_v29 = vld [vmem:[#allocation5 + $0x180] sm:$0xff] }
  0x66   :  { %v2216_v56 = vpop.eup %2215  ;;  %v1162_v4 = vmul.f32 %v2214_v47, %v613_v53 }
  0x67   :  { %v1881_v63 = vadd.f32 %v1880_v55, %v1625_v46  ;;  %2223 = vrcp.f32 %v874_v37  ;;  %v2218_v61 = vpop.eup %2217  ;;  %v1164_v1 = vmul.f32 %v2216_v56, %v614_v60  ;;  %v2938_v37 = vld [vmem:[#allocation5 + $0x188] sm:$0xff] }
  0x68   :  { %2225 = vrcp.f32 %v875_v49  ;;  %v2220_v5 = vpop.eup %2219  ;;  %v1166_v17 = vmul.f32 %v2218_v61, %v615_v57  ;;  %v1637_v8 = vand.u32 2147483647, %v1162_v4  ;;  %v110_v60 = vld [vmem:[#allocation2 + $0x168] sm:$0xff]  ;;  %v111_v57 = vld [vmem:[#allocation2 + $0x170] sm:$0xff]  ;;  %v884_v4 = vadd.f32 1e-08, %v2945_v48 }
  0x69   :  { %v1882_v7 = vadd.f32 %v1881_v63, %v1626_v54  ;;  %v1634_v54 = vand.u32 2147483647, %v1156_v38  ;;  %v616_v63 = vsub.f32 %v2896_v21, %v104_v50  ;;  %v877_v21 = vadd.f32 1e-08, %v2921_v0  ;;  %v2948_v50 = vld [vmem:[#allocation5 + $0x1a0] sm:$0xff] }
  0x6a   :  { %v2222_v10 = vpop.eup %2221  ;;  %2227 = vrcp.f32 %v876_v12  ;;  %v1639_v22 = vand.u32 2147483647, %v1166_v17  ;;  %v881_v38 = vadd.f32 1e-08, %v2934_v29  ;;  %v2956_v12 = vld [vmem:[#allocation5 + $0x1b0] sm:$0xff]  ;;  %v2960_v17 = vld [vmem:[#allocation5 + $0x1b8] sm:$0xff] }
  0x6b   :  { %v1883_v15 = vadd.f32 %v1882_v7, %v1627_v62  ;;  %v105_v62 = vld [vmem:[#allocation2 + $0x140] sm:$0xff]  ;;  %v1168_v13 = vmul.f32 %v2220_v5, %v616_v63  ;;  %2229 = vrcp.f32 %v877_v21  ;;  %v885_v63 = vadd.f32 1e-08, %v2948_v50 }
  0x6c   :  { %v617_v7 = vsub.f32 %v2900_v27, %v105_v62  ;;  %v878_v27 = vadd.f32 1e-08, %v2924_v11  ;;  %v112_v62 = vld [vmem:[#allocation2 + $0x178] sm:$0xff]  ;;  %v887_v21 = vadd.f32 1e-08, %v2956_v12 }
  0x6d   :  { %v1884_v24 = vadd.f32 %v1883_v15, %v1628_v6  ;;  %v106_v6 = vld [vmem:[#allocation2 + $0x148] sm:$0xff]  ;;  %v1640_v28 = vand.u32 2147483647, %v1168_v13  ;;  %v2964_v13 = vld [vmem:[#allocation5 + $0x1c0] sm:$0xff] }
  0x6e   :  { %v618_v18 = vsub.f32 %v2905_v26, %v106_v6  ;;  %v1170_v20 = vmul.f32 %v2222_v10, %v617_v7  ;;  %2231 = vrcp.f32 %v878_v27  ;;  %v113_v6 = vld [vmem:[#allocation2 + $0x180] sm:$0xff]  ;;  %v888_v27 = vadd.f32 1e-08, %v2960_v17 }
  0x6f   :  { %v1885_v31 = vadd.f32 %v1884_v24, %v1629_v14  ;;  %v1638_v14 = vand.u32 2147483647, %v1164_v1  ;;  %v2931_v24 = vld [vmem:[#allocation5 + $0x178] sm:$0xff]  ;;  %2233 = vrcp.f32 %v879_v25 }
  0x70   :  { %v880_v34 = vadd.f32 1e-08, %v2931_v24  ;;  %v1641_v35 = vand.u32 2147483647, %v1170_v20  ;;  %v2968_v20 = vld [vmem:[#allocation5 + $0x1c8] sm:$0xff] }
  0x71   :  { %v1886_v41 = vadd.f32 %v1885_v31, %v1630_v23  ;;  %v2224_v19 = vpop.eup %2223 }
  0x72   :  { %v1172_v31 = vmul.f32 %v2224_v19, %v618_v18  ;;  %v2226_v26 = vpop.eup %2225  ;;  %2235 = vrcp.f32 %v880_v34 }
  0x73   :  { %v1887_v46 = vadd.f32 %v1886_v41, %v1631_v30  ;;  %v619_v30 = vsub.f32 %v2910_v36, %v107_v32  ;;  %v2941_v41 = vld [vmem:[#allocation5 + $0x190] sm:$0xff]  ;;  %2237 = vrcp.f32 %v881_v38 }
  0x74   :  { %v1642_v36 = vand.u32 2147483647, %v1172_v31  ;;  %v2228_v43 = vpop.eup %2227  ;;  %v883_v49 = vadd.f32 1e-08, %v2941_v41  ;;  %v115_v32 = vld [vmem:[#allocation2 + $0x190] sm:$0xff] }
  0x75   :  { %v1888_v55 = vadd.f32 %v1887_v46, %v1632_v40  ;;  %v1174_v53 = vmul.f32 %v2226_v26, %v619_v30  ;;  %v882_v46 = vadd.f32 1e-08, %v2938_v37  ;;  %v2230_v56 = vpop.eup %2229  ;;  %v627_v30 = vsub.f32 %v2941_v41, %v115_v32  ;;  %v2980_v41 = vld [vmem:[#allocation5 + $0x1e0] sm:$0xff] }
  0x77   :  { %v1889_v59 = vadd.f32 %v1888_v55, %v1633_v44  ;;  %v109_v44 = vld [vmem:[#allocation2 + $0x160] sm:$0xff]  ;;  %v1643_v51 = vand.u32 2147483647, %v1174_v53  ;;  %2239 = vrcp.f32 %v882_v46 }
  0x78   :  { %v621_v52 = vsub.f32 %v2921_v0, %v109_v44  ;;  %v2232_v61 = vpop.eup %2231  ;;  %2241 = vrcp.f32 %v883_v49  ;;  %v623_v0 = vsub.f32 %v2927_v16, %v111_v57 }
  0x79   :  { %v1890_v3 = vadd.f32 %v1889_v59, %v1634_v54  ;;  %v1176_v54 = vmul.f32 %v2228_v43, %v620_v42  ;;  %v622_v59 = vsub.f32 %v2924_v11, %v110_v60  ;;  %v2234_v5 = vpop.eup %2233  ;;  %2243 = vrcp.f32 %v884_v4  ;;  %v114_v11 = vld [vmem:[#allocation2 + $0x188] sm:$0xff] }
  0x7a   :  { %v1178_v1 = vmul.f32 %v2230_v56, %v621_v52  ;;  %2245 = vrcp.f32 %v885_v63  ;;  %v118_v43 = vld [vmem:[#allocation2 + $0x1a8] sm:$0xff] }
  0x7b   :  { %v1891_v9 = vadd.f32 %v1890_v3, %v1635_v58  ;;  %v2952_v58 = vld [vmem:[#allocation5 + $0x1a8] sm:$0xff] }
  0x7c   :  { %v886_v7 = vadd.f32 1e-08, %v2952_v58  ;;  %v2236_v10 = vpop.eup %2235  ;;  %v1645_v16 = vand.u32 2147483647, %v1178_v1 }
  0x7d   :  { %v1892_v15 = vadd.f32 %v1891_v9, %v1636_v2  ;;  %v1644_v2 = vand.u32 2147483647, %v1176_v54  ;;  %v1180_v9 = vmul.f32 %v2232_v61, %v622_v59  ;;  %v2238_v19 = vpop.eup %2237  ;;  %v119_v54 = vld [vmem:[#allocation2 + $0x1b0] sm:$0xff]  ;;  %v120_v61 = vld [vmem:[#allocation2 + $0x1b8] sm:$0xff] }
  0x7e   :  { %2247 = vrcp.f32 %v886_v7  ;;  %v631_v63 = vsub.f32 %v2956_v12, %v119_v54  ;;  %v632_v7 = vsub.f32 %v2960_v17, %v120_v61  ;;  %v2996_v12 = vld [vmem:[#allocation5 + $0x200] sm:$0xff]  ;;  %v3000_v17 = vld [vmem:[#allocation5 + $0x208] sm:$0xff] }
  0x7f   :  { %v1893_v23 = vadd.f32 %v1892_v15, %v1637_v8  ;;  %v624_v8 = vsub.f32 %v2931_v24, %v112_v62  ;;  %v1182_v15 = vmul.f32 %v2234_v5, %v623_v0  ;;  %v1646_v24 = vand.u32 2147483647, %v1180_v9  ;;  %v121_v5 = vld [vmem:[#allocation2 + $0x1c0] sm:$0xff] }
  0x80   :  { %2249 = vrcp.f32 %v887_v21  ;;  %v893_v62 = vadd.f32 1e-08, %v2980_v41  ;;  %v122_v21 = vld [vmem:[#allocation2 + $0x1c8] sm:$0xff] }
  0x81   :  { %v1894_v39 = vadd.f32 %v1893_v23, %v1638_v14  ;;  %v625_v14 = vsub.f32 %v2934_v29, %v113_v6  ;;  %v1184_v23 = vmul.f32 %v2236_v10, %v624_v8  ;;  %v2240_v25 = vpop.eup %2239  ;;  %v2972_v29 = vld [vmem:[#allocation5 + $0x1d0] sm:$0xff]  ;;  %v1647_v26 = vand.u32 2147483647, %v1182_v15 }
  0x82   :  { %v2242_v34 = vpop.eup %2241  ;;  %2251 = vrcp.f32 %v888_v27  ;;  %v891_v44 = vadd.f32 1e-08, %v2972_v29  ;;  %v633_v15 = vsub.f32 %v2964_v13, %v121_v5  ;;  %v123_v27 = vld [vmem:[#allocation2 + $0x1d0] sm:$0xff] }
  0x83   :  { %v1895_v45 = vadd.f32 %v1894_v39, %v1639_v22  ;;  %v626_v22 = vsub.f32 %v2938_v37, %v114_v11  ;;  %v889_v39 = vadd.f32 1e-08, %v2964_v13  ;;  %v1186_v31 = vmul.f32 %v2238_v19, %v625_v14  ;;  %v2976_v37 = vld [vmem:[#allocation5 + $0x1d8] sm:$0xff]  ;;  %v3004_v13 = vld [vmem:[#allocation5 + $0x210] sm:$0xff] }
  0x84   :  { %v1648_v42 = vand.u32 2147483647, %v1184_v23  ;;  %v634_v23 = vsub.f32 %v2968_v20, %v122_v21 }
  0x85   :  { %v1896_v40 = vadd.f32 %v1895_v45, %v1640_v28  ;;  %v116_v28 = vld [vmem:[#allocation2 + $0x198] sm:$0xff]  ;;  %v890_v45 = vadd.f32 1e-08, %v2968_v20  ;;  %2253 = vrcp.f32 %v889_v39  ;;  %v1649_v60 = vand.u32 2147483647, %v1186_v31 }
  0x86   :  { %v628_v38 = vsub.f32 %v2945_v48, %v116_v28  ;;  %v2984_v48 = vld [vmem:[#allocation5 + $0x1e8] sm:$0xff]  ;;  %v897_v31 = vadd.f32 1e-08, %v2996_v12  ;;  %v3008_v20 = vld [vmem:[#allocation5 + $0x218] sm:$0xff] }
  0x87   :  { %v1897_v47 = vadd.f32 %v1896_v40, %v1641_v35  ;;  %v117_v35 = vld [vmem:[#allocation2 + $0x1a0] sm:$0xff]  ;;  %v1188_v40 = vmul.f32 %v2240_v25, %v626_v22  ;;  %2255 = vrcp.f32 %v890_v45  ;;  %v894_v6 = vadd.f32 1e-08, %v2984_v48 }
  0x88   :  { %v629_v46 = vsub.f32 %v2948_v50, %v117_v35  ;;  %2257 = vrcp.f32 %v891_v44  ;;  %v2988_v50 = vld [vmem:[#allocation5 + $0x1f0] sm:$0xff] }
  0x89   :  { %v1898_v55 = vadd.f32 %v1897_v47, %v1642_v36  ;;  %v2244_v36 = vpop.eup %2243  ;;  %v1190_v47 = vmul.f32 %v2242_v34, %v627_v30  ;;  %v1650_v57 = vand.u32 2147483647, %v1188_v40  ;;  %v895_v14 = vadd.f32 1e-08, %v2988_v50  ;;  %v124_v30 = vld [vmem:[#allocation2 + $0x1d8] sm:$0xff] }
  0x8a   :  { %v2246_v52 = vpop.eup %2245  ;;  %v1192_v56 = vmul.f32 %v2244_v36, %v628_v38  ;;  %v125_v38 = vld [vmem:[#allocation2 + $0x1e0] sm:$0xff]  ;;  %v898_v40 = vadd.f32 1e-08, %v3000_v17 }
  0x8b   :  { %v1899_v3 = vadd.f32 %v1898_v55, %v1643_v51  ;;  %v892_v51 = vadd.f32 1e-08, %v2976_v37  ;;  %v630_v55 = vsub.f32 %v2952_v58, %v118_v43  ;;  %v2248_v59 = vpop.eup %2247  ;;  %v1194_v0 = vmul.f32 %v2246_v52, %v629_v46  ;;  %v2992_v58 = vld [vmem:[#allocation5 + $0x1f8] sm:$0xff]  ;;  %v126_v46 = vld [vmem:[#allocation2 + $0x1e8] sm:$0xff] }
  0x8c   :  { %v1651_v1 = vand.u32 2147483647, %v1190_v47  ;;  %v1652_v9 = vand.u32 2147483647, %v1192_v56  ;;  %v896_v22 = vadd.f32 1e-08, %v2992_v58 }
  0x8d   :  { %v1900_v18 = vadd.f32 %v1899_v3, %v1644_v2  ;;  %v2250_v3 = vpop.eup %2249  ;;  %2259 = vrcp.f32 %v892_v51  ;;  %v1196_v8 = vmul.f32 %v2248_v59, %v630_v55  ;;  %v899_v47 = vadd.f32 1e-08, %v3004_v13  ;;  %v127_v55 = vld [vmem:[#allocation2 + $0x1f0] sm:$0xff] }
  0x8e   :  { %v2252_v11 = vpop.eup %2251  ;;  %2261 = vrcp.f32 %v893_v62  ;;  %v900_v56 = vadd.f32 1e-08, %v3008_v20 }
  0x8f   :  { %v1901_v33 = vadd.f32 %v1900_v18, %v1645_v16  ;;  %v1198_v16 = vmul.f32 %v2250_v3, %v631_v63  ;;  %v1653_v18 = vand.u32 2147483647, %v1194_v0  ;;  %v2254_v32 = vpop.eup %2253  ;;  %2263 = vrcp.f32 %v894_v6  ;;  %v128_v63 = vld [vmem:[#allocation2 + $0x1f8] sm:$0xff] }
  0x90   :  { %v1654_v25 = vand.u32 2147483647, %v1196_v8  ;;  %2265 = vrcp.f32 %v895_v14 }
  0x91   :  { %v1902_v53 = vadd.f32 %v1901_v33, %v1646_v24  ;;  %v1200_v24 = vmul.f32 %v2252_v11, %v632_v7  ;;  %v2256_v39 = vpop.eup %2255  ;;  %v1202_v33 = vmul.f32 %v2254_v32, %v633_v15  ;;  %v1655_v34 = vand.u32 2147483647, %v1198_v16  ;;  %v129_v7 = vld [vmem:[#allocation2 + $0x200] sm:$0xff]  ;;  %v130_v15 = vld [vmem:[#allocation2 + $0x208] sm:$0xff] }
  0x92   :  { %v2258_v45 = vpop.eup %2257  ;;  %2267 = vrcp.f32 %v896_v22 }
  0x93   :  { %v1903_v49 = vadd.f32 %v1902_v53, %v1647_v26  ;;  %v635_v26 = vsub.f32 %v2972_v29, %v123_v27  ;;  %v1204_v53 = vmul.f32 %v2256_v39, %v634_v23  ;;  %v1656_v36 = vand.u32 2147483647, %v1200_v24  ;;  %v3012_v29 = vld [vmem:[#allocation5 + $0x220] sm:$0xff]  ;;  %v131_v23 = vld [vmem:[#allocation2 + $0x210] sm:$0xff] }
  0x94   :  { %2269 = vrcp.f32 %v897_v31  ;;  %v1657_v52 = vand.u32 2147483647, %v1202_v33  ;;  %v901_v0 = vadd.f32 1e-08, %v3012_v29 }
  0x95   :  { %v1904_v4 = vadd.f32 %v1903_v49, %v1648_v42  ;;  %v636_v42 = vsub.f32 %v2976_v37, %v124_v30  ;;  %v1206_v49 = vmul.f32 %v2258_v45, %v635_v26  ;;  %2271 = vrcp.f32 %v898_v40  ;;  %v3016_v37 = vld [vmem:[#allocation5 + $0x228] sm:$0xff]  ;;  %v132_v26 = vld [vmem:[#allocation2 + $0x218] sm:$0xff] }
  0x96   :  { %v1658_v59 = vand.u32 2147483647, %v1204_v53  ;;  %2273 = vrcp.f32 %v899_v47  ;;  %v902_v8 = vadd.f32 1e-08, %v3016_v37 }
  0x97   :  { %v1905_v2 = vadd.f32 %v1904_v4, %v1649_v60  ;;  %v2260_v44 = vpop.eup %2259  ;;  %v637_v60 = vsub.f32 %v2980_v41, %v125_v38  ;;  %v3020_v41 = vld [vmem:[#allocation5 + $0x230] sm:$0xff]  ;;  %v1659_v3 = vand.u32 2147483647, %v1206_v49  ;;  %2275 = vrcp.f32 %v900_v56 }
  0x98   :  { %v2262_v51 = vpop.eup %2261  ;;  %v1208_v4 = vmul.f32 %v2260_v44, %v636_v42  ;;  %v903_v16 = vadd.f32 1e-08, %v3020_v41  ;;  %2277 = vrcp.f32 %v901_v0  ;;  %v133_v42 = vld [vmem:[#allocation2 + $0x220] sm:$0xff] }
  0x99   :  { %v1906_v10 = vadd.f32 %v1905_v2, %v1650_v57  ;;  %v638_v57 = vsub.f32 %v2984_v48, %v126_v46  ;;  %v2264_v62 = vpop.eup %2263  ;;  %v1210_v2 = vmul.f32 %v2262_v51, %v637_v60  ;;  %v3024_v48 = vld [vmem:[#allocation5 + $0x238] sm:$0xff]  ;;  %2279 = vrcp.f32 %v902_v8  ;;  %v134_v60 = vld [vmem:[#allocation2 + $0x228] sm:$0xff] }
  0x9a   :  { %v2266_v6 = vpop.eup %2265  ;;  %v1660_v11 = vand.u32 2147483647, %v1208_v4  ;;  %v904_v24 = vadd.f32 1e-08, %v3024_v48  ;;  %2281 = vrcp.f32 %v903_v16 }
  0x9b   :  { %v1907_v19 = vadd.f32 %v1906_v10, %v1651_v1  ;;  %v639_v1 = vsub.f32 %v2988_v50, %v127_v55  ;;  %v1212_v10 = vmul.f32 %v2264_v62, %v638_v57  ;;  %v3028_v50 = vld [vmem:[#allocation5 + $0x240] sm:$0xff]  ;;  %v1661_v32 = vand.u32 2147483647, %v1210_v2  ;;  %v135_v57 = vld [vmem:[#allocation2 + $0x230] sm:$0xff] }
  0x9c   :  { %v2268_v14 = vpop.eup %2267  ;;  %v905_v33 = vadd.f32 1e-08, %v3028_v50  ;;  %2283 = vrcp.f32 %v904_v24 }
  0x9d   :  { %v1908_v28 = vadd.f32 %v1907_v19, %v1652_v9  ;;  %v640_v9 = vsub.f32 %v2992_v58, %v128_v63  ;;  %v1214_v19 = vmul.f32 %v2266_v6, %v639_v1  ;;  %v3032_v58 = vld [vmem:[#allocation5 + $0x248] sm:$0xff]  ;;  %v1662_v39 = vand.u32 2147483647, %v1212_v10  ;;  %v136_v1 = vld [vmem:[#allocation2 + $0x238] sm:$0xff] }
  0x9e   :  { %v2270_v22 = vpop.eup %2269  ;;  %v906_v53 = vadd.f32 1e-08, %v3032_v58  ;;  %2285 = vrcp.f32 %v905_v33 }
  0x9f   :  { %v1909_v35 = vadd.f32 %v1908_v28, %v1653_v18  ;;  %v641_v18 = vsub.f32 %v2996_v12, %v129_v7  ;;  %v1216_v28 = vmul.f32 %v2268_v14, %v640_v9  ;;  %v2272_v31 = vpop.eup %2271  ;;  %v3036_v12 = vld [vmem:[#allocation5 + $0x250] sm:$0xff]  ;;  %v1663_v45 = vand.u32 2147483647, %v1214_v19  ;;  %v137_v9 = vld [vmem:[#allocation2 + $0x240] sm:$0xff] }
  0xa0   :  { %v2274_v40 = vpop.eup %2273  ;;  %v907_v49 = vadd.f32 1e-08, %v3036_v12  ;;  %2287 = vrcp.f32 %v906_v53 }
  0xa1   :  { %v1910_v43 = vadd.f32 %v1909_v35, %v1654_v25  ;;  %v642_v25 = vsub.f32 %v3000_v17, %v130_v15  ;;  %v1218_v35 = vmul.f32 %v2270_v22, %v641_v18  ;;  %v3040_v17 = vld [vmem:[#allocation5 + $0x258] sm:$0xff]  ;;  %v1664_v44 = vand.u32 2147483647, %v1216_v28  ;;  %v2276_v47 = vpop.eup %2275  ;;  %v138_v18 = vld [vmem:[#allocation2 + $0x248] sm:$0xff] }
  0xa2   :  { %v2278_v56 = vpop.eup %2277  ;;  %v908_v4 = vadd.f32 1e-08, %v3040_v17  ;;  %2289 = vrcp.f32 %v907_v49 }
  0xa3   :  { %v1911_v54 = vadd.f32 %v1910_v43, %v1655_v34  ;;  %v643_v34 = vsub.f32 %v3004_v13, %v131_v23  ;;  %v1220_v43 = vmul.f32 %v2272_v31, %v642_v25  ;;  %v3044_v13 = vld [vmem:[#allocation5 + $0x260] sm:$0xff]  ;;  %v1665_v51 = vand.u32 2147483647, %v1218_v35  ;;  %v2280_v0 = vpop.eup %2279  ;;  %v139_v25 = vld [vmem:[#allocation2 + $0x250] sm:$0xff] }
  0xa4   :  { %v909_v2 = vadd.f32 1e-08, %v3044_v13  ;;  %v2282_v8 = vpop.eup %2281  ;;  %2291 = vrcp.f32 %v908_v4 }
  0xa5   :  { %v1912_v61 = vadd.f32 %v1911_v54, %v1656_v36  ;;  %v644_v36 = vsub.f32 %v3008_v20, %v132_v26  ;;  %v1222_v54 = vmul.f32 %v2274_v40, %v643_v34  ;;  %v3048_v20 = vld [vmem:[#allocation5 + $0x268] sm:$0xff]  ;;  %v1666_v62 = vand.u32 2147483647, %v1220_v43  ;;  %v140_v34 = vld [vmem:[#allocation2 + $0x258] sm:$0xff] }
  0xa6   :  { %v910_v10 = vadd.f32 1e-08, %v3048_v20  ;;  %v2284_v16 = vpop.eup %2283  ;;  %2293 = vrcp.f32 %v909_v2 }
  0xa7   :  { %v1913_v5 = vadd.f32 %v1912_v61, %v1657_v52  ;;  %v645_v52 = vsub.f32 %v3012_v29, %v133_v42  ;;  %v1224_v61 = vmul.f32 %v2276_v47, %v644_v36  ;;  %v3052_v29 = vld [vmem:[#allocation5 + $0x270] sm:$0xff]  ;;  %v1667_v6 = vand.u32 2147483647, %v1222_v54  ;;  %v141_v36 = vld [vmem:[#allocation2 + $0x260] sm:$0xff] }
  0xa8   :  { %v911_v19 = vadd.f32 1e-08, %v3052_v29  ;;  %v2286_v24 = vpop.eup %2285  ;;  %2295 = vrcp.f32 %v910_v10 }
  0xa9   :  { %v1914_v21 = vadd.f32 %v1913_v5, %v1658_v59  ;;  %v646_v59 = vsub.f32 %v3016_v37, %v134_v60  ;;  %v1226_v5 = vmul.f32 %v2278_v56, %v645_v52  ;;  %v3056_v37 = vld [vmem:[#allocation5 + $0x278] sm:$0xff]  ;;  %v1668_v14 = vand.u32 2147483647, %v1224_v61  ;;  %v142_v52 = vld [vmem:[#allocation2 + $0x268] sm:$0xff] }
  0xaa   :  { %v912_v28 = vadd.f32 1e-08, %v3056_v37  ;;  %v2288_v33 = vpop.eup %2287  ;;  %2297 = vrcp.f32 %v911_v19 }
  0xab   :  { %v1915_v27 = vadd.f32 %v1914_v21, %v1659_v3  ;;  %v647_v3 = vsub.f32 %v3020_v41, %v135_v57  ;;  %v1228_v21 = vmul.f32 %v2280_v0, %v646_v59  ;;  %v3060_v41 = vld [vmem:[#allocation5 + $0x280] sm:$0xff]  ;;  %v1669_v22 = vand.u32 2147483647, %v1226_v5  ;;  %v143_v59 = vld [vmem:[#allocation2 + $0x270] sm:$0xff] }
  0xac   :  { %v913_v35 = vadd.f32 1e-08, %v3060_v41  ;;  %v2290_v53 = vpop.eup %2289  ;;  %2299 = vrcp.f32 %v912_v28 }
  0xad   :  { %v1916_v30 = vadd.f32 %v1915_v27, %v1660_v11  ;;  %v648_v11 = vsub.f32 %v3024_v48, %v136_v1  ;;  %v1230_v27 = vmul.f32 %v2282_v8, %v647_v3  ;;  %v3064_v48 = vld [vmem:[#allocation5 + $0x288] sm:$0xff]  ;;  %v1670_v31 = vand.u32 2147483647, %v1228_v21  ;;  %v144_v3 = vld [vmem:[#allocation2 + $0x278] sm:$0xff] }
  0xae   :  { %v914_v43 = vadd.f32 1e-08, %v3064_v48  ;;  %v2292_v49 = vpop.eup %2291  ;;  %2301 = vrcp.f32 %v913_v35 }
  0xaf   :  { %v1917_v38 = vadd.f32 %v1916_v30, %v1661_v32  ;;  %v649_v32 = vsub.f32 %v3028_v50, %v137_v9  ;;  %v1232_v30 = vmul.f32 %v2284_v16, %v648_v11  ;;  %v3068_v50 = vld [vmem:[#allocation5 + $0x290] sm:$0xff]  ;;  %v1671_v40 = vand.u32 2147483647, %v1230_v27  ;;  %v145_v11 = vld [vmem:[#allocation2 + $0x280] sm:$0xff] }
  0xb0   :  { %v915_v54 = vadd.f32 1e-08, %v3068_v50  ;;  %v2294_v4 = vpop.eup %2293  ;;  %2303 = vrcp.f32 %v914_v43 }
  0xb1   :  { %v1918_v46 = vadd.f32 %v1917_v38, %v1662_v39  ;;  %v650_v39 = vsub.f32 %v3032_v58, %v138_v18  ;;  %v1234_v38 = vmul.f32 %v2286_v24, %v649_v32  ;;  %v3072_v58 = vld [vmem:[#allocation5 + $0x298] sm:$0xff]  ;;  %v1672_v47 = vand.u32 2147483647, %v1232_v30  ;;  %v146_v32 = vld [vmem:[#allocation2 + $0x288] sm:$0xff] }
  0xb2   :  { %v916_v61 = vadd.f32 1e-08, %v3072_v58  ;;  %v2296_v2 = vpop.eup %2295  ;;  %2305 = vrcp.f32 %v915_v54 }
  0xb3   :  { %v1919_v55 = vadd.f32 %v1918_v46, %v1663_v45  ;;  %v651_v45 = vsub.f32 %v3036_v12, %v139_v25  ;;  %v1236_v46 = vmul.f32 %v2288_v33, %v650_v39  ;;  %v3076_v12 = vld [vmem:[#allocation5 + $0x2a0] sm:$0xff]  ;;  %v1673_v56 = vand.u32 2147483647, %v1234_v38  ;;  %v147_v39 = vld [vmem:[#allocation2 + $0x290] sm:$0xff] }
  0xb4   :  { %v917_v5 = vadd.f32 1e-08, %v3076_v12  ;;  %v2298_v10 = vpop.eup %2297  ;;  %2307 = vrcp.f32 %v916_v61 }
  0xb5   :  { %v1920_v63 = vadd.f32 %v1919_v55, %v1664_v44  ;;  %v652_v44 = vsub.f32 %v3040_v17, %v140_v34  ;;  %v1238_v55 = vmul.f32 %v2290_v53, %v651_v45  ;;  %v3080_v17 = vld [vmem:[#allocation5 + $0x2a8] sm:$0xff]  ;;  %v1674_v0 = vand.u32 2147483647, %v1236_v46  ;;  %v148_v45 = vld [vmem:[#allocation2 + $0x298] sm:$0xff] }
  0xb6   :  { %v918_v21 = vadd.f32 1e-08, %v3080_v17  ;;  %v2300_v19 = vpop.eup %2299  ;;  %2309 = vrcp.f32 %v917_v5 }
  0xb7   :  { %v1921_v7 = vadd.f32 %v1920_v63, %v1665_v51  ;;  %v653_v51 = vsub.f32 %v3044_v13, %v141_v36  ;;  %v1240_v63 = vmul.f32 %v2292_v49, %v652_v44  ;;  %v3084_v13 = vld [vmem:[#allocation5 + $0x2b0] sm:$0xff]  ;;  %v1675_v8 = vand.u32 2147483647, %v1238_v55  ;;  %v149_v44 = vld [vmem:[#allocation2 + $0x2a0] sm:$0xff] }
  0xb8   :  { %v919_v27 = vadd.f32 1e-08, %v3084_v13  ;;  %v2302_v28 = vpop.eup %2301  ;;  %2311 = vrcp.f32 %v918_v21 }
  0xb9   :  { %v1922_v15 = vadd.f32 %v1921_v7, %v1666_v62  ;;  %v654_v62 = vsub.f32 %v3048_v20, %v142_v52  ;;  %v1242_v7 = vmul.f32 %v2294_v4, %v653_v51  ;;  %v3088_v20 = vld [vmem:[#allocation5 + $0x2b8] sm:$0xff]  ;;  %v1676_v16 = vand.u32 2147483647, %v1240_v63  ;;  %v150_v51 = vld [vmem:[#allocation2 + $0x2a8] sm:$0xff] }
  0xba   :  { %v920_v30 = vadd.f32 1e-08, %v3088_v20  ;;  %v2304_v35 = vpop.eup %2303  ;;  %2313 = vrcp.f32 %v919_v27 }
  0xbb   :  { %v1923_v23 = vadd.f32 %v1922_v15, %v1667_v6  ;;  %v655_v6 = vsub.f32 %v3052_v29, %v143_v59  ;;  %v1244_v15 = vmul.f32 %v2296_v2, %v654_v62  ;;  %v3092_v29 = vld [vmem:[#allocation5 + $0x2c0] sm:$0xff]  ;;  %v1677_v24 = vand.u32 2147483647, %v1242_v7  ;;  %v151_v62 = vld [vmem:[#allocation2 + $0x2b0] sm:$0xff] }
  0xbc   :  { %v921_v38 = vadd.f32 1e-08, %v3092_v29  ;;  %v2306_v43 = vpop.eup %2305  ;;  %2315 = vrcp.f32 %v920_v30 }
  0xbd   :  { %v1924_v26 = vadd.f32 %v1923_v23, %v1668_v14  ;;  %v656_v14 = vsub.f32 %v3056_v37, %v144_v3  ;;  %v1246_v23 = vmul.f32 %v2298_v10, %v655_v6  ;;  %v3096_v37 = vld [vmem:[#allocation5 + $0x2c8] sm:$0xff]  ;;  %v1678_v33 = vand.u32 2147483647, %v1244_v15  ;;  %v152_v6 = vld [vmem:[#allocation2 + $0x2b8] sm:$0xff] }
  0xbe   :  { %v922_v46 = vadd.f32 1e-08, %v3096_v37  ;;  %v2308_v54 = vpop.eup %2307  ;;  %2317 = vrcp.f32 %v921_v38 }
  0xbf   :  { %v1925_v42 = vadd.f32 %v1924_v26, %v1669_v22  ;;  %v657_v22 = vsub.f32 %v3060_v41, %v145_v11  ;;  %v1248_v26 = vmul.f32 %v2300_v19, %v656_v14  ;;  %v3100_v41 = vld [vmem:[#allocation5 + $0x2d0] sm:$0xff]  ;;  %v1679_v53 = vand.u32 2147483647, %v1246_v23  ;;  %v153_v14 = vld [vmem:[#allocation2 + $0x2c0] sm:$0xff] }
  0xc0   :  { %v923_v55 = vadd.f32 1e-08, %v3100_v41  ;;  %v2310_v61 = vpop.eup %2309  ;;  %2319 = vrcp.f32 %v922_v46 }
  0xc1   :  { %v1926_v60 = vadd.f32 %v1925_v42, %v1670_v31  ;;  %v658_v31 = vsub.f32 %v3064_v48, %v146_v32  ;;  %v1250_v42 = vmul.f32 %v2302_v28, %v657_v22  ;;  %v3104_v48 = vld [vmem:[#allocation5 + $0x2d8] sm:$0xff]  ;;  %v1680_v49 = vand.u32 2147483647, %v1248_v26  ;;  %v154_v22 = vld [vmem:[#allocation2 + $0x2c8] sm:$0xff] }
  0xc2   :  { %v924_v63 = vadd.f32 1e-08, %v3104_v48  ;;  %v2312_v5 = vpop.eup %2311  ;;  %2321 = vrcp.f32 %v923_v55 }
  0xc3   :  { %v1927_v57 = vadd.f32 %v1926_v60, %v1671_v40  ;;  %v659_v40 = vsub.f32 %v3068_v50, %v147_v39  ;;  %v1252_v60 = vmul.f32 %v2304_v35, %v658_v31  ;;  %v3108_v50 = vld [vmem:[#allocation5 + $0x2e0] sm:$0xff]  ;;  %v1681_v4 = vand.u32 2147483647, %v1250_v42  ;;  %v155_v31 = vld [vmem:[#allocation2 + $0x2d0] sm:$0xff] }
  0xc4   :  { %v925_v7 = vadd.f32 1e-08, %v3108_v50  ;;  %v2314_v21 = vpop.eup %2313  ;;  %2323 = vrcp.f32 %v924_v63 }
  0xc5   :  { %v1928_v1 = vadd.f32 %v1927_v57, %v1672_v47  ;;  %v660_v47 = vsub.f32 %v3072_v58, %v148_v45  ;;  %v1254_v57 = vmul.f32 %v2306_v43, %v659_v40  ;;  %v3112_v58 = vld [vmem:[#allocation5 + $0x2e8] sm:$0xff]  ;;  %v1682_v2 = vand.u32 2147483647, %v1252_v60  ;;  %v156_v40 = vld [vmem:[#allocation2 + $0x2d8] sm:$0xff] }
  0xc6   :  { %v926_v15 = vadd.f32 1e-08, %v3112_v58  ;;  %v2316_v27 = vpop.eup %2315  ;;  %2325 = vrcp.f32 %v925_v7 }
  0xc7   :  { %v1929_v9 = vadd.f32 %v1928_v1, %v1673_v56  ;;  %v661_v56 = vsub.f32 %v3076_v12, %v149_v44  ;;  %v1256_v1 = vmul.f32 %v2308_v54, %v660_v47  ;;  %v3116_v12 = vld [vmem:[#allocation5 + $0x2f0] sm:$0xff]  ;;  %v1683_v10 = vand.u32 2147483647, %v1254_v57  ;;  %v157_v47 = vld [vmem:[#allocation2 + $0x2e0] sm:$0xff] }
  0xc8   :  { %v927_v23 = vadd.f32 1e-08, %v3116_v12  ;;  %v2318_v30 = vpop.eup %2317  ;;  %2327 = vrcp.f32 %v926_v15 }
  0xc9   :  { %v1930_v18 = vadd.f32 %v1929_v9, %v1674_v0  ;;  %v662_v0 = vsub.f32 %v3080_v17, %v150_v51  ;;  %v1258_v9 = vmul.f32 %v2310_v61, %v661_v56  ;;  %v3120_v17 = vld [vmem:[#allocation5 + $0x2f8] sm:$0xff]  ;;  %v1684_v19 = vand.u32 2147483647, %v1256_v1  ;;  %v158_v56 = vld [vmem:[#allocation2 + $0x2e8] sm:$0xff] }
  0xca   :  { %v928_v26 = vadd.f32 1e-08, %v3120_v17  ;;  %v2320_v38 = vpop.eup %2319  ;;  %2329 = vrcp.f32 %v927_v23 }
  0xcb   :  { %v1931_v25 = vadd.f32 %v1930_v18, %v1675_v8  ;;  %v663_v8 = vsub.f32 %v3084_v13, %v151_v62  ;;  %v1260_v18 = vmul.f32 %v2312_v5, %v662_v0  ;;  %v3124_v13 = vld [vmem:[#allocation5 + $0x300] sm:$0xff]  ;;  %v1685_v28 = vand.u32 2147483647, %v1258_v9  ;;  %v159_v0 = vld [vmem:[#allocation2 + $0x2f0] sm:$0xff] }
  0xcc   :  { %v929_v42 = vadd.f32 1e-08, %v3124_v13  ;;  %v2322_v46 = vpop.eup %2321  ;;  %2331 = vrcp.f32 %v928_v26 }
  0xcd   :  { %v1932_v34 = vadd.f32 %v1931_v25, %v1676_v16  ;;  %v664_v16 = vsub.f32 %v3088_v20, %v152_v6  ;;  %v1262_v25 = vmul.f32 %v2314_v21, %v663_v8  ;;  %v3128_v20 = vld [vmem:[#allocation5 + $0x308] sm:$0xff]  ;;  %v1686_v35 = vand.u32 2147483647, %v1260_v18  ;;  %v160_v8 = vld [vmem:[#allocation2 + $0x2f8] sm:$0xff] }
  0xce   :  { %v930_v60 = vadd.f32 1e-08, %v3128_v20  ;;  %v2324_v55 = vpop.eup %2323  ;;  %2333 = vrcp.f32 %v929_v42 }
  0xcf   :  { %v1933_v36 = vadd.f32 %v1932_v34, %v1677_v24  ;;  %v665_v24 = vsub.f32 %v3092_v29, %v153_v14  ;;  %v1264_v34 = vmul.f32 %v2316_v27, %v664_v16  ;;  %v3132_v29 = vld [vmem:[#allocation5 + $0x310] sm:$0xff]  ;;  %v1687_v43 = vand.u32 2147483647, %v1262_v25  ;;  %v161_v16 = vld [vmem:[#allocation2 + $0x300] sm:$0xff] }
  0xd0   :  { %v931_v57 = vadd.f32 1e-08, %v3132_v29  ;;  %v2326_v63 = vpop.eup %2325  ;;  %2335 = vrcp.f32 %v930_v60 }
  0xd1   :  { %v1934_v52 = vadd.f32 %v1933_v36, %v1678_v33  ;;  %v666_v33 = vsub.f32 %v3096_v37, %v154_v22  ;;  %v1266_v36 = vmul.f32 %v2318_v30, %v665_v24  ;;  %v3136_v37 = vld [vmem:[#allocation5 + $0x318] sm:$0xff]  ;;  %v1688_v54 = vand.u32 2147483647, %v1264_v34  ;;  %v162_v24 = vld [vmem:[#allocation2 + $0x308] sm:$0xff] }
  0xd2   :  { %v932_v1 = vadd.f32 1e-08, %v3136_v37  ;;  %v2328_v7 = vpop.eup %2327  ;;  %2337 = vrcp.f32 %v931_v57 }
  0xd3   :  { %v1935_v59 = vadd.f32 %v1934_v52, %v1679_v53  ;;  %v667_v53 = vsub.f32 %v3100_v41, %v155_v31  ;;  %v1268_v52 = vmul.f32 %v2320_v38, %v666_v33  ;;  %v3140_v41 = vld [vmem:[#allocation5 + $0x320] sm:$0xff]  ;;  %v1689_v61 = vand.u32 2147483647, %v1266_v36  ;;  %v163_v33 = vld [vmem:[#allocation2 + $0x310] sm:$0xff] }
  0xd4   :  { %v933_v9 = vadd.f32 1e-08, %v3140_v41  ;;  %v2330_v15 = vpop.eup %2329  ;;  %2339 = vrcp.f32 %v932_v1 }
  0xd5   :  { %v1936_v3 = vadd.f32 %v1935_v59, %v1680_v49  ;;  %v668_v49 = vsub.f32 %v3104_v48, %v156_v40  ;;  %v1270_v59 = vmul.f32 %v2322_v46, %v667_v53  ;;  %v3144_v48 = vld [vmem:[#allocation5 + $0x328] sm:$0xff]  ;;  %v1690_v5 = vand.u32 2147483647, %v1268_v52  ;;  %v164_v53 = vld [vmem:[#allocation2 + $0x318] sm:$0xff] }
  0xd6   :  { %v934_v18 = vadd.f32 1e-08, %v3144_v48  ;;  %v2332_v23 = vpop.eup %2331  ;;  %2341 = vrcp.f32 %v933_v9 }
  0xd7   :  { %v1937_v11 = vadd.f32 %v1936_v3, %v1681_v4  ;;  %v669_v4 = vsub.f32 %v3108_v50, %v157_v47  ;;  %v1272_v3 = vmul.f32 %v2324_v55, %v668_v49  ;;  %v3148_v50 = vld [vmem:[#allocation5 + $0x330] sm:$0xff]  ;;  %v1691_v21 = vand.u32 2147483647, %v1270_v59  ;;  %v165_v49 = vld [vmem:[#allocation2 + $0x320] sm:$0xff] }
  0xd8   :  { %v935_v25 = vadd.f32 1e-08, %v3148_v50  ;;  %v2334_v26 = vpop.eup %2333  ;;  %2343 = vrcp.f32 %v934_v18 }
  0xd9   :  { %v1938_v32 = vadd.f32 %v1937_v11, %v1682_v2  ;;  %v670_v2 = vsub.f32 %v3112_v58, %v158_v56  ;;  %v1274_v11 = vmul.f32 %v2326_v63, %v669_v4  ;;  %v3152_v58 = vld [vmem:[#allocation5 + $0x338] sm:$0xff]  ;;  %v1692_v27 = vand.u32 2147483647, %v1272_v3  ;;  %v166_v4 = vld [vmem:[#allocation2 + $0x328] sm:$0xff] }
  0xda   :  { %v936_v34 = vadd.f32 1e-08, %v3152_v58  ;;  %v2336_v42 = vpop.eup %2335  ;;  %2345 = vrcp.f32 %v935_v25 }
  0xdb   :  { %v1939_v39 = vadd.f32 %v1938_v32, %v1683_v10  ;;  %v671_v10 = vsub.f32 %v3116_v12, %v159_v0  ;;  %v1276_v32 = vmul.f32 %v2328_v7, %v670_v2  ;;  %v3156_v12 = vld [vmem:[#allocation5 + $0x340] sm:$0xff]  ;;  %v1693_v30 = vand.u32 2147483647, %v1274_v11  ;;  %v167_v2 = vld [vmem:[#allocation2 + $0x330] sm:$0xff] }
  0xdc   :  { %v937_v36 = vadd.f32 1e-08, %v3156_v12  ;;  %v2338_v60 = vpop.eup %2337  ;;  %2347 = vrcp.f32 %v936_v34 }
  0xdd   :  { %v1940_v45 = vadd.f32 %v1939_v39, %v1684_v19  ;;  %v672_v19 = vsub.f32 %v3120_v17, %v160_v8  ;;  %v1278_v39 = vmul.f32 %v2330_v15, %v671_v10  ;;  %v3160_v17 = vld [vmem:[#allocation5 + $0x348] sm:$0xff]  ;;  %v1694_v38 = vand.u32 2147483647, %v1276_v32  ;;  %v168_v10 = vld [vmem:[#allocation2 + $0x338] sm:$0xff] }
  0xde   :  { %v938_v52 = vadd.f32 1e-08, %v3160_v17  ;;  %v2340_v57 = vpop.eup %2339  ;;  %2349 = vrcp.f32 %v937_v36 }
  0xdf   :  { %v1941_v44 = vadd.f32 %v1940_v45, %v1685_v28  ;;  %v673_v28 = vsub.f32 %v3124_v13, %v161_v16  ;;  %v1280_v45 = vmul.f32 %v2332_v23, %v672_v19  ;;  %v3164_v13 = vld [vmem:[#allocation5 + $0x350] sm:$0xff]  ;;  %v1695_v46 = vand.u32 2147483647, %v1278_v39  ;;  %v169_v19 = vld [vmem:[#allocation2 + $0x340] sm:$0xff] }
  0xe0   :  { %v939_v59 = vadd.f32 1e-08, %v3164_v13  ;;  %v2342_v1 = vpop.eup %2341  ;;  %2351 = vrcp.f32 %v938_v52 }
  0xe1   :  { %v1942_v51 = vadd.f32 %v1941_v44, %v1686_v35  ;;  %v674_v35 = vsub.f32 %v3128_v20, %v162_v24  ;;  %v1282_v44 = vmul.f32 %v2334_v26, %v673_v28  ;;  %v3168_v20 = vld [vmem:[#allocation5 + $0x358] sm:$0xff]  ;;  %v1696_v55 = vand.u32 2147483647, %v1280_v45  ;;  %v170_v28 = vld [vmem:[#allocation2 + $0x348] sm:$0xff] }
  0xe2   :  { %v940_v3 = vadd.f32 1e-08, %v3168_v20  ;;  %v2344_v9 = vpop.eup %2343  ;;  %2353 = vrcp.f32 %v939_v59 }
  0xe3   :  { %v1943_v62 = vadd.f32 %v1942_v51, %v1687_v43  ;;  %v675_v43 = vsub.f32 %v3132_v29, %v163_v33  ;;  %v1284_v51 = vmul.f32 %v2336_v42, %v674_v35  ;;  %v3172_v29 = vld [vmem:[#allocation5 + $0x360] sm:$0xff]  ;;  %v1697_v63 = vand.u32 2147483647, %v1282_v44  ;;  %v171_v35 = vld [vmem:[#allocation2 + $0x350] sm:$0xff] }
  0xe4   :  { %v941_v11 = vadd.f32 1e-08, %v3172_v29  ;;  %v2346_v18 = vpop.eup %2345  ;;  %2355 = vrcp.f32 %v940_v3 }
  0xe5   :  { %v1944_v6 = vadd.f32 %v1943_v62, %v1688_v54  ;;  %v676_v54 = vsub.f32 %v3136_v37, %v164_v53  ;;  %v1286_v62 = vmul.f32 %v2338_v60, %v675_v43  ;;  %v3176_v37 = vld [vmem:[#allocation5 + $0x368] sm:$0xff]  ;;  %v1698_v7 = vand.u32 2147483647, %v1284_v51  ;;  %v172_v43 = vld [vmem:[#allocation2 + $0x358] sm:$0xff] }
  0xe6   :  { %v942_v32 = vadd.f32 1e-08, %v3176_v37  ;;  %v2348_v25 = vpop.eup %2347  ;;  %2357 = vrcp.f32 %v941_v11 }
  0xe7   :  { %v1945_v14 = vadd.f32 %v1944_v6, %v1689_v61  ;;  %v677_v61 = vsub.f32 %v3140_v41, %v165_v49  ;;  %v1288_v6 = vmul.f32 %v2340_v57, %v676_v54  ;;  %v3180_v41 = vld [vmem:[#allocation5 + $0x370] sm:$0xff]  ;;  %v1699_v15 = vand.u32 2147483647, %v1286_v62  ;;  %v173_v54 = vld [vmem:[#allocation2 + $0x360] sm:$0xff] }
  0xe8   :  { %v943_v39 = vadd.f32 1e-08, %v3180_v41  ;;  %v2350_v34 = vpop.eup %2349  ;;  %2359 = vrcp.f32 %v942_v32 }
  0xe9   :  { %v1946_v22 = vadd.f32 %v1945_v14, %v1690_v5  ;;  %v678_v5 = vsub.f32 %v3144_v48, %v166_v4  ;;  %v1290_v14 = vmul.f32 %v2342_v1, %v677_v61  ;;  %v3184_v48 = vld [vmem:[#allocation5 + $0x378] sm:$0xff]  ;;  %v1700_v23 = vand.u32 2147483647, %v1288_v6  ;;  %v174_v61 = vld [vmem:[#allocation2 + $0x368] sm:$0xff] }
  0xea   :  { %v944_v45 = vadd.f32 1e-08, %v3184_v48  ;;  %v2352_v36 = vpop.eup %2351  ;;  %2361 = vrcp.f32 %v943_v39 }
  0xeb   :  { %v1947_v31 = vadd.f32 %v1946_v22, %v1691_v21  ;;  %v679_v21 = vsub.f32 %v3148_v50, %v167_v2  ;;  %v1292_v22 = vmul.f32 %v2344_v9, %v678_v5  ;;  %v3188_v50 = vld [vmem:[#allocation5 + $0x380] sm:$0xff]  ;;  %v1701_v26 = vand.u32 2147483647, %v1290_v14  ;;  %v175_v5 = vld [vmem:[#allocation2 + $0x370] sm:$0xff] }
  0xec   :  { %v945_v44 = vadd.f32 1e-08, %v3188_v50  ;;  %v2354_v52 = vpop.eup %2353  ;;  %2363 = vrcp.f32 %v944_v45 }
  0xed   :  { %v1948_v40 = vadd.f32 %v1947_v31, %v1692_v27  ;;  %v680_v27 = vsub.f32 %v3152_v58, %v168_v10  ;;  %v1294_v31 = vmul.f32 %v2346_v18, %v679_v21  ;;  %v3192_v58 = vld [vmem:[#allocation5 + $0x388] sm:$0xff]  ;;  %v1702_v42 = vand.u32 2147483647, %v1292_v22  ;;  %v176_v21 = vld [vmem:[#allocation2 + $0x378] sm:$0xff] }
  0xee   :  { %v946_v51 = vadd.f32 1e-08, %v3192_v58  ;;  %v2356_v59 = vpop.eup %2355  ;;  %2365 = vrcp.f32 %v945_v44 }
  0xef   :  { %v1949_v47 = vadd.f32 %v1948_v40, %v1693_v30  ;;  %v681_v30 = vsub.f32 %v3156_v12, %v169_v19  ;;  %v1296_v40 = vmul.f32 %v2348_v25, %v680_v27  ;;  %v3196_v12 = vld [vmem:[#allocation5 + $0x390] sm:$0xff]  ;;  %v1703_v60 = vand.u32 2147483647, %v1294_v31  ;;  %v177_v27 = vld [vmem:[#allocation2 + $0x380] sm:$0xff] }
  0xf0   :  { %v947_v62 = vadd.f32 1e-08, %v3196_v12  ;;  %v2358_v3 = vpop.eup %2357  ;;  %2367 = vrcp.f32 %v946_v51 }
  0xf1   :  { %v1950_v56 = vadd.f32 %v1949_v47, %v1694_v38  ;;  %v682_v38 = vsub.f32 %v3160_v17, %v170_v28  ;;  %v1298_v47 = vmul.f32 %v2350_v34, %v681_v30  ;;  %v3200_v17 = vld [vmem:[#allocation5 + $0x398] sm:$0xff]  ;;  %v1704_v57 = vand.u32 2147483647, %v1296_v40  ;;  %v178_v30 = vld [vmem:[#allocation2 + $0x388] sm:$0xff] }
  0xf2   :  { %v948_v6 = vadd.f32 1e-08, %v3200_v17  ;;  %v2360_v11 = vpop.eup %2359  ;;  %2369 = vrcp.f32 %v947_v62 }
  0xf3   :  { %v1951_v0 = vadd.f32 %v1950_v56, %v1695_v46  ;;  %v683_v46 = vsub.f32 %v3164_v13, %v171_v35  ;;  %v1300_v56 = vmul.f32 %v2352_v36, %v682_v38  ;;  %v3204_v13 = vld [vmem:[#allocation5 + $0x3a0] sm:$0xff]  ;;  %v1705_v1 = vand.u32 2147483647, %v1298_v47  ;;  %v179_v38 = vld [vmem:[#allocation2 + $0x390] sm:$0xff] }
  0xf4   :  { %v949_v14 = vadd.f32 1e-08, %v3204_v13  ;;  %v2362_v32 = vpop.eup %2361  ;;  %2371 = vrcp.f32 %v948_v6 }
  0xf5   :  { %v1952_v8 = vadd.f32 %v1951_v0, %v1696_v55  ;;  %v684_v55 = vsub.f32 %v3168_v20, %v172_v43  ;;  %v1302_v0 = vmul.f32 %v2354_v52, %v683_v46  ;;  %v3208_v20 = vld [vmem:[#allocation5 + $0x3a8] sm:$0xff]  ;;  %v1706_v9 = vand.u32 2147483647, %v1300_v56  ;;  %v180_v46 = vld [vmem:[#allocation2 + $0x398] sm:$0xff] }
  0xf6   :  { %v950_v22 = vadd.f32 1e-08, %v3208_v20  ;;  %v2364_v39 = vpop.eup %2363  ;;  %2373 = vrcp.f32 %v949_v14 }
  0xf7   :  { %v1953_v16 = vadd.f32 %v1952_v8, %v1697_v63  ;;  %v685_v63 = vsub.f32 %v3172_v29, %v173_v54  ;;  %v1304_v8 = vmul.f32 %v2356_v59, %v684_v55  ;;  %v3212_v29 = vld [vmem:[#allocation5 + $0x3b0] sm:$0xff]  ;;  %v1707_v18 = vand.u32 2147483647, %v1302_v0  ;;  %v181_v55 = vld [vmem:[#allocation2 + $0x3a0] sm:$0xff] }
  0xf8   :  { %v951_v31 = vadd.f32 1e-08, %v3212_v29  ;;  %v2366_v45 = vpop.eup %2365  ;;  %2375 = vrcp.f32 %v950_v22 }
  0xf9   :  { %v1954_v24 = vadd.f32 %v1953_v16, %v1698_v7  ;;  %v686_v7 = vsub.f32 %v3176_v37, %v174_v61  ;;  %v1306_v16 = vmul.f32 %v2358_v3, %v685_v63  ;;  %v3216_v37 = vld [vmem:[#allocation5 + $0x3b8] sm:$0xff]  ;;  %v1708_v25 = vand.u32 2147483647, %v1304_v8  ;;  %v182_v63 = vld [vmem:[#allocation2 + $0x3a8] sm:$0xff] }
  0xfa   :  { %v952_v40 = vadd.f32 1e-08, %v3216_v37  ;;  %v2368_v44 = vpop.eup %2367  ;;  %2377 = vrcp.f32 %v951_v31 }
  0xfb   :  { %v1955_v33 = vadd.f32 %v1954_v24, %v1699_v15  ;;  %v687_v15 = vsub.f32 %v3180_v41, %v175_v5  ;;  %v1308_v24 = vmul.f32 %v2360_v11, %v686_v7  ;;  %v3220_v41 = vld [vmem:[#allocation5 + $0x3c0] sm:$0xff]  ;;  %v1709_v34 = vand.u32 2147483647, %v1306_v16  ;;  %v183_v7 = vld [vmem:[#allocation2 + $0x3b0] sm:$0xff] }
  0xfc   :  { %v953_v47 = vadd.f32 1e-08, %v3220_v41  ;;  %v2370_v51 = vpop.eup %2369  ;;  %2379 = vrcp.f32 %v952_v40 }
  0xfd   :  { %v1956_v53 = vadd.f32 %v1955_v33, %v1700_v23  ;;  %v688_v23 = vsub.f32 %v3184_v48, %v176_v21  ;;  %v1310_v33 = vmul.f32 %v2362_v32, %v687_v15  ;;  %v3224_v48 = vld [vmem:[#allocation5 + $0x3c8] sm:$0xff]  ;;  %v1710_v36 = vand.u32 2147483647, %v1308_v24  ;;  %v184_v15 = vld [vmem:[#allocation2 + $0x3b8] sm:$0xff] }
  0xfe   :  { %v954_v56 = vadd.f32 1e-08, %v3224_v48  ;;  %v2372_v62 = vpop.eup %2371  ;;  %2381 = vrcp.f32 %v953_v47 }
  0xff   :  { %v1957_v49 = vadd.f32 %v1956_v53, %v1701_v26  ;;  %v689_v26 = vsub.f32 %v3188_v50, %v177_v27  ;;  %v1312_v53 = vmul.f32 %v2364_v39, %v688_v23  ;;  %v3228_v50 = vld [vmem:[#allocation5 + $0x3d0] sm:$0xff]  ;;  %v1711_v52 = vand.u32 2147483647, %v1310_v33  ;;  %v185_v23 = vld [vmem:[#allocation2 + $0x3c0] sm:$0xff] }
 0x100   :  { %v955_v0 = vadd.f32 1e-08, %v3228_v50  ;;  %v2374_v6 = vpop.eup %2373  ;;  %2383 = vrcp.f32 %v954_v56 }
 0x101   :  { %v1958_v4 = vadd.f32 %v1957_v49, %v1702_v42  ;;  %v690_v42 = vsub.f32 %v3192_v58, %v178_v30  ;;  %v1314_v49 = vmul.f32 %v2366_v45, %v689_v26  ;;  %v3232_v58 = vld [vmem:[#allocation5 + $0x3d8] sm:$0xff]  ;;  %v1712_v59 = vand.u32 2147483647, %v1312_v53  ;;  %v186_v26 = vld [vmem:[#allocation2 + $0x3c8] sm:$0xff] }
 0x102   :  { %v956_v8 = vadd.f32 1e-08, %v3232_v58  ;;  %v2376_v14 = vpop.eup %2375  ;;  %2385 = vrcp.f32 %v955_v0 }
 0x103   :  { %v1959_v2 = vadd.f32 %v1958_v4, %v1703_v60  ;;  %v691_v60 = vsub.f32 %v3196_v12, %v179_v38  ;;  %v1316_v4 = vmul.f32 %v2368_v44, %v690_v42  ;;  %v3236_v12 = vld [vmem:[#allocation5 + $0x3e0] sm:$0xff]  ;;  %v1713_v3 = vand.u32 2147483647, %v1314_v49  ;;  %v187_v42 = vld [vmem:[#allocation2 + $0x3d0] sm:$0xff] }
 0x104   :  { %v957_v16 = vadd.f32 1e-08, %v3236_v12  ;;  %v2378_v22 = vpop.eup %2377  ;;  %2387 = vrcp.f32 %v956_v8 }
 0x105   :  { %v1960_v10 = vadd.f32 %v1959_v2, %v1704_v57  ;;  %v692_v57 = vsub.f32 %v3200_v17, %v180_v46  ;;  %v1318_v2 = vmul.f32 %v2370_v51, %v691_v60  ;;  %v3240_v17 = vld [vmem:[#allocation5 + $0x3e8] sm:$0xff]  ;;  %v1714_v11 = vand.u32 2147483647, %v1316_v4  ;;  %v188_v60 = vld [vmem:[#allocation2 + $0x3d8] sm:$0xff] }
 0x106   :  { %v958_v24 = vadd.f32 1e-08, %v3240_v17  ;;  %v2380_v31 = vpop.eup %2379  ;;  %2389 = vrcp.f32 %v957_v16 }
 0x107   :  { %v1961_v19 = vadd.f32 %v1960_v10, %v1705_v1  ;;  %v693_v1 = vsub.f32 %v3204_v13, %v181_v55  ;;  %v1320_v10 = vmul.f32 %v2372_v62, %v692_v57  ;;  %v3244_v13 = vld [vmem:[#allocation5 + $0x3f0] sm:$0xff]  ;;  %v1715_v32 = vand.u32 2147483647, %v1318_v2  ;;  %v189_v57 = vld [vmem:[#allocation2 + $0x3e0] sm:$0xff] }
 0x108   :  { %v959_v33 = vadd.f32 1e-08, %v3244_v13  ;;  %v2382_v40 = vpop.eup %2381  ;;  %2391 = vrcp.f32 %v958_v24 }
 0x109   :  { %v1962_v28 = vadd.f32 %v1961_v19, %v1706_v9  ;;  %v694_v9 = vsub.f32 %v3208_v20, %v182_v63  ;;  %v1322_v19 = vmul.f32 %v2374_v6, %v693_v1  ;;  %v3248_v20 = vld [vmem:[#allocation5 + $0x3f8] sm:$0xff]  ;;  %v1716_v39 = vand.u32 2147483647, %v1320_v10  ;;  %v190_v1 = vld [vmem:[#allocation2 + $0x3e8] sm:$0xff] }
 0x10a   :  { %v960_v53 = vadd.f32 1e-08, %v3248_v20  ;;  %v2384_v47 = vpop.eup %2383  ;;  %2393 = vrcp.f32 %v959_v33 }
 0x10b   :  { %v1963_v35 = vadd.f32 %v1962_v28, %v1707_v18  ;;  %v695_v18 = vsub.f32 %v3212_v29, %v183_v7  ;;  %v1324_v28 = vmul.f32 %v2376_v14, %v694_v9  ;;  %v3252_v29 = vld [vmem:[#allocation5 + $0x400] sm:$0xff]  ;;  %v1717_v45 = vand.u32 2147483647, %v1322_v19  ;;  %v191_v9 = vld [vmem:[#allocation2 + $0x3f0] sm:$0xff] }
 0x10c   :  { %v961_v49 = vadd.f32 1e-08, %v3252_v29  ;;  %v2386_v56 = vpop.eup %2385  ;;  %2395 = vrcp.f32 %v960_v53 }
 0x10d   :  { %v1964_v43 = vadd.f32 %v1963_v35, %v1708_v25  ;;  %v696_v25 = vsub.f32 %v3216_v37, %v184_v15  ;;  %v1326_v35 = vmul.f32 %v2378_v22, %v695_v18  ;;  %v3256_v37 = vld [vmem:[#allocation5 + $0x408] sm:$0xff]  ;;  %v1718_v44 = vand.u32 2147483647, %v1324_v28  ;;  %v192_v18 = vld [vmem:[#allocation2 + $0x3f8] sm:$0xff] }
 0x10e   :  { %v962_v4 = vadd.f32 1e-08, %v3256_v37  ;;  %v2388_v0 = vpop.eup %2387  ;;  %2397 = vrcp.f32 %v961_v49 }
 0x10f   :  { %v1965_v54 = vadd.f32 %v1964_v43, %v1709_v34  ;;  %v697_v34 = vsub.f32 %v3220_v41, %v185_v23  ;;  %v1328_v43 = vmul.f32 %v2380_v31, %v696_v25  ;;  %v3260_v41 = vld [vmem:[#allocation5 + $0x410] sm:$0xff]  ;;  %v1719_v51 = vand.u32 2147483647, %v1326_v35  ;;  %v193_v25 = vld [vmem:[#allocation2 + $0x400] sm:$0xff] }
 0x110   :  { %v963_v2 = vadd.f32 1e-08, %v3260_v41  ;;  %v2390_v8 = vpop.eup %2389  ;;  %2399 = vrcp.f32 %v962_v4 }
 0x111   :  { %v1966_v61 = vadd.f32 %v1965_v54, %v1710_v36  ;;  %v698_v36 = vsub.f32 %v3224_v48, %v186_v26  ;;  %v1330_v54 = vmul.f32 %v2382_v40, %v697_v34  ;;  %v3264_v48 = vld [vmem:[#allocation5 + $0x418] sm:$0xff]  ;;  %v1720_v62 = vand.u32 2147483647, %v1328_v43  ;;  %v194_v34 = vld [vmem:[#allocation2 + $0x408] sm:$0xff] }
 0x112   :  { %v964_v10 = vadd.f32 1e-08, %v3264_v48  ;;  %v2392_v16 = vpop.eup %2391  ;;  %2401 = vrcp.f32 %v963_v2 }
 0x113   :  { %v1967_v5 = vadd.f32 %v1966_v61, %v1711_v52  ;;  %v699_v52 = vsub.f32 %v3228_v50, %v187_v42  ;;  %v1332_v61 = vmul.f32 %v2384_v47, %v698_v36  ;;  %v3268_v50 = vld [vmem:[#allocation5 + $0x420] sm:$0xff]  ;;  %v1721_v6 = vand.u32 2147483647, %v1330_v54  ;;  %v195_v36 = vld [vmem:[#allocation2 + $0x410] sm:$0xff] }
 0x114   :  { %v965_v19 = vadd.f32 1e-08, %v3268_v50  ;;  %v2394_v24 = vpop.eup %2393  ;;  %2403 = vrcp.f32 %v964_v10 }
 0x115   :  { %v1968_v21 = vadd.f32 %v1967_v5, %v1712_v59  ;;  %v700_v59 = vsub.f32 %v3232_v58, %v188_v60  ;;  %v1334_v5 = vmul.f32 %v2386_v56, %v699_v52  ;;  %v3272_v58 = vld [vmem:[#allocation5 + $0x428] sm:$0xff]  ;;  %v1722_v14 = vand.u32 2147483647, %v1332_v61  ;;  %v196_v52 = vld [vmem:[#allocation2 + $0x418] sm:$0xff] }
 0x116   :  { %v966_v28 = vadd.f32 1e-08, %v3272_v58  ;;  %v2396_v33 = vpop.eup %2395  ;;  %2405 = vrcp.f32 %v965_v19 }
 0x117   :  { %v1969_v27 = vadd.f32 %v1968_v21, %v1713_v3  ;;  %v701_v3 = vsub.f32 %v3236_v12, %v189_v57  ;;  %v1336_v21 = vmul.f32 %v2388_v0, %v700_v59  ;;  %v3276_v12 = vld [vmem:[#allocation5 + $0x430] sm:$0xff]  ;;  %v1723_v22 = vand.u32 2147483647, %v1334_v5  ;;  %v197_v59 = vld [vmem:[#allocation2 + $0x420] sm:$0xff] }
 0x118   :  { %v967_v35 = vadd.f32 1e-08, %v3276_v12  ;;  %v2398_v53 = vpop.eup %2397  ;;  %2407 = vrcp.f32 %v966_v28 }
 0x119   :  { %v1970_v30 = vadd.f32 %v1969_v27, %v1714_v11  ;;  %v702_v11 = vsub.f32 %v3240_v17, %v190_v1  ;;  %v1338_v27 = vmul.f32 %v2390_v8, %v701_v3  ;;  %v3280_v17 = vld [vmem:[#allocation5 + $0x438] sm:$0xff]  ;;  %v1724_v31 = vand.u32 2147483647, %v1336_v21  ;;  %v198_v3 = vld [vmem:[#allocation2 + $0x428] sm:$0xff] }
 0x11a   :  { %v968_v43 = vadd.f32 1e-08, %v3280_v17  ;;  %v2400_v49 = vpop.eup %2399  ;;  %2409 = vrcp.f32 %v967_v35 }
 0x11b   :  { %v1971_v38 = vadd.f32 %v1970_v30, %v1715_v32  ;;  %v703_v32 = vsub.f32 %v3244_v13, %v191_v9  ;;  %v1340_v30 = vmul.f32 %v2392_v16, %v702_v11  ;;  %v3284_v13 = vld [vmem:[#allocation5 + $0x440] sm:$0xff]  ;;  %v1725_v40 = vand.u32 2147483647, %v1338_v27  ;;  %v199_v11 = vld [vmem:[#allocation2 + $0x430] sm:$0xff] }
 0x11c   :  { %v969_v54 = vadd.f32 1e-08, %v3284_v13  ;;  %v2402_v4 = vpop.eup %2401  ;;  %2411 = vrcp.f32 %v968_v43 }
 0x11d   :  { %v1972_v46 = vadd.f32 %v1971_v38, %v1716_v39  ;;  %v704_v39 = vsub.f32 %v3248_v20, %v192_v18  ;;  %v1342_v38 = vmul.f32 %v2394_v24, %v703_v32  ;;  %v3288_v20 = vld [vmem:[#allocation5 + $0x448] sm:$0xff]  ;;  %v1726_v47 = vand.u32 2147483647, %v1340_v30  ;;  %v200_v32 = vld [vmem:[#allocation2 + $0x438] sm:$0xff] }
 0x11e   :  { %v970_v61 = vadd.f32 1e-08, %v3288_v20  ;;  %v2404_v2 = vpop.eup %2403  ;;  %2413 = vrcp.f32 %v969_v54 }
 0x11f   :  { %v1973_v55 = vadd.f32 %v1972_v46, %v1717_v45  ;;  %v705_v45 = vsub.f32 %v3252_v29, %v193_v25  ;;  %v1344_v46 = vmul.f32 %v2396_v33, %v704_v39  ;;  %v3292_v29 = vld [vmem:[#allocation5 + $0x450] sm:$0xff]  ;;  %v1727_v56 = vand.u32 2147483647, %v1342_v38  ;;  %v201_v39 = vld [vmem:[#allocation2 + $0x440] sm:$0xff] }
 0x120   :  { %v971_v5 = vadd.f32 1e-08, %v3292_v29  ;;  %v2406_v10 = vpop.eup %2405  ;;  %2415 = vrcp.f32 %v970_v61 }
 0x121   :  { %v1974_v63 = vadd.f32 %v1973_v55, %v1718_v44  ;;  %v706_v44 = vsub.f32 %v3256_v37, %v194_v34  ;;  %v1346_v55 = vmul.f32 %v2398_v53, %v705_v45  ;;  %v3296_v37 = vld [vmem:[#allocation5 + $0x458] sm:$0xff]  ;;  %v1728_v0 = vand.u32 2147483647, %v1344_v46  ;;  %v202_v45 = vld [vmem:[#allocation2 + $0x448] sm:$0xff] }
 0x122   :  { %v972_v21 = vadd.f32 1e-08, %v3296_v37  ;;  %v2408_v19 = vpop.eup %2407  ;;  %2417 = vrcp.f32 %v971_v5 }
 0x123   :  { %v1975_v7 = vadd.f32 %v1974_v63, %v1719_v51  ;;  %v707_v51 = vsub.f32 %v3260_v41, %v195_v36  ;;  %v1348_v63 = vmul.f32 %v2400_v49, %v706_v44  ;;  %v3300_v41 = vld [vmem:[#allocation5 + $0x460] sm:$0xff]  ;;  %v1729_v8 = vand.u32 2147483647, %v1346_v55  ;;  %v203_v44 = vld [vmem:[#allocation2 + $0x450] sm:$0xff] }
 0x124   :  { %v973_v27 = vadd.f32 1e-08, %v3300_v41  ;;  %v2410_v28 = vpop.eup %2409  ;;  %2419 = vrcp.f32 %v972_v21 }
 0x125   :  { %v1976_v15 = vadd.f32 %v1975_v7, %v1720_v62  ;;  %v708_v62 = vsub.f32 %v3264_v48, %v196_v52  ;;  %v1350_v7 = vmul.f32 %v2402_v4, %v707_v51  ;;  %v3304_v48 = vld [vmem:[#allocation5 + $0x468] sm:$0xff]  ;;  %v1730_v16 = vand.u32 2147483647, %v1348_v63  ;;  %v204_v51 = vld [vmem:[#allocation2 + $0x458] sm:$0xff] }
 0x126   :  { %v974_v30 = vadd.f32 1e-08, %v3304_v48  ;;  %v2412_v35 = vpop.eup %2411  ;;  %2421 = vrcp.f32 %v973_v27 }
 0x127   :  { %v1977_v23 = vadd.f32 %v1976_v15, %v1721_v6  ;;  %v709_v6 = vsub.f32 %v3268_v50, %v197_v59  ;;  %v1352_v15 = vmul.f32 %v2404_v2, %v708_v62  ;;  %v3308_v50 = vld [vmem:[#allocation5 + $0x470] sm:$0xff]  ;;  %v1731_v24 = vand.u32 2147483647, %v1350_v7  ;;  %v205_v62 = vld [vmem:[#allocation2 + $0x460] sm:$0xff] }
 0x128   :  { %v975_v38 = vadd.f32 1e-08, %v3308_v50  ;;  %v2414_v43 = vpop.eup %2413  ;;  %2423 = vrcp.f32 %v974_v30 }
 0x129   :  { %v1978_v26 = vadd.f32 %v1977_v23, %v1722_v14  ;;  %v710_v14 = vsub.f32 %v3272_v58, %v198_v3  ;;  %v1354_v23 = vmul.f32 %v2406_v10, %v709_v6  ;;  %v3312_v58 = vld [vmem:[#allocation5 + $0x478] sm:$0xff]  ;;  %v1732_v33 = vand.u32 2147483647, %v1352_v15  ;;  %v206_v6 = vld [vmem:[#allocation2 + $0x468] sm:$0xff] }
 0x12a   :  { %v976_v46 = vadd.f32 1e-08, %v3312_v58  ;;  %v2416_v54 = vpop.eup %2415  ;;  %2425 = vrcp.f32 %v975_v38 }
 0x12b   :  { %v1979_v42 = vadd.f32 %v1978_v26, %v1723_v22  ;;  %v711_v22 = vsub.f32 %v3276_v12, %v199_v11  ;;  %v1356_v26 = vmul.f32 %v2408_v19, %v710_v14  ;;  %v3316_v12 = vld [vmem:[#allocation5 + $0x480] sm:$0xff]  ;;  %v1733_v53 = vand.u32 2147483647, %v1354_v23  ;;  %v207_v14 = vld [vmem:[#allocation2 + $0x470] sm:$0xff] }
 0x12c   :  { %v977_v55 = vadd.f32 1e-08, %v3316_v12  ;;  %v2418_v61 = vpop.eup %2417  ;;  %2427 = vrcp.f32 %v976_v46 }
 0x12d   :  { %v1980_v60 = vadd.f32 %v1979_v42, %v1724_v31  ;;  %v712_v31 = vsub.f32 %v3280_v17, %v200_v32  ;;  %v1358_v42 = vmul.f32 %v2410_v28, %v711_v22  ;;  %v3320_v17 = vld [vmem:[#allocation5 + $0x488] sm:$0xff]  ;;  %v1734_v49 = vand.u32 2147483647, %v1356_v26  ;;  %v208_v22 = vld [vmem:[#allocation2 + $0x478] sm:$0xff] }
 0x12e   :  { %v978_v63 = vadd.f32 1e-08, %v3320_v17  ;;  %v2420_v5 = vpop.eup %2419  ;;  %2429 = vrcp.f32 %v977_v55 }
 0x12f   :  { %v1981_v57 = vadd.f32 %v1980_v60, %v1725_v40  ;;  %v713_v40 = vsub.f32 %v3284_v13, %v201_v39  ;;  %v1360_v60 = vmul.f32 %v2412_v35, %v712_v31  ;;  %v3324_v13 = vld [vmem:[#allocation5 + $0x490] sm:$0xff]  ;;  %v1735_v4 = vand.u32 2147483647, %v1358_v42  ;;  %v209_v31 = vld [vmem:[#allocation2 + $0x480] sm:$0xff] }
 0x130   :  { %v979_v7 = vadd.f32 1e-08, %v3324_v13  ;;  %v2422_v21 = vpop.eup %2421  ;;  %2431 = vrcp.f32 %v978_v63 }
 0x131   :  { %v1982_v1 = vadd.f32 %v1981_v57, %v1726_v47  ;;  %v714_v47 = vsub.f32 %v3288_v20, %v202_v45  ;;  %v1362_v57 = vmul.f32 %v2414_v43, %v713_v40  ;;  %v3328_v20 = vld [vmem:[#allocation5 + $0x498] sm:$0xff]  ;;  %v1736_v2 = vand.u32 2147483647, %v1360_v60  ;;  %v210_v40 = vld [vmem:[#allocation2 + $0x488] sm:$0xff] }
 0x132   :  { %v980_v15 = vadd.f32 1e-08, %v3328_v20  ;;  %v2424_v27 = vpop.eup %2423  ;;  %2433 = vrcp.f32 %v979_v7 }
 0x133   :  { %v1983_v9 = vadd.f32 %v1982_v1, %v1727_v56  ;;  %v715_v56 = vsub.f32 %v3292_v29, %v203_v44  ;;  %v1364_v1 = vmul.f32 %v2416_v54, %v714_v47  ;;  %v3332_v29 = vld [vmem:[#allocation5 + $0x4a0] sm:$0xff]  ;;  %v1737_v10 = vand.u32 2147483647, %v1362_v57  ;;  %v211_v47 = vld [vmem:[#allocation2 + $0x490] sm:$0xff] }
 0x134   :  { %v981_v23 = vadd.f32 1e-08, %v3332_v29  ;;  %v2426_v30 = vpop.eup %2425  ;;  %2435 = vrcp.f32 %v980_v15 }
 0x135   :  { %v1984_v18 = vadd.f32 %v1983_v9, %v1728_v0  ;;  %v716_v0 = vsub.f32 %v3296_v37, %v204_v51  ;;  %v1366_v9 = vmul.f32 %v2418_v61, %v715_v56  ;;  %v3336_v37 = vld [vmem:[#allocation5 + $0x4a8] sm:$0xff]  ;;  %v1738_v19 = vand.u32 2147483647, %v1364_v1  ;;  %v212_v56 = vld [vmem:[#allocation2 + $0x498] sm:$0xff] }
 0x136   :  { %v982_v26 = vadd.f32 1e-08, %v3336_v37  ;;  %v2428_v38 = vpop.eup %2427  ;;  %2437 = vrcp.f32 %v981_v23 }
 0x137   :  { %v1985_v25 = vadd.f32 %v1984_v18, %v1729_v8  ;;  %v717_v8 = vsub.f32 %v3300_v41, %v205_v62  ;;  %v1368_v18 = vmul.f32 %v2420_v5, %v716_v0  ;;  %v3340_v41 = vld [vmem:[#allocation5 + $0x4b0] sm:$0xff]  ;;  %v1739_v28 = vand.u32 2147483647, %v1366_v9  ;;  %v213_v0 = vld [vmem:[#allocation2 + $0x4a0] sm:$0xff] }
 0x138   :  { %v983_v42 = vadd.f32 1e-08, %v3340_v41  ;;  %v2430_v46 = vpop.eup %2429  ;;  %2439 = vrcp.f32 %v982_v26 }
 0x139   :  { %v1986_v34 = vadd.f32 %v1985_v25, %v1730_v16  ;;  %v718_v16 = vsub.f32 %v3304_v48, %v206_v6  ;;  %v1370_v25 = vmul.f32 %v2422_v21, %v717_v8  ;;  %v3344_v48 = vld [vmem:[#allocation5 + $0x4b8] sm:$0xff]  ;;  %v1740_v35 = vand.u32 2147483647, %v1368_v18  ;;  %v214_v8 = vld [vmem:[#allocation2 + $0x4a8] sm:$0xff] }
 0x13a   :  { %v984_v60 = vadd.f32 1e-08, %v3344_v48  ;;  %v2432_v55 = vpop.eup %2431  ;;  %2441 = vrcp.f32 %v983_v42 }
 0x13b   :  { %v1987_v36 = vadd.f32 %v1986_v34, %v1731_v24  ;;  %v719_v24 = vsub.f32 %v3308_v50, %v207_v14  ;;  %v1372_v34 = vmul.f32 %v2424_v27, %v718_v16  ;;  %v3348_v50 = vld [vmem:[#allocation5 + $0x4c0] sm:$0xff]  ;;  %v1741_v43 = vand.u32 2147483647, %v1370_v25  ;;  %v215_v16 = vld [vmem:[#allocation2 + $0x4b0] sm:$0xff] }
 0x13c   :  { %v985_v57 = vadd.f32 1e-08, %v3348_v50  ;;  %v2434_v63 = vpop.eup %2433  ;;  %2443 = vrcp.f32 %v984_v60 }
 0x13d   :  { %v1988_v52 = vadd.f32 %v1987_v36, %v1732_v33  ;;  %v720_v33 = vsub.f32 %v3312_v58, %v208_v22  ;;  %v1374_v36 = vmul.f32 %v2426_v30, %v719_v24  ;;  %v3352_v58 = vld [vmem:[#allocation5 + $0x4c8] sm:$0xff]  ;;  %v1742_v54 = vand.u32 2147483647, %v1372_v34  ;;  %v216_v24 = vld [vmem:[#allocation2 + $0x4b8] sm:$0xff] }
 0x13e   :  { %v986_v1 = vadd.f32 1e-08, %v3352_v58  ;;  %v2436_v7 = vpop.eup %2435  ;;  %2445 = vrcp.f32 %v985_v57 }
 0x13f   :  { %v1989_v59 = vadd.f32 %v1988_v52, %v1733_v53  ;;  %v721_v53 = vsub.f32 %v3316_v12, %v209_v31  ;;  %v1376_v52 = vmul.f32 %v2428_v38, %v720_v33  ;;  %v3356_v12 = vld [vmem:[#allocation5 + $0x4d0] sm:$0xff]  ;;  %v1743_v61 = vand.u32 2147483647, %v1374_v36  ;;  %v217_v33 = vld [vmem:[#allocation2 + $0x4c0] sm:$0xff] }
 0x140   :  { %v987_v9 = vadd.f32 1e-08, %v3356_v12  ;;  %v2438_v15 = vpop.eup %2437  ;;  %2447 = vrcp.f32 %v986_v1 }
 0x141   :  { %v1990_v3 = vadd.f32 %v1989_v59, %v1734_v49  ;;  %v722_v49 = vsub.f32 %v3320_v17, %v210_v40  ;;  %v1378_v59 = vmul.f32 %v2430_v46, %v721_v53  ;;  %v3360_v17 = vld [vmem:[#allocation5 + $0x4d8] sm:$0xff]  ;;  %v1744_v5 = vand.u32 2147483647, %v1376_v52  ;;  %v218_v53 = vld [vmem:[#allocation2 + $0x4c8] sm:$0xff] }
 0x142   :  { %v988_v18 = vadd.f32 1e-08, %v3360_v17  ;;  %v2440_v23 = vpop.eup %2439  ;;  %2449 = vrcp.f32 %v987_v9 }
 0x143   :  { %v1991_v11 = vadd.f32 %v1990_v3, %v1735_v4  ;;  %v723_v4 = vsub.f32 %v3324_v13, %v211_v47  ;;  %v1380_v3 = vmul.f32 %v2432_v55, %v722_v49  ;;  %v3364_v13 = vld [vmem:[#allocation5 + $0x4e0] sm:$0xff]  ;;  %v1745_v21 = vand.u32 2147483647, %v1378_v59  ;;  %v219_v49 = vld [vmem:[#allocation2 + $0x4d0] sm:$0xff] }
 0x144   :  { %v989_v25 = vadd.f32 1e-08, %v3364_v13  ;;  %v2442_v26 = vpop.eup %2441  ;;  %2451 = vrcp.f32 %v988_v18 }
 0x145   :  { %v1992_v32 = vadd.f32 %v1991_v11, %v1736_v2  ;;  %v724_v2 = vsub.f32 %v3328_v20, %v212_v56  ;;  %v1382_v11 = vmul.f32 %v2434_v63, %v723_v4  ;;  %v3368_v20 = vld [vmem:[#allocation5 + $0x4e8] sm:$0xff]  ;;  %v1746_v27 = vand.u32 2147483647, %v1380_v3  ;;  %v220_v4 = vld [vmem:[#allocation2 + $0x4d8] sm:$0xff] }
 0x146   :  { %v990_v34 = vadd.f32 1e-08, %v3368_v20  ;;  %v2444_v42 = vpop.eup %2443  ;;  %2453 = vrcp.f32 %v989_v25 }
 0x147   :  { %v1993_v39 = vadd.f32 %v1992_v32, %v1737_v10  ;;  %v725_v10 = vsub.f32 %v3332_v29, %v213_v0  ;;  %v1384_v32 = vmul.f32 %v2436_v7, %v724_v2  ;;  %v3372_v29 = vld [vmem:[#allocation5 + $0x4f0] sm:$0xff]  ;;  %v1747_v30 = vand.u32 2147483647, %v1382_v11  ;;  %v221_v2 = vld [vmem:[#allocation2 + $0x4e0] sm:$0xff] }
 0x148   :  { %v991_v36 = vadd.f32 1e-08, %v3372_v29  ;;  %v2446_v60 = vpop.eup %2445  ;;  %2455 = vrcp.f32 %v990_v34 }
 0x149   :  { %v1994_v45 = vadd.f32 %v1993_v39, %v1738_v19  ;;  %v726_v19 = vsub.f32 %v3336_v37, %v214_v8  ;;  %v1386_v39 = vmul.f32 %v2438_v15, %v725_v10  ;;  %v3376_v37 = vld [vmem:[#allocation5 + $0x4f8] sm:$0xff]  ;;  %v1748_v38 = vand.u32 2147483647, %v1384_v32  ;;  %v222_v10 = vld [vmem:[#allocation2 + $0x4e8] sm:$0xff] }
 0x14a   :  { %v992_v52 = vadd.f32 1e-08, %v3376_v37  ;;  %v2448_v57 = vpop.eup %2447  ;;  %2457 = vrcp.f32 %v991_v36 }
 0x14b   :  { %v1995_v44 = vadd.f32 %v1994_v45, %v1739_v28  ;;  %v727_v28 = vsub.f32 %v3340_v41, %v215_v16  ;;  %v1388_v45 = vmul.f32 %v2440_v23, %v726_v19  ;;  %v3380_v41 = vld [vmem:[#allocation5 + $0x500] sm:$0xff]  ;;  %v1749_v46 = vand.u32 2147483647, %v1386_v39  ;;  %v223_v19 = vld [vmem:[#allocation2 + $0x4f0] sm:$0xff] }
 0x14c   :  { %v993_v59 = vadd.f32 1e-08, %v3380_v41  ;;  %v2450_v1 = vpop.eup %2449  ;;  %2459 = vrcp.f32 %v992_v52 }
 0x14d   :  { %v1996_v51 = vadd.f32 %v1995_v44, %v1740_v35  ;;  %v728_v35 = vsub.f32 %v3344_v48, %v216_v24  ;;  %v1390_v44 = vmul.f32 %v2442_v26, %v727_v28  ;;  %v3384_v48 = vld [vmem:[#allocation5 + $0x508] sm:$0xff]  ;;  %v1750_v55 = vand.u32 2147483647, %v1388_v45  ;;  %v224_v28 = vld [vmem:[#allocation2 + $0x4f8] sm:$0xff] }
 0x14e   :  { %v994_v3 = vadd.f32 1e-08, %v3384_v48  ;;  %v2452_v9 = vpop.eup %2451  ;;  %2461 = vrcp.f32 %v993_v59 }
 0x14f   :  { %v1997_v62 = vadd.f32 %v1996_v51, %v1741_v43  ;;  %v729_v43 = vsub.f32 %v3348_v50, %v217_v33  ;;  %v1392_v51 = vmul.f32 %v2444_v42, %v728_v35  ;;  %v3388_v50 = vld [vmem:[#allocation5 + $0x510] sm:$0xff]  ;;  %v1751_v63 = vand.u32 2147483647, %v1390_v44  ;;  %v225_v35 = vld [vmem:[#allocation2 + $0x500] sm:$0xff] }
 0x150   :  { %v995_v11 = vadd.f32 1e-08, %v3388_v50  ;;  %v2454_v18 = vpop.eup %2453  ;;  %2463 = vrcp.f32 %v994_v3 }
 0x151   :  { %v1998_v6 = vadd.f32 %v1997_v62, %v1742_v54  ;;  %v730_v54 = vsub.f32 %v3352_v58, %v218_v53  ;;  %v1394_v62 = vmul.f32 %v2446_v60, %v729_v43  ;;  %v3392_v58 = vld [vmem:[#allocation5 + $0x518] sm:$0xff]  ;;  %v1752_v7 = vand.u32 2147483647, %v1392_v51  ;;  %v226_v43 = vld [vmem:[#allocation2 + $0x508] sm:$0xff] }
 0x152   :  { %v996_v32 = vadd.f32 1e-08, %v3392_v58  ;;  %v2456_v25 = vpop.eup %2455  ;;  %2465 = vrcp.f32 %v995_v11 }
 0x153   :  { %v1999_v14 = vadd.f32 %v1998_v6, %v1743_v61  ;;  %v731_v61 = vsub.f32 %v3356_v12, %v219_v49  ;;  %v1396_v6 = vmul.f32 %v2448_v57, %v730_v54  ;;  %v3396_v12 = vld [vmem:[#allocation5 + $0x520] sm:$0xff]  ;;  %v1753_v15 = vand.u32 2147483647, %v1394_v62  ;;  %v227_v54 = vld [vmem:[#allocation2 + $0x510] sm:$0xff] }
 0x154   :  { %v997_v39 = vadd.f32 1e-08, %v3396_v12  ;;  %v2458_v34 = vpop.eup %2457  ;;  %2467 = vrcp.f32 %v996_v32 }
 0x155   :  { %v2000_v22 = vadd.f32 %v1999_v14, %v1744_v5  ;;  %v732_v5 = vsub.f32 %v3360_v17, %v220_v4  ;;  %v1398_v14 = vmul.f32 %v2450_v1, %v731_v61  ;;  %v3400_v17 = vld [vmem:[#allocation5 + $0x528] sm:$0xff]  ;;  %v1754_v23 = vand.u32 2147483647, %v1396_v6  ;;  %v228_v61 = vld [vmem:[#allocation2 + $0x518] sm:$0xff] }
 0x156   :  { %v998_v45 = vadd.f32 1e-08, %v3400_v17  ;;  %v2460_v36 = vpop.eup %2459  ;;  %2469 = vrcp.f32 %v997_v39 }
 0x157   :  { %v2001_v31 = vadd.f32 %v2000_v22, %v1745_v21  ;;  %v733_v21 = vsub.f32 %v3364_v13, %v221_v2  ;;  %v1400_v22 = vmul.f32 %v2452_v9, %v732_v5  ;;  %v3404_v13 = vld [vmem:[#allocation5 + $0x530] sm:$0xff]  ;;  %v1755_v26 = vand.u32 2147483647, %v1398_v14  ;;  %v229_v5 = vld [vmem:[#allocation2 + $0x520] sm:$0xff] }
 0x158   :  { %v999_v44 = vadd.f32 1e-08, %v3404_v13  ;;  %v2462_v52 = vpop.eup %2461  ;;  %2471 = vrcp.f32 %v998_v45 }
 0x159   :  { %v2002_v40 = vadd.f32 %v2001_v31, %v1746_v27  ;;  %v734_v27 = vsub.f32 %v3368_v20, %v222_v10  ;;  %v1402_v31 = vmul.f32 %v2454_v18, %v733_v21  ;;  %v3408_v20 = vld [vmem:[#allocation5 + $0x538] sm:$0xff]  ;;  %v1756_v42 = vand.u32 2147483647, %v1400_v22  ;;  %v230_v21 = vld [vmem:[#allocation2 + $0x528] sm:$0xff] }
 0x15a   :  { %v1000_v51 = vadd.f32 1e-08, %v3408_v20  ;;  %v2464_v59 = vpop.eup %2463  ;;  %2473 = vrcp.f32 %v999_v44 }
 0x15b   :  { %v2003_v47 = vadd.f32 %v2002_v40, %v1747_v30  ;;  %v735_v30 = vsub.f32 %v3372_v29, %v223_v19  ;;  %v1404_v40 = vmul.f32 %v2456_v25, %v734_v27  ;;  %v3412_v29 = vld [vmem:[#allocation5 + $0x540] sm:$0xff]  ;;  %v1757_v60 = vand.u32 2147483647, %v1402_v31  ;;  %v231_v27 = vld [vmem:[#allocation2 + $0x530] sm:$0xff] }
 0x15c   :  { %v1001_v62 = vadd.f32 1e-08, %v3412_v29  ;;  %v2466_v3 = vpop.eup %2465  ;;  %2475 = vrcp.f32 %v1000_v51 }
 0x15d   :  { %v2004_v56 = vadd.f32 %v2003_v47, %v1748_v38  ;;  %v736_v38 = vsub.f32 %v3376_v37, %v224_v28  ;;  %v1406_v47 = vmul.f32 %v2458_v34, %v735_v30  ;;  %v3416_v37 = vld [vmem:[#allocation5 + $0x548] sm:$0xff]  ;;  %v1758_v57 = vand.u32 2147483647, %v1404_v40  ;;  %v232_v30 = vld [vmem:[#allocation2 + $0x538] sm:$0xff] }
 0x15e   :  { %v1002_v6 = vadd.f32 1e-08, %v3416_v37  ;;  %v2468_v11 = vpop.eup %2467  ;;  %2477 = vrcp.f32 %v1001_v62 }
 0x15f   :  { %v2005_v0 = vadd.f32 %v2004_v56, %v1749_v46  ;;  %v737_v46 = vsub.f32 %v3380_v41, %v225_v35  ;;  %v1408_v56 = vmul.f32 %v2460_v36, %v736_v38  ;;  %v3420_v41 = vld [vmem:[#allocation5 + $0x550] sm:$0xff]  ;;  %v1759_v1 = vand.u32 2147483647, %v1406_v47  ;;  %v233_v38 = vld [vmem:[#allocation2 + $0x540] sm:$0xff] }
 0x160   :  { %v1003_v14 = vadd.f32 1e-08, %v3420_v41  ;;  %v2470_v32 = vpop.eup %2469  ;;  %2479 = vrcp.f32 %v1002_v6 }
 0x161   :  { %v2006_v8 = vadd.f32 %v2005_v0, %v1750_v55  ;;  %v738_v55 = vsub.f32 %v3384_v48, %v226_v43  ;;  %v1410_v0 = vmul.f32 %v2462_v52, %v737_v46  ;;  %v3424_v48 = vld [vmem:[#allocation5 + $0x558] sm:$0xff]  ;;  %v1760_v9 = vand.u32 2147483647, %v1408_v56  ;;  %v234_v46 = vld [vmem:[#allocation2 + $0x548] sm:$0xff] }
 0x162   :  { %v1004_v22 = vadd.f32 1e-08, %v3424_v48  ;;  %v2472_v39 = vpop.eup %2471  ;;  %2481 = vrcp.f32 %v1003_v14 }
 0x163   :  { %v2007_v16 = vadd.f32 %v2006_v8, %v1751_v63  ;;  %v739_v63 = vsub.f32 %v3388_v50, %v227_v54  ;;  %v1412_v8 = vmul.f32 %v2464_v59, %v738_v55  ;;  %v3428_v50 = vld [vmem:[#allocation5 + $0x560] sm:$0xff]  ;;  %v1761_v18 = vand.u32 2147483647, %v1410_v0  ;;  %v235_v55 = vld [vmem:[#allocation2 + $0x550] sm:$0xff] }
 0x164   :  { %v1005_v31 = vadd.f32 1e-08, %v3428_v50  ;;  %v2474_v45 = vpop.eup %2473  ;;  %2483 = vrcp.f32 %v1004_v22 }
 0x165   :  { %v2008_v24 = vadd.f32 %v2007_v16, %v1752_v7  ;;  %v740_v7 = vsub.f32 %v3392_v58, %v228_v61  ;;  %v1414_v16 = vmul.f32 %v2466_v3, %v739_v63  ;;  %v3432_v58 = vld [vmem:[#allocation5 + $0x568] sm:$0xff]  ;;  %v1762_v25 = vand.u32 2147483647, %v1412_v8  ;;  %v236_v63 = vld [vmem:[#allocation2 + $0x558] sm:$0xff] }
 0x166   :  { %v1006_v40 = vadd.f32 1e-08, %v3432_v58  ;;  %v2476_v44 = vpop.eup %2475  ;;  %2485 = vrcp.f32 %v1005_v31 }
 0x167   :  { %v2009_v33 = vadd.f32 %v2008_v24, %v1753_v15  ;;  %v741_v15 = vsub.f32 %v3396_v12, %v229_v5  ;;  %v1416_v24 = vmul.f32 %v2468_v11, %v740_v7  ;;  %v3436_v12 = vld [vmem:[#allocation5 + $0x570] sm:$0xff]  ;;  %v1763_v34 = vand.u32 2147483647, %v1414_v16  ;;  %v237_v7 = vld [vmem:[#allocation2 + $0x560] sm:$0xff] }
 0x168   :  { %v1007_v47 = vadd.f32 1e-08, %v3436_v12  ;;  %v2478_v51 = vpop.eup %2477  ;;  %2487 = vrcp.f32 %v1006_v40 }
 0x169   :  { %v2010_v53 = vadd.f32 %v2009_v33, %v1754_v23  ;;  %v742_v23 = vsub.f32 %v3400_v17, %v230_v21  ;;  %v1418_v33 = vmul.f32 %v2470_v32, %v741_v15  ;;  %v3440_v17 = vld [vmem:[#allocation5 + $0x578] sm:$0xff]  ;;  %v1764_v36 = vand.u32 2147483647, %v1416_v24  ;;  %v238_v15 = vld [vmem:[#allocation2 + $0x568] sm:$0xff] }
 0x16a   :  { %v1008_v56 = vadd.f32 1e-08, %v3440_v17  ;;  %v2480_v62 = vpop.eup %2479  ;;  %2489 = vrcp.f32 %v1007_v47 }
 0x16b   :  { %v2011_v49 = vadd.f32 %v2010_v53, %v1755_v26  ;;  %v743_v26 = vsub.f32 %v3404_v13, %v231_v27  ;;  %v1420_v53 = vmul.f32 %v2472_v39, %v742_v23  ;;  %v3444_v13 = vld [vmem:[#allocation5 + $0x580] sm:$0xff]  ;;  %v1765_v52 = vand.u32 2147483647, %v1418_v33  ;;  %v239_v23 = vld [vmem:[#allocation2 + $0x570] sm:$0xff] }
 0x16c   :  { %v1009_v0 = vadd.f32 1e-08, %v3444_v13  ;;  %v2482_v6 = vpop.eup %2481  ;;  %2491 = vrcp.f32 %v1008_v56 }
 0x16d   :  { %v2012_v4 = vadd.f32 %v2011_v49, %v1756_v42  ;;  %v744_v42 = vsub.f32 %v3408_v20, %v232_v30  ;;  %v1422_v49 = vmul.f32 %v2474_v45, %v743_v26  ;;  %v3448_v20 = vld [vmem:[#allocation5 + $0x588] sm:$0xff]  ;;  %v1766_v59 = vand.u32 2147483647, %v1420_v53  ;;  %v240_v26 = vld [vmem:[#allocation2 + $0x578] sm:$0xff] }
 0x16e   :  { %v1010_v8 = vadd.f32 1e-08, %v3448_v20  ;;  %v2484_v14 = vpop.eup %2483  ;;  %2493 = vrcp.f32 %v1009_v0 }
 0x16f   :  { %v2013_v2 = vadd.f32 %v2012_v4, %v1757_v60  ;;  %v745_v60 = vsub.f32 %v3412_v29, %v233_v38  ;;  %v1424_v4 = vmul.f32 %v2476_v44, %v744_v42  ;;  %v3452_v29 = vld [vmem:[#allocation5 + $0x590] sm:$0xff]  ;;  %v1767_v3 = vand.u32 2147483647, %v1422_v49  ;;  %v241_v42 = vld [vmem:[#allocation2 + $0x580] sm:$0xff] }
 0x170   :  { %v1011_v16 = vadd.f32 1e-08, %v3452_v29  ;;  %v2486_v22 = vpop.eup %2485  ;;  %2495 = vrcp.f32 %v1010_v8 }
 0x171   :  { %v2014_v10 = vadd.f32 %v2013_v2, %v1758_v57  ;;  %v746_v57 = vsub.f32 %v3416_v37, %v234_v46  ;;  %v1426_v2 = vmul.f32 %v2478_v51, %v745_v60  ;;  %v3456_v37 = vld [vmem:[#allocation5 + $0x598] sm:$0xff]  ;;  %v1768_v11 = vand.u32 2147483647, %v1424_v4  ;;  %v242_v60 = vld [vmem:[#allocation2 + $0x588] sm:$0xff] }
 0x172   :  { %v1012_v24 = vadd.f32 1e-08, %v3456_v37  ;;  %v2488_v31 = vpop.eup %2487  ;;  %2497 = vrcp.f32 %v1011_v16 }
 0x173   :  { %v2015_v19 = vadd.f32 %v2014_v10, %v1759_v1  ;;  %v747_v1 = vsub.f32 %v3420_v41, %v235_v55  ;;  %v1428_v10 = vmul.f32 %v2480_v62, %v746_v57  ;;  %v3460_v41 = vld [vmem:[#allocation5 + $0x5a0] sm:$0xff]  ;;  %v1769_v32 = vand.u32 2147483647, %v1426_v2  ;;  %v243_v57 = vld [vmem:[#allocation2 + $0x590] sm:$0xff] }
 0x174   :  { %v1013_v33 = vadd.f32 1e-08, %v3460_v41  ;;  %v2490_v40 = vpop.eup %2489  ;;  %2499 = vrcp.f32 %v1012_v24 }
 0x175   :  { %v2016_v28 = vadd.f32 %v2015_v19, %v1760_v9  ;;  %v748_v9 = vsub.f32 %v3424_v48, %v236_v63  ;;  %v1430_v19 = vmul.f32 %v2482_v6, %v747_v1  ;;  %v3464_v48 = vld [vmem:[#allocation5 + $0x5a8] sm:$0xff]  ;;  %v1770_v39 = vand.u32 2147483647, %v1428_v10  ;;  %v244_v1 = vld [vmem:[#allocation2 + $0x598] sm:$0xff] }
 0x176   :  { %v1014_v53 = vadd.f32 1e-08, %v3464_v48  ;;  %v2492_v47 = vpop.eup %2491  ;;  %2501 = vrcp.f32 %v1013_v33 }
 0x177   :  { %v2017_v35 = vadd.f32 %v2016_v28, %v1761_v18  ;;  %v749_v18 = vsub.f32 %v3428_v50, %v237_v7  ;;  %v1432_v28 = vmul.f32 %v2484_v14, %v748_v9  ;;  %v3468_v50 = vld [vmem:[#allocation5 + $0x5b0] sm:$0xff]  ;;  %v1771_v45 = vand.u32 2147483647, %v1430_v19  ;;  %v245_v9 = vld [vmem:[#allocation2 + $0x5a0] sm:$0xff] }
 0x178   :  { %v1015_v49 = vadd.f32 1e-08, %v3468_v50  ;;  %v2494_v56 = vpop.eup %2493  ;;  %2503 = vrcp.f32 %v1014_v53 }
 0x179   :  { %v2018_v43 = vadd.f32 %v2017_v35, %v1762_v25  ;;  %v750_v25 = vsub.f32 %v3432_v58, %v238_v15  ;;  %v1434_v35 = vmul.f32 %v2486_v22, %v749_v18  ;;  %v3472_v58 = vld [vmem:[#allocation5 + $0x5b8] sm:$0xff]  ;;  %v1772_v44 = vand.u32 2147483647, %v1432_v28  ;;  %v246_v18 = vld [vmem:[#allocation2 + $0x5a8] sm:$0xff] }
 0x17a   :  { %v1016_v4 = vadd.f32 1e-08, %v3472_v58  ;;  %v2496_v0 = vpop.eup %2495  ;;  %2505 = vrcp.f32 %v1015_v49 }
 0x17b   :  { %v2019_v54 = vadd.f32 %v2018_v43, %v1763_v34  ;;  %v751_v34 = vsub.f32 %v3436_v12, %v239_v23  ;;  %v1436_v43 = vmul.f32 %v2488_v31, %v750_v25  ;;  %v3476_v12 = vld [vmem:[#allocation5 + $0x5c0] sm:$0xff]  ;;  %v1773_v51 = vand.u32 2147483647, %v1434_v35  ;;  %v247_v25 = vld [vmem:[#allocation2 + $0x5b0] sm:$0xff] }
 0x17c   :  { %v1017_v2 = vadd.f32 1e-08, %v3476_v12  ;;  %v2498_v8 = vpop.eup %2497  ;;  %2507 = vrcp.f32 %v1016_v4 }
 0x17d   :  { %v2020_v61 = vadd.f32 %v2019_v54, %v1764_v36  ;;  %v752_v36 = vsub.f32 %v3440_v17, %v240_v26  ;;  %v1438_v54 = vmul.f32 %v2490_v40, %v751_v34  ;;  %v3480_v17 = vld [vmem:[#allocation5 + $0x5c8] sm:$0xff]  ;;  %v1774_v62 = vand.u32 2147483647, %v1436_v43  ;;  %v248_v34 = vld [vmem:[#allocation2 + $0x5b8] sm:$0xff] }
 0x17e   :  { %v1018_v10 = vadd.f32 1e-08, %v3480_v17  ;;  %v2500_v16 = vpop.eup %2499  ;;  %2509 = vrcp.f32 %v1017_v2 }
 0x17f   :  { %v2021_v5 = vadd.f32 %v2020_v61, %v1765_v52  ;;  %v753_v52 = vsub.f32 %v3444_v13, %v241_v42  ;;  %v1440_v61 = vmul.f32 %v2492_v47, %v752_v36  ;;  %v3484_v13 = vld [vmem:[#allocation5 + $0x5d0] sm:$0xff]  ;;  %v1775_v6 = vand.u32 2147483647, %v1438_v54  ;;  %v249_v36 = vld [vmem:[#allocation2 + $0x5c0] sm:$0xff] }
 0x180   :  { %v1019_v19 = vadd.f32 1e-08, %v3484_v13  ;;  %v2502_v24 = vpop.eup %2501  ;;  %2511 = vrcp.f32 %v1018_v10 }
 0x181   :  { %v2022_v21 = vadd.f32 %v2021_v5, %v1766_v59  ;;  %v754_v59 = vsub.f32 %v3448_v20, %v242_v60  ;;  %v1442_v5 = vmul.f32 %v2494_v56, %v753_v52  ;;  %v3488_v20 = vld [vmem:[#allocation5 + $0x5d8] sm:$0xff]  ;;  %v1776_v14 = vand.u32 2147483647, %v1440_v61  ;;  %v250_v52 = vld [vmem:[#allocation2 + $0x5c8] sm:$0xff] }
 0x182   :  { %v1020_v28 = vadd.f32 1e-08, %v3488_v20  ;;  %v2504_v33 = vpop.eup %2503  ;;  %2513 = vrcp.f32 %v1019_v19 }
 0x183   :  { %v2023_v27 = vadd.f32 %v2022_v21, %v1767_v3  ;;  %v755_v3 = vsub.f32 %v3452_v29, %v243_v57  ;;  %v1444_v21 = vmul.f32 %v2496_v0, %v754_v59  ;;  %v3492_v29 = vld [vmem:[#allocation5 + $0x5e0] sm:$0xff]  ;;  %v1777_v22 = vand.u32 2147483647, %v1442_v5  ;;  %v251_v59 = vld [vmem:[#allocation2 + $0x5d0] sm:$0xff] }
 0x184   :  { %v1021_v35 = vadd.f32 1e-08, %v3492_v29  ;;  %v2506_v53 = vpop.eup %2505  ;;  %2515 = vrcp.f32 %v1020_v28 }
 0x185   :  { %v2024_v30 = vadd.f32 %v2023_v27, %v1768_v11  ;;  %v756_v11 = vsub.f32 %v3456_v37, %v244_v1  ;;  %v1446_v27 = vmul.f32 %v2498_v8, %v755_v3  ;;  %v3496_v37 = vld [vmem:[#allocation5 + $0x5e8] sm:$0xff]  ;;  %v1778_v31 = vand.u32 2147483647, %v1444_v21  ;;  %v252_v3 = vld [vmem:[#allocation2 + $0x5d8] sm:$0xff] }
 0x186   :  { %v1022_v43 = vadd.f32 1e-08, %v3496_v37  ;;  %v2508_v49 = vpop.eup %2507  ;;  %2517 = vrcp.f32 %v1021_v35 }
 0x187   :  { %v2025_v38 = vadd.f32 %v2024_v30, %v1769_v32  ;;  %v757_v32 = vsub.f32 %v3460_v41, %v245_v9  ;;  %v1448_v30 = vmul.f32 %v2500_v16, %v756_v11  ;;  %v3500_v41 = vld [vmem:[#allocation5 + $0x5f0] sm:$0xff]  ;;  %v1779_v40 = vand.u32 2147483647, %v1446_v27  ;;  %v253_v11 = vld [vmem:[#allocation2 + $0x5e0] sm:$0xff] }
 0x188   :  { %v1023_v54 = vadd.f32 1e-08, %v3500_v41  ;;  %v2510_v4 = vpop.eup %2509  ;;  %2519 = vrcp.f32 %v1022_v43 }
 0x189   :  { %v2026_v46 = vadd.f32 %v2025_v38, %v1770_v39  ;;  %v758_v39 = vsub.f32 %v3464_v48, %v246_v18  ;;  %v1450_v38 = vmul.f32 %v2502_v24, %v757_v32  ;;  %v3504_v48 = vld [vmem:[#allocation5 + $0x5f8] sm:$0xff]  ;;  %v1780_v47 = vand.u32 2147483647, %v1448_v30  ;;  %v254_v32 = vld [vmem:[#allocation2 + $0x5e8] sm:$0xff] }
 0x18a   :  { %v1024_v61 = vadd.f32 1e-08, %v3504_v48  ;;  %v2512_v2 = vpop.eup %2511  ;;  %2521 = vrcp.f32 %v1023_v54 }
 0x18b   :  { %v2027_v55 = vadd.f32 %v2026_v46, %v1771_v45  ;;  %v759_v45 = vsub.f32 %v3468_v50, %v247_v25  ;;  %v1452_v46 = vmul.f32 %v2504_v33, %v758_v39  ;;  %v3508_v50 = vld [vmem:[#allocation5 + $0x600] sm:$0xff]  ;;  %v1781_v56 = vand.u32 2147483647, %v1450_v38  ;;  %v255_v39 = vld [vmem:[#allocation2 + $0x5f0] sm:$0xff] }
 0x18c   :  { %v1025_v5 = vadd.f32 1e-08, %v3508_v50  ;;  %v2514_v10 = vpop.eup %2513  ;;  %2523 = vrcp.f32 %v1024_v61 }
 0x18d   :  { %v2028_v63 = vadd.f32 %v2027_v55, %v1772_v44  ;;  %v760_v44 = vsub.f32 %v3472_v58, %v248_v34  ;;  %v1454_v55 = vmul.f32 %v2506_v53, %v759_v45  ;;  %v3512_v58 = vld [vmem:[#allocation5 + $0x608] sm:$0xff]  ;;  %v1782_v0 = vand.u32 2147483647, %v1452_v46  ;;  %v256_v45 = vld [vmem:[#allocation2 + $0x5f8] sm:$0xff] }
 0x18e   :  { %v1026_v21 = vadd.f32 1e-08, %v3512_v58  ;;  %v2516_v19 = vpop.eup %2515  ;;  %2525 = vrcp.f32 %v1025_v5 }
 0x18f   :  { %v2029_v7 = vadd.f32 %v2028_v63, %v1773_v51  ;;  %v761_v51 = vsub.f32 %v3476_v12, %v249_v36  ;;  %v1456_v63 = vmul.f32 %v2508_v49, %v760_v44  ;;  %v3516_v12 = vld [vmem:[#allocation5 + $0x610] sm:$0xff]  ;;  %v1783_v8 = vand.u32 2147483647, %v1454_v55  ;;  %v257_v44 = vld [vmem:[#allocation2 + $0x600] sm:$0xff] }
 0x190   :  { %v1027_v27 = vadd.f32 1e-08, %v3516_v12  ;;  %v2518_v28 = vpop.eup %2517  ;;  %2527 = vrcp.f32 %v1026_v21 }
 0x191   :  { %v2030_v15 = vadd.f32 %v2029_v7, %v1774_v62  ;;  %v762_v62 = vsub.f32 %v3480_v17, %v250_v52  ;;  %v1458_v7 = vmul.f32 %v2510_v4, %v761_v51  ;;  %v3520_v17 = vld [vmem:[#allocation5 + $0x618] sm:$0xff]  ;;  %v1784_v16 = vand.u32 2147483647, %v1456_v63  ;;  %v258_v51 = vld [vmem:[#allocation2 + $0x608] sm:$0xff] }
 0x192   :  { %v1028_v30 = vadd.f32 1e-08, %v3520_v17  ;;  %v2520_v35 = vpop.eup %2519  ;;  %2529 = vrcp.f32 %v1027_v27 }
 0x193   :  { %v2031_v23 = vadd.f32 %v2030_v15, %v1775_v6  ;;  %v763_v6 = vsub.f32 %v3484_v13, %v251_v59  ;;  %v1460_v15 = vmul.f32 %v2512_v2, %v762_v62  ;;  %v3524_v13 = vld [vmem:[#allocation5 + $0x620] sm:$0xff]  ;;  %v1785_v24 = vand.u32 2147483647, %v1458_v7  ;;  %v259_v62 = vld [vmem:[#allocation2 + $0x610] sm:$0xff] }
 0x194   :  { %v1029_v38 = vadd.f32 1e-08, %v3524_v13  ;;  %v2522_v43 = vpop.eup %2521  ;;  %2531 = vrcp.f32 %v1028_v30 }
 0x195   :  { %v2032_v26 = vadd.f32 %v2031_v23, %v1776_v14  ;;  %v764_v14 = vsub.f32 %v3488_v20, %v252_v3  ;;  %v1462_v23 = vmul.f32 %v2514_v10, %v763_v6  ;;  %v3528_v20 = vld [vmem:[#allocation5 + $0x628] sm:$0xff]  ;;  %v1786_v33 = vand.u32 2147483647, %v1460_v15  ;;  %v260_v6 = vld [vmem:[#allocation2 + $0x618] sm:$0xff] }
 0x196   :  { %v1030_v46 = vadd.f32 1e-08, %v3528_v20  ;;  %v2524_v54 = vpop.eup %2523  ;;  %2533 = vrcp.f32 %v1029_v38 }
 0x197   :  { %v2033_v42 = vadd.f32 %v2032_v26, %v1777_v22  ;;  %v765_v22 = vsub.f32 %v3492_v29, %v253_v11  ;;  %v1464_v26 = vmul.f32 %v2516_v19, %v764_v14  ;;  %v3532_v29 = vld [vmem:[#allocation5 + $0x630] sm:$0xff]  ;;  %v1787_v53 = vand.u32 2147483647, %v1462_v23  ;;  %v261_v14 = vld [vmem:[#allocation2 + $0x620] sm:$0xff] }
 0x198   :  { %v1031_v55 = vadd.f32 1e-08, %v3532_v29  ;;  %v2526_v61 = vpop.eup %2525  ;;  %2535 = vrcp.f32 %v1030_v46 }
 0x199   :  { %v2034_v60 = vadd.f32 %v2033_v42, %v1778_v31  ;;  %v766_v31 = vsub.f32 %v3496_v37, %v254_v32  ;;  %v1466_v42 = vmul.f32 %v2518_v28, %v765_v22  ;;  %v3536_v37 = vld [vmem:[#allocation5 + $0x638] sm:$0xff]  ;;  %v1788_v49 = vand.u32 2147483647, %v1464_v26  ;;  %v262_v22 = vld [vmem:[#allocation2 + $0x628] sm:$0xff] }
 0x19a   :  { %v1032_v63 = vadd.f32 1e-08, %v3536_v37  ;;  %v2528_v5 = vpop.eup %2527  ;;  %2537 = vrcp.f32 %v1031_v55 }
 0x19b   :  { %v2035_v57 = vadd.f32 %v2034_v60, %v1779_v40  ;;  %v767_v40 = vsub.f32 %v3500_v41, %v255_v39  ;;  %v1468_v60 = vmul.f32 %v2520_v35, %v766_v31  ;;  %v3540_v41 = vld [vmem:[#allocation5 + $0x640] sm:$0xff]  ;;  %v1789_v4 = vand.u32 2147483647, %v1466_v42  ;;  %v263_v31 = vld [vmem:[#allocation2 + $0x630] sm:$0xff] }
 0x19c   :  { %v1033_v7 = vadd.f32 1e-08, %v3540_v41  ;;  %v2530_v21 = vpop.eup %2529  ;;  %2539 = vrcp.f32 %v1032_v63 }
 0x19d   :  { %v2036_v1 = vadd.f32 %v2035_v57, %v1780_v47  ;;  %v768_v47 = vsub.f32 %v3504_v48, %v256_v45  ;;  %v1470_v57 = vmul.f32 %v2522_v43, %v767_v40  ;;  %v3544_v48 = vld [vmem:[#allocation5 + $0x648] sm:$0xff]  ;;  %v1790_v2 = vand.u32 2147483647, %v1468_v60  ;;  %v264_v40 = vld [vmem:[#allocation2 + $0x638] sm:$0xff] }
 0x19e   :  { %v1034_v15 = vadd.f32 1e-08, %v3544_v48  ;;  %v2532_v27 = vpop.eup %2531  ;;  %2541 = vrcp.f32 %v1033_v7 }
 0x19f   :  { %v2037_v9 = vadd.f32 %v2036_v1, %v1781_v56  ;;  %v769_v56 = vsub.f32 %v3508_v50, %v257_v44  ;;  %v1472_v1 = vmul.f32 %v2524_v54, %v768_v47  ;;  %v3548_v50 = vld [vmem:[#allocation5 + $0x650] sm:$0xff]  ;;  %v1791_v10 = vand.u32 2147483647, %v1470_v57  ;;  %v265_v47 = vld [vmem:[#allocation2 + $0x640] sm:$0xff] }
 0x1a0   :  { %v1035_v23 = vadd.f32 1e-08, %v3548_v50  ;;  %v2534_v30 = vpop.eup %2533  ;;  %2543 = vrcp.f32 %v1034_v15 }
 0x1a1   :  { %v2038_v18 = vadd.f32 %v2037_v9, %v1782_v0  ;;  %v770_v0 = vsub.f32 %v3512_v58, %v258_v51  ;;  %v1474_v9 = vmul.f32 %v2526_v61, %v769_v56  ;;  %v3552_v58 = vld [vmem:[#allocation5 + $0x658] sm:$0xff]  ;;  %v1792_v19 = vand.u32 2147483647, %v1472_v1  ;;  %v266_v56 = vld [vmem:[#allocation2 + $0x648] sm:$0xff] }
 0x1a2   :  { %v1036_v26 = vadd.f32 1e-08, %v3552_v58  ;;  %v2536_v38 = vpop.eup %2535  ;;  %2545 = vrcp.f32 %v1035_v23 }
 0x1a3   :  { %v2039_v25 = vadd.f32 %v2038_v18, %v1783_v8  ;;  %v771_v8 = vsub.f32 %v3516_v12, %v259_v62  ;;  %v1476_v18 = vmul.f32 %v2528_v5, %v770_v0  ;;  %v3556_v12 = vld [vmem:[#allocation5 + $0x660] sm:$0xff]  ;;  %v1793_v28 = vand.u32 2147483647, %v1474_v9  ;;  %v267_v0 = vld [vmem:[#allocation2 + $0x650] sm:$0xff] }
 0x1a4   :  { %v1037_v42 = vadd.f32 1e-08, %v3556_v12  ;;  %v2538_v46 = vpop.eup %2537  ;;  %2547 = vrcp.f32 %v1036_v26 }
 0x1a5   :  { %v2040_v34 = vadd.f32 %v2039_v25, %v1784_v16  ;;  %v772_v16 = vsub.f32 %v3520_v17, %v260_v6  ;;  %v1478_v25 = vmul.f32 %v2530_v21, %v771_v8  ;;  %v3560_v17 = vld [vmem:[#allocation5 + $0x668] sm:$0xff]  ;;  %v1794_v35 = vand.u32 2147483647, %v1476_v18  ;;  %v268_v8 = vld [vmem:[#allocation2 + $0x658] sm:$0xff] }
 0x1a6   :  { %v1038_v60 = vadd.f32 1e-08, %v3560_v17  ;;  %v2540_v55 = vpop.eup %2539  ;;  %2549 = vrcp.f32 %v1037_v42 }
 0x1a7   :  { %v2041_v36 = vadd.f32 %v2040_v34, %v1785_v24  ;;  %v773_v24 = vsub.f32 %v3524_v13, %v261_v14  ;;  %v1480_v34 = vmul.f32 %v2532_v27, %v772_v16  ;;  %v3564_v13 = vld [vmem:[#allocation5 + $0x670] sm:$0xff]  ;;  %v1795_v43 = vand.u32 2147483647, %v1478_v25  ;;  %v269_v16 = vld [vmem:[#allocation2 + $0x660] sm:$0xff] }
 0x1a8   :  { %v1039_v57 = vadd.f32 1e-08, %v3564_v13  ;;  %v2542_v63 = vpop.eup %2541  ;;  %2551 = vrcp.f32 %v1038_v60 }
 0x1a9   :  { %v2042_v52 = vadd.f32 %v2041_v36, %v1786_v33  ;;  %v774_v33 = vsub.f32 %v3528_v20, %v262_v22  ;;  %v1482_v36 = vmul.f32 %v2534_v30, %v773_v24  ;;  %v3568_v20 = vld [vmem:[#allocation5 + $0x678] sm:$0xff]  ;;  %v1796_v54 = vand.u32 2147483647, %v1480_v34  ;;  %v270_v24 = vld [vmem:[#allocation2 + $0x668] sm:$0xff] }
 0x1aa   :  { %v1040_v1 = vadd.f32 1e-08, %v3568_v20  ;;  %v2544_v7 = vpop.eup %2543  ;;  %2553 = vrcp.f32 %v1039_v57 }
 0x1ab   :  { %v2043_v59 = vadd.f32 %v2042_v52, %v1787_v53  ;;  %v775_v53 = vsub.f32 %v3532_v29, %v263_v31  ;;  %v1484_v52 = vmul.f32 %v2536_v38, %v774_v33  ;;  %v3572_v29 = vld [vmem:[#allocation5 + $0x680] sm:$0xff]  ;;  %v1797_v61 = vand.u32 2147483647, %v1482_v36  ;;  %v271_v33 = vld [vmem:[#allocation2 + $0x670] sm:$0xff] }
 0x1ac   :  { %v1041_v9 = vadd.f32 1e-08, %v3572_v29  ;;  %v2546_v15 = vpop.eup %2545  ;;  %2555 = vrcp.f32 %v1040_v1 }
 0x1ad   :  { %v2044_v3 = vadd.f32 %v2043_v59, %v1788_v49  ;;  %v776_v49 = vsub.f32 %v3536_v37, %v264_v40  ;;  %v1486_v59 = vmul.f32 %v2538_v46, %v775_v53  ;;  %v3576_v37 = vld [vmem:[#allocation5 + $0x688] sm:$0xff]  ;;  %v1798_v5 = vand.u32 2147483647, %v1484_v52  ;;  %v272_v53 = vld [vmem:[#allocation2 + $0x678] sm:$0xff] }
 0x1ae   :  { %v1042_v18 = vadd.f32 1e-08, %v3576_v37  ;;  %v2548_v23 = vpop.eup %2547  ;;  %2557 = vrcp.f32 %v1041_v9 }
 0x1af   :  { %v2045_v11 = vadd.f32 %v2044_v3, %v1789_v4  ;;  %v777_v4 = vsub.f32 %v3540_v41, %v265_v47  ;;  %v1488_v3 = vmul.f32 %v2540_v55, %v776_v49  ;;  %v3580_v41 = vld [vmem:[#allocation5 + $0x690] sm:$0xff]  ;;  %v1799_v21 = vand.u32 2147483647, %v1486_v59  ;;  %v273_v49 = vld [vmem:[#allocation2 + $0x680] sm:$0xff] }
 0x1b0   :  { %v1043_v25 = vadd.f32 1e-08, %v3580_v41  ;;  %v2550_v26 = vpop.eup %2549  ;;  %2559 = vrcp.f32 %v1042_v18 }
 0x1b1   :  { %v2046_v32 = vadd.f32 %v2045_v11, %v1790_v2  ;;  %v778_v2 = vsub.f32 %v3544_v48, %v266_v56  ;;  %v1490_v11 = vmul.f32 %v2542_v63, %v777_v4  ;;  %v3584_v48 = vld [vmem:[#allocation5 + $0x698] sm:$0xff]  ;;  %v1800_v27 = vand.u32 2147483647, %v1488_v3  ;;  %v274_v4 = vld [vmem:[#allocation2 + $0x688] sm:$0xff] }
 0x1b2   :  { %v1044_v34 = vadd.f32 1e-08, %v3584_v48  ;;  %v2552_v42 = vpop.eup %2551  ;;  %2561 = vrcp.f32 %v1043_v25 }
 0x1b3   :  { %v2047_v39 = vadd.f32 %v2046_v32, %v1791_v10  ;;  %v779_v10 = vsub.f32 %v3548_v50, %v267_v0  ;;  %v1492_v32 = vmul.f32 %v2544_v7, %v778_v2  ;;  %v3588_v50 = vld [vmem:[#allocation5 + $0x6a0] sm:$0xff]  ;;  %v1801_v30 = vand.u32 2147483647, %v1490_v11  ;;  %v275_v2 = vld [vmem:[#allocation2 + $0x690] sm:$0xff] }
 0x1b4   :  { %v1045_v36 = vadd.f32 1e-08, %v3588_v50  ;;  %v2554_v60 = vpop.eup %2553  ;;  %2563 = vrcp.f32 %v1044_v34 }
 0x1b5   :  { %v2048_v45 = vadd.f32 %v2047_v39, %v1792_v19  ;;  %v780_v19 = vsub.f32 %v3552_v58, %v268_v8  ;;  %v1494_v39 = vmul.f32 %v2546_v15, %v779_v10  ;;  %v3592_v58 = vld [vmem:[#allocation5 + $0x6a8] sm:$0xff]  ;;  %v1802_v38 = vand.u32 2147483647, %v1492_v32  ;;  %v276_v10 = vld [vmem:[#allocation2 + $0x698] sm:$0xff] }
 0x1b6   :  { %v1046_v52 = vadd.f32 1e-08, %v3592_v58  ;;  %v2556_v57 = vpop.eup %2555  ;;  %2565 = vrcp.f32 %v1045_v36 }
 0x1b7   :  { %v2049_v44 = vadd.f32 %v2048_v45, %v1793_v28  ;;  %v781_v28 = vsub.f32 %v3556_v12, %v269_v16  ;;  %v1496_v45 = vmul.f32 %v2548_v23, %v780_v19  ;;  %v3596_v12 = vld [vmem:[#allocation5 + $0x6b0] sm:$0xff]  ;;  %v1803_v46 = vand.u32 2147483647, %v1494_v39  ;;  %v277_v19 = vld [vmem:[#allocation2 + $0x6a0] sm:$0xff] }
 0x1b8   :  { %v1047_v59 = vadd.f32 1e-08, %v3596_v12  ;;  %v2558_v1 = vpop.eup %2557  ;;  %2567 = vrcp.f32 %v1046_v52 }
 0x1b9   :  { %v2050_v51 = vadd.f32 %v2049_v44, %v1794_v35  ;;  %v782_v35 = vsub.f32 %v3560_v17, %v270_v24  ;;  %v1498_v44 = vmul.f32 %v2550_v26, %v781_v28  ;;  %v3600_v17 = vld [vmem:[#allocation5 + $0x6b8] sm:$0xff]  ;;  %v1804_v55 = vand.u32 2147483647, %v1496_v45  ;;  %v278_v28 = vld [vmem:[#allocation2 + $0x6a8] sm:$0xff] }
 0x1ba   :  { %v1048_v3 = vadd.f32 1e-08, %v3600_v17  ;;  %v2560_v9 = vpop.eup %2559  ;;  %2569 = vrcp.f32 %v1047_v59 }
 0x1bb   :  { %v2051_v62 = vadd.f32 %v2050_v51, %v1795_v43  ;;  %v783_v43 = vsub.f32 %v3564_v13, %v271_v33  ;;  %v1500_v51 = vmul.f32 %v2552_v42, %v782_v35  ;;  %v3604_v13 = vld [vmem:[#allocation5 + $0x6c0] sm:$0xff]  ;;  %v1805_v63 = vand.u32 2147483647, %v1498_v44  ;;  %v279_v35 = vld [vmem:[#allocation2 + $0x6b0] sm:$0xff] }
 0x1bc   :  { %v1049_v11 = vadd.f32 1e-08, %v3604_v13  ;;  %v2562_v18 = vpop.eup %2561  ;;  %2571 = vrcp.f32 %v1048_v3 }
 0x1bd   :  { %v2052_v6 = vadd.f32 %v2051_v62, %v1796_v54  ;;  %v784_v54 = vsub.f32 %v3568_v20, %v272_v53  ;;  %v1502_v62 = vmul.f32 %v2554_v60, %v783_v43  ;;  %v3608_v20 = vld [vmem:[#allocation5 + $0x6c8] sm:$0xff]  ;;  %v1806_v7 = vand.u32 2147483647, %v1500_v51  ;;  %v280_v43 = vld [vmem:[#allocation2 + $0x6b8] sm:$0xff] }
 0x1be   :  { %v1050_v32 = vadd.f32 1e-08, %v3608_v20  ;;  %v2564_v25 = vpop.eup %2563  ;;  %2573 = vrcp.f32 %v1049_v11 }
 0x1bf   :  { %v2053_v14 = vadd.f32 %v2052_v6, %v1797_v61  ;;  %v785_v61 = vsub.f32 %v3572_v29, %v273_v49  ;;  %v1504_v6 = vmul.f32 %v2556_v57, %v784_v54  ;;  %v3612_v29 = vld [vmem:[#allocation5 + $0x6d0] sm:$0xff]  ;;  %v1807_v15 = vand.u32 2147483647, %v1502_v62  ;;  %v281_v54 = vld [vmem:[#allocation2 + $0x6c0] sm:$0xff] }
 0x1c0   :  { %v1051_v39 = vadd.f32 1e-08, %v3612_v29  ;;  %v2566_v34 = vpop.eup %2565  ;;  %2575 = vrcp.f32 %v1050_v32 }
 0x1c1   :  { %v2054_v22 = vadd.f32 %v2053_v14, %v1798_v5  ;;  %v786_v5 = vsub.f32 %v3576_v37, %v274_v4  ;;  %v1506_v14 = vmul.f32 %v2558_v1, %v785_v61  ;;  %v3616_v37 = vld [vmem:[#allocation5 + $0x6d8] sm:$0xff]  ;;  %v1808_v23 = vand.u32 2147483647, %v1504_v6  ;;  %v282_v61 = vld [vmem:[#allocation2 + $0x6c8] sm:$0xff] }
 0x1c2   :  { %v1052_v45 = vadd.f32 1e-08, %v3616_v37  ;;  %v2568_v36 = vpop.eup %2567  ;;  %2577 = vrcp.f32 %v1051_v39 }
 0x1c3   :  { %v2055_v31 = vadd.f32 %v2054_v22, %v1799_v21  ;;  %v787_v21 = vsub.f32 %v3580_v41, %v275_v2  ;;  %v1508_v22 = vmul.f32 %v2560_v9, %v786_v5  ;;  %v3620_v41 = vld [vmem:[#allocation5 + $0x6e0] sm:$0xff]  ;;  %v1809_v26 = vand.u32 2147483647, %v1506_v14  ;;  %v283_v5 = vld [vmem:[#allocation2 + $0x6d0] sm:$0xff] }
 0x1c4   :  { %v1053_v44 = vadd.f32 1e-08, %v3620_v41  ;;  %v2570_v52 = vpop.eup %2569  ;;  %2579 = vrcp.f32 %v1052_v45 }
 0x1c5   :  { %v2056_v40 = vadd.f32 %v2055_v31, %v1800_v27  ;;  %v788_v27 = vsub.f32 %v3584_v48, %v276_v10  ;;  %v1510_v31 = vmul.f32 %v2562_v18, %v787_v21  ;;  %v3624_v48 = vld [vmem:[#allocation5 + $0x6e8] sm:$0xff]  ;;  %v1810_v42 = vand.u32 2147483647, %v1508_v22  ;;  %v284_v21 = vld [vmem:[#allocation2 + $0x6d8] sm:$0xff] }
 0x1c6   :  { %v1054_v51 = vadd.f32 1e-08, %v3624_v48  ;;  %v2572_v59 = vpop.eup %2571  ;;  %2581 = vrcp.f32 %v1053_v44 }
 0x1c7   :  { %v2057_v47 = vadd.f32 %v2056_v40, %v1801_v30  ;;  %v789_v30 = vsub.f32 %v3588_v50, %v277_v19  ;;  %v1512_v40 = vmul.f32 %v2564_v25, %v788_v27  ;;  %v3628_v50 = vld [vmem:[#allocation5 + $0x6f0] sm:$0xff]  ;;  %v1811_v60 = vand.u32 2147483647, %v1510_v31  ;;  %v285_v27 = vld [vmem:[#allocation2 + $0x6e0] sm:$0xff] }
 0x1c8   :  { %v1055_v62 = vadd.f32 1e-08, %v3628_v50  ;;  %v2574_v3 = vpop.eup %2573  ;;  %2583 = vrcp.f32 %v1054_v51 }
 0x1c9   :  { %v2058_v56 = vadd.f32 %v2057_v47, %v1802_v38  ;;  %v790_v38 = vsub.f32 %v3592_v58, %v278_v28  ;;  %v1514_v47 = vmul.f32 %v2566_v34, %v789_v30  ;;  %v3632_v58 = vld [vmem:[#allocation5 + $0x6f8] sm:$0xff]  ;;  %v1812_v57 = vand.u32 2147483647, %v1512_v40  ;;  %v286_v30 = vld [vmem:[#allocation2 + $0x6e8] sm:$0xff] }
 0x1ca   :  { %v1056_v6 = vadd.f32 1e-08, %v3632_v58  ;;  %v2576_v11 = vpop.eup %2575  ;;  %2585 = vrcp.f32 %v1055_v62 }
 0x1cb   :  { %v2059_v0 = vadd.f32 %v2058_v56, %v1803_v46  ;;  %v791_v46 = vsub.f32 %v3596_v12, %v279_v35  ;;  %v1516_v56 = vmul.f32 %v2568_v36, %v790_v38  ;;  %v3636_v12 = vld [vmem:[#allocation5 + $0x700] sm:$0xff]  ;;  %v1813_v1 = vand.u32 2147483647, %v1514_v47  ;;  %v287_v38 = vld [vmem:[#allocation2 + $0x6f0] sm:$0xff] }
 0x1cc   :  { %v1057_v14 = vadd.f32 1e-08, %v3636_v12  ;;  %v2578_v32 = vpop.eup %2577  ;;  %2587 = vrcp.f32 %v1056_v6 }
 0x1cd   :  { %v2060_v8 = vadd.f32 %v2059_v0, %v1804_v55  ;;  %v792_v55 = vsub.f32 %v3600_v17, %v280_v43  ;;  %v1518_v0 = vmul.f32 %v2570_v52, %v791_v46  ;;  %v3640_v17 = vld [vmem:[#allocation5 + $0x708] sm:$0xff]  ;;  %v1814_v9 = vand.u32 2147483647, %v1516_v56  ;;  %v288_v46 = vld [vmem:[#allocation2 + $0x6f8] sm:$0xff] }
 0x1ce   :  { %v1058_v22 = vadd.f32 1e-08, %v3640_v17  ;;  %v2580_v39 = vpop.eup %2579  ;;  %2589 = vrcp.f32 %v1057_v14 }
 0x1cf   :  { %v2061_v16 = vadd.f32 %v2060_v8, %v1805_v63  ;;  %v793_v63 = vsub.f32 %v3604_v13, %v281_v54  ;;  %v1520_v8 = vmul.f32 %v2572_v59, %v792_v55  ;;  %v3644_v13 = vld [vmem:[#allocation5 + $0x710] sm:$0xff]  ;;  %v1815_v18 = vand.u32 2147483647, %v1518_v0  ;;  %v289_v55 = vld [vmem:[#allocation2 + $0x700] sm:$0xff] }
 0x1d0   :  { %v1059_v31 = vadd.f32 1e-08, %v3644_v13  ;;  %v2582_v45 = vpop.eup %2581  ;;  %2591 = vrcp.f32 %v1058_v22 }
 0x1d1   :  { %v2062_v24 = vadd.f32 %v2061_v16, %v1806_v7  ;;  %v794_v7 = vsub.f32 %v3608_v20, %v282_v61  ;;  %v1522_v16 = vmul.f32 %v2574_v3, %v793_v63  ;;  %v3648_v20 = vld [vmem:[#allocation5 + $0x718] sm:$0xff]  ;;  %v1816_v25 = vand.u32 2147483647, %v1520_v8  ;;  %v290_v63 = vld [vmem:[#allocation2 + $0x708] sm:$0xff] }
 0x1d2   :  { %v1060_v40 = vadd.f32 1e-08, %v3648_v20  ;;  %v2584_v44 = vpop.eup %2583  ;;  %2593 = vrcp.f32 %v1059_v31 }
 0x1d3   :  { %v2063_v33 = vadd.f32 %v2062_v24, %v1807_v15  ;;  %v795_v15 = vsub.f32 %v3612_v29, %v283_v5  ;;  %v1524_v24 = vmul.f32 %v2576_v11, %v794_v7  ;;  %v3652_v29 = vld [vmem:[#allocation5 + $0x720] sm:$0xff]  ;;  %v1817_v34 = vand.u32 2147483647, %v1522_v16  ;;  %v291_v7 = vld [vmem:[#allocation2 + $0x710] sm:$0xff] }
 0x1d4   :  { %v1061_v47 = vadd.f32 1e-08, %v3652_v29  ;;  %v2586_v51 = vpop.eup %2585  ;;  %2595 = vrcp.f32 %v1060_v40 }
 0x1d5   :  { %v2064_v53 = vadd.f32 %v2063_v33, %v1808_v23  ;;  %v796_v23 = vsub.f32 %v3616_v37, %v284_v21  ;;  %v1526_v33 = vmul.f32 %v2578_v32, %v795_v15  ;;  %v3656_v37 = vld [vmem:[#allocation5 + $0x728] sm:$0xff]  ;;  %v1818_v36 = vand.u32 2147483647, %v1524_v24  ;;  %v292_v15 = vld [vmem:[#allocation2 + $0x718] sm:$0xff] }
 0x1d6   :  { %v1062_v56 = vadd.f32 1e-08, %v3656_v37  ;;  %v2588_v62 = vpop.eup %2587  ;;  %2597 = vrcp.f32 %v1061_v47 }
 0x1d7   :  { %v2065_v49 = vadd.f32 %v2064_v53, %v1809_v26  ;;  %v797_v26 = vsub.f32 %v3620_v41, %v285_v27  ;;  %v1528_v53 = vmul.f32 %v2580_v39, %v796_v23  ;;  %v3660_v41 = vld [vmem:[#allocation5 + $0x730] sm:$0xff]  ;;  %v1819_v52 = vand.u32 2147483647, %v1526_v33  ;;  %v293_v23 = vld [vmem:[#allocation2 + $0x720] sm:$0xff] }
 0x1d8   :  { %v1063_v0 = vadd.f32 1e-08, %v3660_v41  ;;  %v2590_v6 = vpop.eup %2589  ;;  %2599 = vrcp.f32 %v1062_v56 }
 0x1d9   :  { %v2066_v4 = vadd.f32 %v2065_v49, %v1810_v42  ;;  %v798_v42 = vsub.f32 %v3624_v48, %v286_v30  ;;  %v1530_v49 = vmul.f32 %v2582_v45, %v797_v26  ;;  %v3664_v48 = vld [vmem:[#allocation5 + $0x738] sm:$0xff]  ;;  %v1820_v59 = vand.u32 2147483647, %v1528_v53  ;;  %v294_v26 = vld [vmem:[#allocation2 + $0x728] sm:$0xff] }
 0x1da   :  { %v1064_v8 = vadd.f32 1e-08, %v3664_v48  ;;  %v2592_v14 = vpop.eup %2591  ;;  %2601 = vrcp.f32 %v1063_v0 }
 0x1db   :  { %v2067_v2 = vadd.f32 %v2066_v4, %v1811_v60  ;;  %v799_v60 = vsub.f32 %v3628_v50, %v287_v38  ;;  %v1532_v4 = vmul.f32 %v2584_v44, %v798_v42  ;;  %v3668_v50 = vld [vmem:[#allocation5 + $0x740] sm:$0xff]  ;;  %v1821_v3 = vand.u32 2147483647, %v1530_v49  ;;  %v295_v42 = vld [vmem:[#allocation2 + $0x730] sm:$0xff] }
 0x1dc   :  { %v1065_v16 = vadd.f32 1e-08, %v3668_v50  ;;  %v2594_v22 = vpop.eup %2593  ;;  %2603 = vrcp.f32 %v1064_v8 }
 0x1dd   :  { %v2068_v10 = vadd.f32 %v2067_v2, %v1812_v57  ;;  %v800_v57 = vsub.f32 %v3632_v58, %v288_v46  ;;  %v1534_v2 = vmul.f32 %v2586_v51, %v799_v60  ;;  %v3672_v58 = vld [vmem:[#allocation5 + $0x748] sm:$0xff]  ;;  %v1822_v11 = vand.u32 2147483647, %v1532_v4  ;;  %v296_v60 = vld [vmem:[#allocation2 + $0x738] sm:$0xff] }
 0x1de   :  { %v1066_v24 = vadd.f32 1e-08, %v3672_v58  ;;  %v2596_v31 = vpop.eup %2595  ;;  %2605 = vrcp.f32 %v1065_v16 }
 0x1df   :  { %v2069_v19 = vadd.f32 %v2068_v10, %v1813_v1  ;;  %v801_v1 = vsub.f32 %v3636_v12, %v289_v55  ;;  %v1536_v10 = vmul.f32 %v2588_v62, %v800_v57  ;;  %v3676_v12 = vld [vmem:[#allocation5 + $0x750] sm:$0xff]  ;;  %v1823_v32 = vand.u32 2147483647, %v1534_v2  ;;  %v297_v57 = vld [vmem:[#allocation2 + $0x740] sm:$0xff] }
 0x1e0   :  { %v1067_v33 = vadd.f32 1e-08, %v3676_v12  ;;  %v2598_v40 = vpop.eup %2597  ;;  %2607 = vrcp.f32 %v1066_v24 }
 0x1e1   :  { %v2070_v28 = vadd.f32 %v2069_v19, %v1814_v9  ;;  %v802_v9 = vsub.f32 %v3640_v17, %v290_v63  ;;  %v1538_v19 = vmul.f32 %v2590_v6, %v801_v1  ;;  %v3680_v17 = vld [vmem:[#allocation5 + $0x758] sm:$0xff]  ;;  %v1824_v39 = vand.u32 2147483647, %v1536_v10  ;;  %v298_v1 = vld [vmem:[#allocation2 + $0x748] sm:$0xff] }
 0x1e2   :  { %v1068_v53 = vadd.f32 1e-08, %v3680_v17  ;;  %v2600_v47 = vpop.eup %2599  ;;  %2609 = vrcp.f32 %v1067_v33 }
 0x1e3   :  { %v2071_v35 = vadd.f32 %v2070_v28, %v1815_v18  ;;  %v803_v18 = vsub.f32 %v3644_v13, %v291_v7  ;;  %v1540_v28 = vmul.f32 %v2592_v14, %v802_v9  ;;  %v3684_v13 = vld [vmem:[#allocation5 + $0x760] sm:$0xff]  ;;  %v1825_v45 = vand.u32 2147483647, %v1538_v19  ;;  %v299_v9 = vld [vmem:[#allocation2 + $0x750] sm:$0xff] }
 0x1e4   :  { %v1069_v49 = vadd.f32 1e-08, %v3684_v13  ;;  %v2602_v56 = vpop.eup %2601  ;;  %2611 = vrcp.f32 %v1068_v53 }
 0x1e5   :  { %v2072_v43 = vadd.f32 %v2071_v35, %v1816_v25  ;;  %v804_v25 = vsub.f32 %v3648_v20, %v292_v15  ;;  %v1542_v35 = vmul.f32 %v2594_v22, %v803_v18  ;;  %v3688_v20 = vld [vmem:[#allocation5 + $0x768] sm:$0xff]  ;;  %v1826_v44 = vand.u32 2147483647, %v1540_v28  ;;  %v300_v18 = vld [vmem:[#allocation2 + $0x758] sm:$0xff] }
 0x1e6   :  { %v1070_v4 = vadd.f32 1e-08, %v3688_v20  ;;  %v2604_v0 = vpop.eup %2603  ;;  %2613 = vrcp.f32 %v1069_v49 }
 0x1e7   :  { %v2073_v54 = vadd.f32 %v2072_v43, %v1817_v34  ;;  %v805_v34 = vsub.f32 %v3652_v29, %v293_v23  ;;  %v1544_v43 = vmul.f32 %v2596_v31, %v804_v25  ;;  %v3692_v29 = vld [vmem:[#allocation5 + $0x770] sm:$0xff]  ;;  %v1827_v51 = vand.u32 2147483647, %v1542_v35  ;;  %v301_v25 = vld [vmem:[#allocation2 + $0x760] sm:$0xff] }
 0x1e8   :  { %v1071_v2 = vadd.f32 1e-08, %v3692_v29  ;;  %v2606_v8 = vpop.eup %2605  ;;  %2615 = vrcp.f32 %v1070_v4 }
 0x1e9   :  { %v2074_v61 = vadd.f32 %v2073_v54, %v1818_v36  ;;  %v806_v36 = vsub.f32 %v3656_v37, %v294_v26  ;;  %v1546_v54 = vmul.f32 %v2598_v40, %v805_v34  ;;  %v3696_v37 = vld [vmem:[#allocation5 + $0x778] sm:$0xff]  ;;  %v1828_v62 = vand.u32 2147483647, %v1544_v43  ;;  %v302_v34 = vld [vmem:[#allocation2 + $0x768] sm:$0xff] }
 0x1ea   :  { %v1072_v10 = vadd.f32 1e-08, %v3696_v37  ;;  %v2608_v16 = vpop.eup %2607  ;;  %2617 = vrcp.f32 %v1071_v2 }
 0x1eb   :  { %v2075_v5 = vadd.f32 %v2074_v61, %v1819_v52  ;;  %v807_v52 = vsub.f32 %v3660_v41, %v295_v42  ;;  %v1548_v61 = vmul.f32 %v2600_v47, %v806_v36  ;;  %v3700_v41 = vld [vmem:[#allocation5 + $0x780] sm:$0xff]  ;;  %v1829_v6 = vand.u32 2147483647, %v1546_v54  ;;  %v303_v36 = vld [vmem:[#allocation2 + $0x770] sm:$0xff] }
 0x1ec   :  { %v1073_v19 = vadd.f32 1e-08, %v3700_v41  ;;  %v2610_v24 = vpop.eup %2609  ;;  %2619 = vrcp.f32 %v1072_v10 }
 0x1ed   :  { %v2076_v21 = vadd.f32 %v2075_v5, %v1820_v59  ;;  %v808_v59 = vsub.f32 %v3664_v48, %v296_v60  ;;  %v1550_v5 = vmul.f32 %v2602_v56, %v807_v52  ;;  %v3704_v48 = vld [vmem:[#allocation5 + $0x788] sm:$0xff]  ;;  %v1830_v14 = vand.u32 2147483647, %v1548_v61  ;;  %v304_v52 = vld [vmem:[#allocation2 + $0x778] sm:$0xff] }
 0x1ee   :  { %v1074_v28 = vadd.f32 1e-08, %v3704_v48  ;;  %v2612_v33 = vpop.eup %2611  ;;  %2621 = vrcp.f32 %v1073_v19 }
 0x1ef   :  { %v2077_v27 = vadd.f32 %v2076_v21, %v1821_v3  ;;  %v809_v3 = vsub.f32 %v3668_v50, %v297_v57  ;;  %v1552_v21 = vmul.f32 %v2604_v0, %v808_v59  ;;  %v3708_v50 = vld [vmem:[#allocation5 + $0x790] sm:$0xff]  ;;  %v1831_v22 = vand.u32 2147483647, %v1550_v5  ;;  %v305_v59 = vld [vmem:[#allocation2 + $0x780] sm:$0xff] }
 0x1f0   :  { %v1075_v35 = vadd.f32 1e-08, %v3708_v50  ;;  %v2614_v53 = vpop.eup %2613  ;;  %2623 = vrcp.f32 %v1074_v28 }
 0x1f1   :  { %v2078_v30 = vadd.f32 %v2077_v27, %v1822_v11  ;;  %v810_v11 = vsub.f32 %v3672_v58, %v298_v1  ;;  %v1554_v27 = vmul.f32 %v2606_v8, %v809_v3  ;;  %v3712_v58 = vld [vmem:[#allocation5 + $0x798] sm:$0xff]  ;;  %v1832_v31 = vand.u32 2147483647, %v1552_v21  ;;  %v306_v3 = vld [vmem:[#allocation2 + $0x788] sm:$0xff] }
 0x1f2   :  { %v1076_v43 = vadd.f32 1e-08, %v3712_v58  ;;  %v2616_v49 = vpop.eup %2615  ;;  %2625 = vrcp.f32 %v1075_v35 }
 0x1f3   :  { %v2079_v38 = vadd.f32 %v2078_v30, %v1823_v32  ;;  %v811_v32 = vsub.f32 %v3676_v12, %v299_v9  ;;  %v1556_v30 = vmul.f32 %v2608_v16, %v810_v11  ;;  %v3716_v12 = vld [vmem:[#allocation5 + $0x7a0] sm:$0xff]  ;;  %v1833_v40 = vand.u32 2147483647, %v1554_v27  ;;  %v307_v11 = vld [vmem:[#allocation2 + $0x790] sm:$0xff] }
 0x1f4   :  { %v1077_v54 = vadd.f32 1e-08, %v3716_v12  ;;  %v2618_v4 = vpop.eup %2617  ;;  %2627 = vrcp.f32 %v1076_v43 }
 0x1f5   :  { %v2080_v46 = vadd.f32 %v2079_v38, %v1824_v39  ;;  %v812_v39 = vsub.f32 %v3680_v17, %v300_v18  ;;  %v1558_v38 = vmul.f32 %v2610_v24, %v811_v32  ;;  %v3720_v17 = vld [vmem:[#allocation5 + $0x7a8] sm:$0xff]  ;;  %v1834_v47 = vand.u32 2147483647, %v1556_v30  ;;  %v308_v32 = vld [vmem:[#allocation2 + $0x798] sm:$0xff] }
 0x1f6   :  { %v1078_v61 = vadd.f32 1e-08, %v3720_v17  ;;  %v2620_v2 = vpop.eup %2619  ;;  %2629 = vrcp.f32 %v1077_v54 }
 0x1f7   :  { %v2081_v55 = vadd.f32 %v2080_v46, %v1825_v45  ;;  %v813_v45 = vsub.f32 %v3684_v13, %v301_v25  ;;  %v1560_v46 = vmul.f32 %v2612_v33, %v812_v39  ;;  %v3724_v13 = vld [vmem:[#allocation5 + $0x7b0] sm:$0xff]  ;;  %v1835_v56 = vand.u32 2147483647, %v1558_v38  ;;  %v309_v39 = vld [vmem:[#allocation2 + $0x7a0] sm:$0xff] }
 0x1f8   :  { %v1079_v5 = vadd.f32 1e-08, %v3724_v13  ;;  %v2622_v10 = vpop.eup %2621  ;;  %2631 = vrcp.f32 %v1078_v61 }
 0x1f9   :  { %v2082_v63 = vadd.f32 %v2081_v55, %v1826_v44  ;;  %v814_v44 = vsub.f32 %v3688_v20, %v302_v34  ;;  %v1562_v55 = vmul.f32 %v2614_v53, %v813_v45  ;;  %v3728_v20 = vld [vmem:[#allocation5 + $0x7b8] sm:$0xff]  ;;  %v1836_v0 = vand.u32 2147483647, %v1560_v46  ;;  %v310_v45 = vld [vmem:[#allocation2 + $0x7a8] sm:$0xff] }
 0x1fa   :  { %v1080_v21 = vadd.f32 1e-08, %v3728_v20  ;;  %v2624_v19 = vpop.eup %2623  ;;  %2633 = vrcp.f32 %v1079_v5 }
 0x1fb   :  { %v2083_v7 = vadd.f32 %v2082_v63, %v1827_v51  ;;  %v815_v51 = vsub.f32 %v3692_v29, %v303_v36  ;;  %v1564_v63 = vmul.f32 %v2616_v49, %v814_v44  ;;  %v3732_v29 = vld [vmem:[#allocation5 + $0x7c0] sm:$0xff]  ;;  %v1837_v8 = vand.u32 2147483647, %v1562_v55  ;;  %v311_v44 = vld [vmem:[#allocation2 + $0x7b0] sm:$0xff] }
 0x1fc   :  { %v1081_v27 = vadd.f32 1e-08, %v3732_v29  ;;  %v2626_v28 = vpop.eup %2625  ;;  %2635 = vrcp.f32 %v1080_v21  ;;  %v315_v21 = vld [vmem:[#allocation2 + $0x7d0] sm:$0xff] }
 0x1fd   :  { %v2084_v15 = vadd.f32 %v2083_v7, %v1828_v62  ;;  %v816_v62 = vsub.f32 %v3696_v37, %v304_v52  ;;  %v1566_v7 = vmul.f32 %v2618_v4, %v815_v51  ;;  %v3736_v37 = vld [vmem:[#allocation5 + $0x7c8] sm:$0xff]  ;;  %v1838_v16 = vand.u32 2147483647, %v1564_v63  ;;  %v312_v51 = vld [vmem:[#allocation2 + $0x7b8] sm:$0xff] }
 0x1fe   :  { %v1082_v30 = vadd.f32 1e-08, %v3736_v37  ;;  %v2628_v35 = vpop.eup %2627  ;;  %2637 = vrcp.f32 %v1081_v27 }
 0x1ff   :  { %v2085_v23 = vadd.f32 %v2084_v15, %v1829_v6  ;;  %v817_v6 = vsub.f32 %v3700_v41, %v305_v59  ;;  %v1568_v15 = vmul.f32 %v2620_v2, %v816_v62  ;;  %v3740_v41 = vld [vmem:[#allocation5 + $0x7d0] sm:$0xff]  ;;  %v1839_v24 = vand.u32 2147483647, %v1566_v7  ;;  %v313_v62 = vld [vmem:[#allocation2 + $0x7c0] sm:$0xff] }
 0x200   :  { %v1083_v38 = vadd.f32 1e-08, %v3740_v41  ;;  %v2630_v43 = vpop.eup %2629  ;;  %2639 = vrcp.f32 %v1082_v30  ;;  %v827_v27 = vsub.f32 %v3740_v41, %v315_v21  ;;  %v319_v41 = vld [vmem:[#allocation2 + $0x7f0] sm:$0xff] }
 0x201   :  { %v2086_v26 = vadd.f32 %v2085_v23, %v1830_v14  ;;  %v818_v14 = vsub.f32 %v3704_v48, %v306_v3  ;;  %v1570_v23 = vmul.f32 %v2622_v10, %v817_v6  ;;  %v3744_v48 = vld [vmem:[#allocation5 + $0x7d8] sm:$0xff]  ;;  %v1840_v33 = vand.u32 2147483647, %v1568_v15  ;;  %v314_v6 = vld [vmem:[#allocation2 + $0x7c8] sm:$0xff] }
 0x202   :  { %v1084_v46 = vadd.f32 1e-08, %v3744_v48  ;;  %v2632_v54 = vpop.eup %2631  ;;  %2641 = vrcp.f32 %v1083_v38 }
 0x203   :  { %v2087_v42 = vadd.f32 %v2086_v26, %v1831_v22  ;;  %v819_v22 = vsub.f32 %v3708_v50, %v307_v11  ;;  %v1572_v26 = vmul.f32 %v2624_v19, %v818_v14  ;;  %v3748_v50 = vld [vmem:[#allocation5 + $0x7e0] sm:$0xff]  ;;  %v1841_v53 = vand.u32 2147483647, %v1570_v23 }
 0x204   :  { %v1085_v55 = vadd.f32 1e-08, %v3748_v50  ;;  %v2634_v61 = vpop.eup %2633  ;;  %2643 = vrcp.f32 %v1084_v46 }
 0x205   :  { %v2088_v60 = vadd.f32 %v2087_v42, %v1832_v31  ;;  %v820_v31 = vsub.f32 %v3712_v58, %v308_v32  ;;  %v1574_v42 = vmul.f32 %v2626_v28, %v819_v22  ;;  %v3752_v58 = vld [vmem:[#allocation5 + $0x7e8] sm:$0xff]  ;;  %v1842_v49 = vand.u32 2147483647, %v1572_v26  ;;  %v316_v32 = vld [vmem:[#allocation2 + $0x7d8] sm:$0xff] }
 0x206   :  { %v1086_v63 = vadd.f32 1e-08, %v3752_v58  ;;  %v2636_v5 = vpop.eup %2635  ;;  %2645 = vrcp.f32 %v1085_v55  ;;  %v828_v28 = vsub.f32 %v3744_v48, %v316_v32  ;;  %v318_v26 = vld [vmem:[#allocation2 + $0x7e8] sm:$0xff] }
 0x207   :  { %v2089_v57 = vadd.f32 %v2088_v60, %v1833_v40  ;;  %v821_v40 = vsub.f32 %v3716_v12, %v309_v39  ;;  %v1576_v60 = vmul.f32 %v2628_v35, %v820_v31  ;;  %v3756_v12 = vld [vmem:[#allocation5 + $0x7f0] sm:$0xff]  ;;  %v1843_v4 = vand.u32 2147483647, %v1574_v42 }
 0x208   :  { %v1087_v7 = vadd.f32 1e-08, %v3756_v12  ;;  %v2638_v11 = vpop.eup %2637  ;;  %2647 = vrcp.f32 %v1086_v63  ;;  %v831_v48 = vsub.f32 %v3756_v12, %v319_v41 }
 0x209   :  { %v2090_v1 = vadd.f32 %v2089_v57, %v1834_v47  ;;  %v822_v47 = vsub.f32 %v3720_v17, %v310_v45  ;;  %v1578_v57 = vmul.f32 %v2630_v43, %v821_v40  ;;  %v3760_v17 = vld [vmem:[#allocation5 + $0x7f8] sm:$0xff]  ;;  %v1844_v2 = vand.u32 2147483647, %v1576_v60 }
 0x20a   :  { %v1088_v14 = vadd.f32 1e-08, %v3760_v17  ;;  %v2640_v19 = vpop.eup %2639  ;;  %2649 = vrcp.f32 %v1087_v7  ;;  %v830_v40 = vsub.f32 %v3752_v58, %v318_v26 }
 0x20b   :  { %v2091_v9 = vadd.f32 %v2090_v1, %v1835_v56  ;;  %v823_v56 = vsub.f32 %v3724_v13, %v311_v44  ;;  %v1580_v1 = vmul.f32 %v2632_v54, %v822_v47  ;;  %v825_v13 = vsub.f32 %v3732_v29, %v313_v62  ;;  %v320_v44 = vld [vmem:[#allocation2 + $0x7f8] sm:$0xff] }
 0x20c   :  { %2651 = vrcp.f32 %v1088_v14 }
 0x20d   :  { %v2092_v18 = vadd.f32 %v2091_v9, %v1836_v0  ;;  %v824_v0 = vsub.f32 %v3728_v20, %v312_v51  ;;  %v1845_v9 = vand.u32 2147483647, %v1578_v57  ;;  %v826_v20 = vsub.f32 %v3736_v37, %v314_v6 }
 0x20e   :  { %v1586_v22 = vmul.f32 %v2638_v11, %v825_v13 }
 0x20f   :  { %v2093_v25 = vadd.f32 %v2092_v18, %v1837_v8  ;;  %v1582_v8 = vmul.f32 %v2634_v61, %v823_v56  ;;  %v1584_v15 = vmul.f32 %v2636_v5, %v824_v0  ;;  %v1588_v39 = vmul.f32 %v2640_v19, %v826_v20 }
 0x210   :  { %v1849_v35 = vand.u32 2147483647, %v1586_v22 }
 0x211   :  { %v2094_v34 = vadd.f32 %v2093_v25, %v1838_v16  ;;  %v1846_v16 = vand.u32 2147483647, %v1580_v1  ;;  %v1847_v29 = vand.u32 2147483647, %v1582_v8  ;;  %v317_v25 = vld [vmem:[#allocation2 + $0x7e0] sm:$0xff] }
 0x212   :  { %v1848_v30 = vand.u32 2147483647, %v1584_v15 }
 0x213   :  { %v2095_v36 = vadd.f32 %v2094_v34, %v1839_v24  ;;  %v2642_v24 = vpop.eup %2641 }
 0x214   :  { %v2644_v37 = vpop.eup %2643  ;;  %v1590_v34 = vmul.f32 %v2642_v24, %v827_v27 }
 0x215   :  { %v2096_v52 = vadd.f32 %v2095_v36, %v1840_v33  ;;  %v829_v33 = vsub.f32 %v3748_v50, %v317_v25  ;;  %v2646_v38 = vpop.eup %2645  ;;  %v1592_v42 = vmul.f32 %v2644_v37, %v828_v28  ;;  %v832_v50 = vsub.f32 %v3760_v17, %v320_v44 }
 0x216   :  { %v2648_v43 = vpop.eup %2647  ;;  %v1851_v47 = vand.u32 2147483647, %v1590_v34 }
 0x217   :  { %v2097_v59 = vadd.f32 %v2096_v52, %v1841_v53  ;;  %v1850_v53 = vand.u32 2147483647, %v1588_v39  ;;  %v1594_v46 = vmul.f32 %v2646_v38, %v829_v33  ;;  %v1596_v52 = vmul.f32 %v2648_v43, %v830_v40 }
 0x218   :  { %v1852_v54 = vand.u32 2147483647, %v1592_v42 }
 0x219   :  { %v2098_v3 = vadd.f32 %v2097_v59, %v1842_v49  ;;  %v2650_v49 = vpop.eup %2649  ;;  %v1853_v57 = vand.u32 2147483647, %v1594_v46  ;;  %v1854_v59 = vand.u32 2147483647, %v1596_v52 }
 0x21a   :  { %v2652_v55 = vpop.eup %2651  ;;  %v1598_v56 = vmul.f32 %v2650_v49, %v831_v48 }
 0x21b   :  { %v2099_v10 = vadd.f32 %v2098_v3, %v1843_v4  ;;  %v1600_v4 = vmul.f32 %v2652_v55, %v832_v50 }
 0x21c   :  { %v1855_v62 = vand.u32 2147483647, %v1598_v56 }
 0x21d   :  { %v2100_v18 = vadd.f32 %v2099_v10, %v1844_v2  ;;  %v1856_v0 = vand.u32 2147483647, %v1600_v4 }
 0x21f   :  { %v2101_v23 = vadd.f32 %v2100_v18, %v1845_v9 }
 0x221   :  { %v2102_v31 = vadd.f32 %v2101_v23, %v1846_v16 }
 0x223   :  { %v2103_v45 = vadd.f32 %v2102_v31, %v1847_v29 }
 0x225   :  { %v2104_v36 = vadd.f32 %v2103_v45, %v1848_v30 }
 0x227   :  { %v2105_v60 = vadd.f32 %v2104_v36, %v1849_v35 }
 0x229   :  { %v2106_v51 = vadd.f32 %v2105_v60, %v1850_v53 }
 0x22b   :  { %v2107_v58 = vadd.f32 %v2106_v51, %v1851_v47 }
 0x22d   :  { %v2108_v61 = vadd.f32 %v2107_v58, %v1852_v54 }
 0x22f   :  { %v2109_v63 = vadd.f32 %v2108_v61, %v1853_v57 }
 0x231   :  { %v2110_v12 = vadd.f32 %v2109_v63, %v1854_v59 }
 0x233   :  { %v2111_v1 = vadd.f32 %v2110_v12, %v1855_v62 }
 0x235   :  { %v2112_v2 = vadd.f32 %v2111_v1, %v1856_v0 }
 0x237   :  { %2114 = vst [vmem:[#allocation7] sm:$0xff] %v2112_v2 }
 0x238   :  { %2708 = shalt.err (!%p2705_p6)
}
 0x239   :  { %s2709_s10 = scalar_lea.hbm %s3787_s2, 128 }
 0x23a   :  { %p2710_p7 = scmp.ne.s32.totalorder %s3787_s2, %s2709_s10  ;;  %p2713_p8 = scmp.lt.u32.totalorder %s2709_s10, %s3787_s2 }
 0x23c   :  { %p2715_p9 = pnand %p2713_p8, %p2710_p7 }
 0x23e   :  { %2718 = shalt.err (!%p2715_p9)
}
 0x23f   :  { %2124 = dma.vmem_to_hbm [thread:$0]  %s2122_s6, 128, %s3787_s2, [#allocation4]  }
 0x240   :  { %2723 = dma.done.wait [#allocation4], 128  }
 0x241   :  { %2724 = vsyncadd [#allocation4], 4294967168 }
 0x242   :  { %2128 = vsyncpa [#allocation3], 1 }
 0x243   :  { %2129 = vsyncpa [#allocation6], 1 }
 0x244   :  { %2130 = vsyncpa [#allocation4], 1 }

</bundles_post_ra>
